<compile_context>
chip_gen: v6e
topology: v6e:2x2x1
jax: 0.10.0
libtpu: 0.0.40
codegen_flags: <defaults>
</compile_context>

<pallas_src>
import jax
import jax.numpy as jnp
from jax.experimental import pallas as pl
from jax.experimental.pallas import tpu as pltpu


def relu_conv1x1_kernel(w_ref, x_ref, o_ref):
    # Fused ReLU (VPU) + 1x1-conv as MXU matmul, fp32 accumulation.
    x = jnp.maximum(x_ref[...], 0.0)
    o_ref[...] = jnp.dot(
        w_ref[...], x, preferred_element_type=jnp.float32
    ).astype(o_ref.dtype)


def _num_cout_blocks(c_out):
    # v7x has 2 TensorCores/chip -> split C_out so both stay busy.
    # v5e / v6e have 1 TC -> single grid step (minimal per-step overhead).
    try:
        kind = jax.devices()[0].device_kind.lower()
    except Exception:
        kind = ""
    nblk = 2 if "v7" in kind else 1
    if c_out % nblk != 0 or (c_out // nblk) % 8 != 0:
        nblk = 1
    return nblk


def relu_conv1x1(x_nchw, w_oihw):
    """x_nchw: (N, C_in, H, W); w_oihw: (C_out, C_in, 1, 1) -> (N, C_out, H, W)."""
    N, C_in, H, W = x_nchw.shape
    C_out = w_oihw.shape[0]
    HW = H * W

    # Free (no-transpose) layout glue: keep channel-major NCHW ordering throughout.
    x3d = x_nchw.reshape(N, C_in, HW)      # (N, K, P)  -- pure reshape
    w_mat = w_oihw.reshape(C_out, C_in)    # (M, K)     -- pure reshape

    nblk = _num_cout_blocks(C_out)
    cb = C_out // nblk

    # TODO(synk): optional K-padding to 512 / bf16 input cast skipped to avoid an
    # extra HBM round-trip pad/cast op and to keep exact fp32 module semantics.
    cost = pl.CostEstimate(
        flops=2 * N * HW * C_in * C_out,
        transcendentals=0,
        bytes_accessed=(x3d.size + w_mat.size + N * C_out * HW) * 4,
    )

    out3d = pl.pallas_call(
        relu_conv1x1_kernel,
        out_shape=jax.ShapeDtypeStruct((N, C_out, HW), x_nchw.dtype),
        grid_spec=pltpu.PrefetchScalarGridSpec(
            num_scalar_prefetch=0,
            grid=(N, nblk),
            in_specs=[
                # weight slab: (cb, C_in) per core; full weight if nblk == 1
                pl.BlockSpec((cb, C_in), lambda n, j: (j, 0)),
                # activations: full (C_in, HW) slab, resident across the j axis
                pl.BlockSpec((None, C_in, HW), lambda n, j: (n, 0, 0)),
            ],
            out_specs=pl.BlockSpec((None, cb, HW), lambda n, j: (n, j, 0)),
        ),
        compiler_params=pltpu.CompilerParams(
            dimension_semantics=("parallel", "parallel"),
        ),
        cost_estimate=cost,
    )(w_mat, x3d)

    return out3d.reshape(N, C_out, H, W)   # free reshape back to NCHW


if __name__ == "__main__":
    key = jax.random.PRNGKey(0)
    kx, kw = jax.random.split(key)

    # Shapes from the module: Conv2d(480, 128, 1x1, bias=False), input [1, 480, 28, 28].
    x = jax.random.normal(kx, (1, 480, 28, 28), dtype=jnp.float32)
    w = jax.random.normal(kw, (128, 480, 1, 1), dtype=jnp.float32) * (1.0 / (480.0 ** 0.5))

    fwd = jax.jit(relu_conv1x1)
    out = jax.block_until_ready(fwd(x, w))

    # Sanity check against a plain-JAX reference of the same math.
    ref = jnp.einsum("nchw,oc->nohw", jnp.maximum(x, 0.0), w.reshape(128, 480))
    assert out.shape == (1, 128, 28, 28)
    assert jnp.allclose(out, ref, atol=1e-4, rtol=1e-4)

    print("KERNEL_OK")
</pallas_src>

<mosaic_0001>
module attributes {stable_mosaic.version = 11 : i64} {
  func.func @relu_conv1x1_kernel(%arg0: i32, %arg1: i32, %arg2: memref<128x480xf32, #tpu.memory_space<vmem>>, %arg3: memref<1x480x784xf32, #tpu.memory_space<vmem>>, %arg4: memref<1x128x784xf32, #tpu.memory_space<vmem>>) attributes {dimension_semantics = [#tpu.dimension_semantics<parallel>, #tpu.dimension_semantics<parallel>], iteration_bounds = array<i64: 1, 1>, scalar_prefetch = 0 : i64, scratch_operands = 0 : i64, tpu.core_type = #tpu.core_type<tc>, window_params = [{transform_indices = @transform_0, window_bounds = array<i64: 128, 480>}, {transform_indices = @transform_1, window_bounds = array<i64: 1, 480, 784>}, {transform_indices = @transform_2, window_bounds = array<i64: 1, 128, 784>}]} {
    %c0 = arith.constant 0 : index
    %c0_0 = arith.constant 0 : index
    %c0_1 = arith.constant 0 : index
    %0 = vector.load %arg3[%c0, %c0_0, %c0_1] : memref<1x480x784xf32, #tpu.memory_space<vmem>>, vector<1x480x784xf32>
    %1 = vector.shape_cast %0 : vector<1x480x784xf32> to vector<480x784xf32>
    %cst = arith.constant 0.000000e+00 : f32
    %2 = vector.broadcast %cst : f32 to vector<480x784xf32>
    %3 = arith.maximumf %1, %2 : vector<480x784xf32>
    %c0_2 = arith.constant 0 : index
    %c0_3 = arith.constant 0 : index
    %4 = vector.load %arg2[%c0_2, %c0_3] : memref<128x480xf32, #tpu.memory_space<vmem>>, vector<128x480xf32>
    %cst_4 = arith.constant dense<0.000000e+00> : vector<128x784xf32>
    %5 = tpu.matmul %4, %3, %cst_4 {dimension_numbers = #tpu.dot_dimension_numbers<[1], [0], [0], [1], [0, 0, 1, 1], [], []>} : vector<128x480xf32>, vector<480x784xf32>, vector<128x784xf32> -> vector<128x784xf32>
    %c0_5 = arith.constant 0 : index
    %c0_6 = arith.constant 0 : index
    %c0_7 = arith.constant 0 : index
    %6 = vector.load %arg4[%c0_5, %c0_6, %c0_7] : memref<1x128x784xf32, #tpu.memory_space<vmem>>, vector<1x128x784xf32>
    %7 = vector.shape_cast %6 : vector<1x128x784xf32> to vector<128x784xf32>
    %8 = vector.shape_cast %5 : vector<128x784xf32> to vector<1x128x784xf32>
    tpu.vector_store %arg4[%c0_5, %c0_6, %c0_7], %8 {strides = array<i32>} : memref<1x128x784xf32, #tpu.memory_space<vmem>>, vector<1x128x784xf32>,
    return
  }
  func.func @transform_0(%arg0: i32, %arg1: i32) -> (i32, i32) {
    %c0_i32 = arith.constant 0 : i32
    %c0_i32_0 = arith.constant 0 : i32
    return %arg1, %c0_i32 : i32, i32
  }
  func.func @transform_1(%arg0: i32, %arg1: i32) -> (i32, i32, i32) {
    %c0_i32 = arith.constant 0 : i32
    %c0_i32_0 = arith.constant 0 : i32
    %c0_i32_1 = arith.constant 0 : i32
    return %arg0, %c0_i32, %c0_i32_0 : i32, i32, i32
  }
  func.func @transform_2(%arg0: i32, %arg1: i32) -> (i32, i32, i32) {
    %c0_i32 = arith.constant 0 : i32
    %c0_i32_0 = arith.constant 0 : i32
    return %arg0, %arg1, %c0_i32 : i32, i32, i32
  }
}

</mosaic_0001>

<bundles_post_ra>
// kernel: relu_conv1x1.1
= control target key start
LH: loop header
LB: loop body
LE: loop exit
PB: predicated region body
PF: predicated region fallthrough
CT: control target
= control target key end

     0   :  { %vm915_vm0 = vcmask 785408   ;;  %vm2226_vm1 = vcmask 130048   ;;  %s5490_s1 = inlined_call_operand.vmem [shape: f32[1,480,784], index: 1, kind: input, shape index: {}]   ;;  %s5491_s0 = inlined_call_operand.vmem [shape: f32[128,480], index: 0, kind: input, shape index: {}]   ;;  %s5492_s2 = inlined_call_operand.vmem [shape: f32[1,128,784], index: 2, kind: output, shape index: {}]  }
   0x1   :  { %v117_v0 = vld [vmem:[%s5490_s1 + $0x350] sm:$0xff]  ;;  %v116_v2 = vld [vmem:[%s5490_s1 + $0x348] sm:$0xff]  ;;  %v110_v7 = vld [vmem:[%s5490_s1 + $0x318] sm:$0xff] }
   0x2   :  { %v341_v1 = vld [vmem:[%s5490_s1 + $0xa50] sm:$0xff]  ;;  %v537_v3 = vmax.f32 %v117_v0, 0.0  ;;  %v536_v5 = vmax.f32 %v116_v2, 0.0  ;;  %v340_v6 = vld [vmem:[%s5490_s1 + $0xa48] sm:$0xff]  ;;  %v334_v8 = vld [vmem:[%s5490_s1 + $0xa18] sm:$0xff]  ;;  %v530_v10 = vmax.f32 %v110_v7, 0.0 }
   0x3   :  { %v761_v4 = vmax.f32 %v341_v1, 0.0  ;;  %v760_v9 = vmax.f32 %v340_v6, 0.0  ;;  %v754_v11 = vmax.f32 %v334_v8, 0.0  ;;  %v109_v12 = vld [vmem:[%s5490_s1 + $0x310] sm:$0xff]  ;;  %v103_v14 = vld [vmem:[%s5490_s1 + $0x2e0] sm:$0xff]  ;;  %v102_v19 = vld [vmem:[%s5490_s1 + $0x2d8] sm:$0xff] }
   0x4   :  { %v333_v13 = vld [vmem:[%s5490_s1 + $0xa10] sm:$0xff]  ;;  %964 = vmatprep.subr.mxu0 %v537_v3  ;;  %v529_v15 = vmax.f32 %v109_v12, 0.0  ;;  %v523_v17 = vmax.f32 %v103_v14, 0.0  ;;  %v327_v18 = vld [vmem:[%s5490_s1 + $0x9e0] sm:$0xff]  ;;  %v326_v20 = vld [vmem:[%s5490_s1 + $0x9d8] sm:$0xff]  ;;  %v522_v22 = vmax.f32 %v102_v19, 0.0 }
   0x5   :  { %1125 = vmatprep.subr.mxu1 %v761_v4  ;;  %v753_v16 = vmax.f32 %v333_v13, 0.0  ;;  %965 = vmatpush1.msra.mxu0 %v536_v5  ;;  %v747_v21 = vmax.f32 %v327_v18, 0.0  ;;  %v746_v23 = vmax.f32 %v326_v20, 0.0  ;;  %v96_v24 = vld [vmem:[%s5490_s1 + $0x2a8] sm:$0xff]  ;;  %v95_v26 = vld [vmem:[%s5490_s1 + $0x2a0] sm:$0xff]  ;;  %v89_v30 = vld [vmem:[%s5490_s1 + $0x270] sm:$0xff] }
   0x6   :  { %1126 = vmatpush1.msra.mxu1 %v760_v9  ;;  %v320_v25 = vld [vmem:[%s5490_s1 + $0x9a8] sm:$0xff]  ;;  %966 = vmatprep.subr.mxu0 %v530_v10  ;;  %v516_v27 = vmax.f32 %v96_v24, 0.0  ;;  %v319_v29 = vld [vmem:[%s5490_s1 + $0x9a0] sm:$0xff]  ;;  %v313_v31 = vld [vmem:[%s5490_s1 + $0x970] sm:$0xff]  ;;  %v515_v32 = vmax.f32 %v95_v26, 0.0  ;;  %v509_v37 = vmax.f32 %v89_v30, 0.0 }
   0x7   :  { %1127 = vmatprep.subr.mxu1 %v754_v11  ;;  %v740_v28 = vmax.f32 %v320_v25, 0.0  ;;  %967 = vmatpush1.msra.mxu0 %v529_v15  ;;  %v739_v33 = vmax.f32 %v319_v29, 0.0  ;;  %v88_v34 = vld [vmem:[%s5490_s1 + $0x268] sm:$0xff]  ;;  %v82_v36 = vld [vmem:[%s5490_s1 + $0x238] sm:$0xff]  ;;  %v733_v38 = vmax.f32 %v313_v31, 0.0  ;;  %v81_v40 = vld [vmem:[%s5490_s1 + $0x230] sm:$0xff] }
   0x8   :  { %1128 = vmatpush1.msra.mxu1 %v753_v16  ;;  %v312_v35 = vld [vmem:[%s5490_s1 + $0x968] sm:$0xff]  ;;  %968 = vmatprep.subr.mxu0 %v523_v17  ;;  %v306_v39 = vld [vmem:[%s5490_s1 + $0x938] sm:$0xff]  ;;  %v305_v41 = vld [vmem:[%s5490_s1 + $0x930] sm:$0xff]  ;;  %v508_v42 = vmax.f32 %v88_v34, 0.0  ;;  %v502_v46 = vmax.f32 %v82_v36, 0.0  ;;  %v501_v50 = vmax.f32 %v81_v40, 0.0 }
   0x9   :  { %1129 = vmatprep.subr.mxu1 %v747_v21  ;;  %969 = vmatpush1.msra.mxu0 %v522_v22  ;;  %v732_v43 = vmax.f32 %v312_v35, 0.0  ;;  %v75_v44 = vld [vmem:[%s5490_s1 + $0x200] sm:$0xff]  ;;  %v726_v47 = vmax.f32 %v306_v39, 0.0  ;;  %v74_v48 = vld [vmem:[%s5490_s1 + $0x1f8] sm:$0xff]  ;;  %v725_v51 = vmax.f32 %v305_v41, 0.0  ;;  %v68_v52 = vld [vmem:[%s5490_s1 + $0x1c8] sm:$0xff] }
   0xa   :  { %1130 = vmatpush1.msra.mxu1 %v746_v23  ;;  %v299_v45 = vld [vmem:[%s5490_s1 + $0x900] sm:$0xff]  ;;  %970 = vmatprep.subr.mxu0 %v516_v27  ;;  %v298_v49 = vld [vmem:[%s5490_s1 + $0x8f8] sm:$0xff]  ;;  %v292_v53 = vld [vmem:[%s5490_s1 + $0x8c8] sm:$0xff]  ;;  %v495_v54 = vmax.f32 %v75_v44, 0.0  ;;  %v494_v58 = vmax.f32 %v74_v48, 0.0  ;;  %v488_v62 = vmax.f32 %v68_v52, 0.0 }
   0xb   :  { %1131 = vmatprep.subr.mxu1 %v740_v28  ;;  %971 = vmatpush1.msra.mxu0 %v515_v32  ;;  %v719_v55 = vmax.f32 %v299_v45, 0.0  ;;  %v67_v56 = vld [vmem:[%s5490_s1 + $0x1c0] sm:$0xff]  ;;  %v718_v59 = vmax.f32 %v298_v49, 0.0  ;;  %v61_v60 = vld [vmem:[%s5490_s1 + $0x190] sm:$0xff]  ;;  %v712_v63 = vmax.f32 %v292_v53, 0.0  ;;  %v60_v0 = vld [vmem:[%s5490_s1 + $0x188] sm:$0xff] }
   0xc   :  { %1132 = vmatpush1.msra.mxu1 %v739_v33  ;;  %972 = vmatprep.subr.mxu0 %v509_v37  ;;  %v291_v57 = vld [vmem:[%s5490_s1 + $0x8c0] sm:$0xff]  ;;  %v285_v61 = vld [vmem:[%s5490_s1 + $0x890] sm:$0xff]  ;;  %v284_v1 = vld [vmem:[%s5490_s1 + $0x888] sm:$0xff]  ;;  %v487_v2 = vmax.f32 %v67_v56, 0.0  ;;  %v481_v6 = vmax.f32 %v61_v60, 0.0  ;;  %v480_v10 = vmax.f32 %v60_v0, 0.0 }
   0xd   :  { %1133 = vmatprep.subr.mxu1 %v733_v38  ;;  %973 = vmatpush1.msra.mxu0 %v508_v42  ;;  %v711_v3 = vmax.f32 %v291_v57, 0.0  ;;  %v54_v4 = vld [vmem:[%s5490_s1 + $0x158] sm:$0xff]  ;;  %v705_v7 = vmax.f32 %v285_v61, 0.0  ;;  %v53_v8 = vld [vmem:[%s5490_s1 + $0x150] sm:$0xff]  ;;  %v704_v11 = vmax.f32 %v284_v1, 0.0  ;;  %v47_v12 = vld [vmem:[%s5490_s1 + $0x120] sm:$0xff] }
   0xe   :  { %1134 = vmatpush1.msra.mxu1 %v732_v43  ;;  %974 = vmatprep.subr.mxu0 %v502_v46  ;;  %v278_v5 = vld [vmem:[%s5490_s1 + $0x858] sm:$0xff]  ;;  %v277_v9 = vld [vmem:[%s5490_s1 + $0x850] sm:$0xff]  ;;  %v271_v13 = vld [vmem:[%s5490_s1 + $0x820] sm:$0xff]  ;;  %v474_v14 = vmax.f32 %v54_v4, 0.0  ;;  %v473_v18 = vmax.f32 %v53_v8, 0.0  ;;  %v467_v22 = vmax.f32 %v47_v12, 0.0 }
   0xf   :  { %1135 = vmatprep.subr.mxu1 %v726_v47  ;;  %975 = vmatpush1.msra.mxu0 %v501_v50  ;;  %v698_v15 = vmax.f32 %v278_v5, 0.0  ;;  %v46_v16 = vld [vmem:[%s5490_s1 + $0x118] sm:$0xff]  ;;  %v697_v19 = vmax.f32 %v277_v9, 0.0  ;;  %v40_v20 = vld [vmem:[%s5490_s1 + $0xe8] sm:$0xff]  ;;  %v691_v23 = vmax.f32 %v271_v13, 0.0  ;;  %v39_v24 = vld [vmem:[%s5490_s1 + $0xe0] sm:$0xff] }
  0x10   :  { %1136 = vmatpush1.msra.mxu1 %v725_v51  ;;  %976 = vmatprep.subr.mxu0 %v495_v54  ;;  %v270_v17 = vld [vmem:[%s5490_s1 + $0x818] sm:$0xff]  ;;  %v264_v21 = vld [vmem:[%s5490_s1 + $0x7e8] sm:$0xff]  ;;  %v263_v25 = vld [vmem:[%s5490_s1 + $0x7e0] sm:$0xff]  ;;  %v466_v26 = vmax.f32 %v46_v16, 0.0  ;;  %v460_v30 = vmax.f32 %v40_v20, 0.0  ;;  %v459_v34 = vmax.f32 %v39_v24, 0.0 }
  0x11   :  { %1137 = vmatprep.subr.mxu1 %v719_v55  ;;  %977 = vmatpush1.msra.mxu0 %v494_v58  ;;  %v690_v27 = vmax.f32 %v270_v17, 0.0  ;;  %v33_v28 = vld [vmem:[%s5490_s1 + $0xb0] sm:$0xff]  ;;  %v684_v31 = vmax.f32 %v264_v21, 0.0  ;;  %v32_v32 = vld [vmem:[%s5490_s1 + $0xa8] sm:$0xff]  ;;  %v683_v35 = vmax.f32 %v263_v25, 0.0  ;;  %v26_v36 = vld [vmem:[%s5490_s1 + $0x78] sm:$0xff] }
  0x12   :  { %1138 = vmatpush1.msra.mxu1 %v718_v59  ;;  %978 = vmatprep.subr.mxu0 %v488_v62  ;;  %v257_v29 = vld [vmem:[%s5490_s1 + $0x7b0] sm:$0xff]  ;;  %v256_v33 = vld [vmem:[%s5490_s1 + $0x7a8] sm:$0xff]  ;;  %v250_v37 = vld [vmem:[%s5490_s1 + $0x778] sm:$0xff]  ;;  %v453_v38 = vmax.f32 %v33_v28, 0.0  ;;  %v452_v42 = vmax.f32 %v32_v32, 0.0  ;;  %v446_v46 = vmax.f32 %v26_v36, 0.0 }
  0x13   :  { %1139 = vmatprep.subr.mxu1 %v712_v63  ;;  %979 = vmatpush1.msra.mxu0 %v487_v2  ;;  %v677_v39 = vmax.f32 %v257_v29, 0.0  ;;  %v25_v40 = vld [vmem:[%s5490_s1 + $0x70] sm:$0xff]  ;;  %v676_v43 = vmax.f32 %v256_v33, 0.0  ;;  %v19_v44 = vld [vmem:[%s5490_s1 + $0x40] sm:$0xff]  ;;  %v670_v47 = vmax.f32 %v250_v37, 0.0  ;;  %v18_v48 = vld [vmem:[%s5490_s1 + $0x38] sm:$0xff] }
  0x14   :  { %1140 = vmatpush1.msra.mxu1 %v711_v3  ;;  %980 = vmatprep.subr.mxu0 %v481_v6  ;;  %v249_v41 = vld [vmem:[%s5490_s1 + $0x770] sm:$0xff]  ;;  %v243_v45 = vld [vmem:[%s5490_s1 + $0x740] sm:$0xff]  ;;  %v242_v49 = vld [vmem:[%s5490_s1 + $0x738] sm:$0xff]  ;;  %v445_v50 = vmax.f32 %v25_v40, 0.0  ;;  %v439_v54 = vmax.f32 %v19_v44, 0.0  ;;  %v438_v58 = vmax.f32 %v18_v48, 0.0 }
  0x15   :  { %1141 = vmatprep.subr.mxu1 %v705_v7  ;;  %981 = vmatpush1.msra.mxu0 %v480_v10  ;;  %v669_v51 = vmax.f32 %v249_v41, 0.0  ;;  %v12_v52 = vld [vmem:[%s5490_s1 + $0x8] sm:$0xff]  ;;  %v663_v55 = vmax.f32 %v243_v45, 0.0  ;;  %v11_v56 = vld [vmem:[%s5490_s1] sm:$0xff]  ;;  %v662_v59 = vmax.f32 %v242_v49, 0.0  ;;  %v229_v60 = vld [vmem:[%s5490_s1 + $0x6d0] sm:$0xff] }
  0x16   :  { %1142 = vmatpush1.msra.mxu1 %v704_v11  ;;  %982 = vmatprep.subr.mxu0 %v474_v14  ;;  %v236_v53 = vld [vmem:[%s5490_s1 + $0x708] sm:$0xff]  ;;  %v235_v57 = vld [vmem:[%s5490_s1 + $0x700] sm:$0xff]  ;;  %v425_v61 = vld [vmem:[%s5490_s1 + $0xcf0] sm:$0xff]  ;;  %v432_v62 = vmax.f32 %v12_v52, 0.0  ;;  %v431_v2 = vmax.f32 %v11_v56, 0.0  ;;  %v649_v6 = vmax.f32 %v229_v60, 0.0 }
  0x17   :  { %1143 = vmatprep.subr.mxu1 %v698_v15  ;;  %983 = vmatpush1.msra.mxu0 %v473_v18  ;;  %v656_v63 = vmax.f32 %v236_v53, 0.0  ;;  %v228_v0 = vld [vmem:[%s5490_s1 + $0x6c8] sm:$0xff]  ;;  %v655_v3 = vmax.f32 %v235_v57, 0.0  ;;  %v222_v4 = vld [vmem:[%s5490_s1 + $0x698] sm:$0xff]  ;;  %v845_v7 = vmax.f32 %v425_v61, 0.0  ;;  %v221_v8 = vld [vmem:[%s5490_s1 + $0x690] sm:$0xff] }
  0x18   :  { %1144 = vmatpush1.msra.mxu1 %v697_v19  ;;  %984 = vmatprep.subr.mxu0 %v467_v22  ;;  %v424_v1 = vld [vmem:[%s5490_s1 + $0xce8] sm:$0xff]  ;;  %v418_v5 = vld [vmem:[%s5490_s1 + $0xcb8] sm:$0xff]  ;;  %v417_v9 = vld [vmem:[%s5490_s1 + $0xcb0] sm:$0xff]  ;;  %v648_v10 = vmax.f32 %v228_v0, 0.0  ;;  %v642_v14 = vmax.f32 %v222_v4, 0.0  ;;  %v641_v18 = vmax.f32 %v221_v8, 0.0 }
  0x19   :  { %1145 = vmatprep.subr.mxu1 %v691_v23  ;;  %985 = vmatpush1.msra.mxu0 %v466_v26  ;;  %v844_v11 = vmax.f32 %v424_v1, 0.0  ;;  %v215_v12 = vld [vmem:[%s5490_s1 + $0x660] sm:$0xff]  ;;  %v838_v15 = vmax.f32 %v418_v5, 0.0  ;;  %v214_v16 = vld [vmem:[%s5490_s1 + $0x658] sm:$0xff]  ;;  %v837_v19 = vmax.f32 %v417_v9, 0.0  ;;  %v208_v20 = vld [vmem:[%s5490_s1 + $0x628] sm:$0xff] }
  0x1a   :  { %1146 = vmatpush1.msra.mxu1 %v690_v27  ;;  %986 = vmatprep.subr.mxu0 %v460_v30  ;;  %v411_v13 = vld [vmem:[%s5490_s1 + $0xc80] sm:$0xff]  ;;  %v410_v17 = vld [vmem:[%s5490_s1 + $0xc78] sm:$0xff]  ;;  %v404_v21 = vld [vmem:[%s5490_s1 + $0xc48] sm:$0xff]  ;;  %v635_v22 = vmax.f32 %v215_v12, 0.0  ;;  %v634_v26 = vmax.f32 %v214_v16, 0.0  ;;  %v628_v30 = vmax.f32 %v208_v20, 0.0 }
  0x1b   :  { %1147 = vmatprep.subr.mxu1 %v684_v31  ;;  %987 = vmatpush1.msra.mxu0 %v459_v34  ;;  %v831_v23 = vmax.f32 %v411_v13, 0.0  ;;  %v207_v24 = vld [vmem:[%s5490_s1 + $0x620] sm:$0xff]  ;;  %v830_v27 = vmax.f32 %v410_v17, 0.0  ;;  %v201_v28 = vld [vmem:[%s5490_s1 + $0x5f0] sm:$0xff]  ;;  %v824_v31 = vmax.f32 %v404_v21, 0.0  ;;  %v200_v32 = vld [vmem:[%s5490_s1 + $0x5e8] sm:$0xff] }
  0x1c   :  { %1148 = vmatpush1.msra.mxu1 %v683_v35  ;;  %988 = vmatprep.subr.mxu0 %v453_v38  ;;  %v403_v25 = vld [vmem:[%s5490_s1 + $0xc40] sm:$0xff]  ;;  %v397_v29 = vld [vmem:[%s5490_s1 + $0xc10] sm:$0xff]  ;;  %v396_v33 = vld [vmem:[%s5490_s1 + $0xc08] sm:$0xff]  ;;  %v627_v34 = vmax.f32 %v207_v24, 0.0  ;;  %v621_v38 = vmax.f32 %v201_v28, 0.0 }
  0x1d   :  { %1149 = vmatprep.subr.mxu1 %v677_v39  ;;  %989 = vmatpush1.msra.mxu0 %v452_v42  ;;  %v823_v35 = vmax.f32 %v403_v25, 0.0  ;;  %v194_v36 = vld [vmem:[%s5490_s1 + $0x5b8] sm:$0xff]  ;;  %v817_v39 = vmax.f32 %v397_v29, 0.0  ;;  %v193_v40 = vld [vmem:[%s5490_s1 + $0x5b0] sm:$0xff]  ;;  %v620_v42 = vmax.f32 %v200_v32, 0.0  ;;  %v187_v44 = vld [vmem:[%s5490_s1 + $0x580] sm:$0xff] }
  0x1e   :  { %1150 = vmatpush1.msra.mxu1 %v676_v43  ;;  %990 = vmatprep.subr.mxu0 %v446_v46  ;;  %v390_v37 = vld [vmem:[%s5490_s1 + $0xbd8] sm:$0xff]  ;;  %v389_v41 = vld [vmem:[%s5490_s1 + $0xbd0] sm:$0xff]  ;;  %v816_v43 = vmax.f32 %v396_v33, 0.0  ;;  %v383_v45 = vld [vmem:[%s5490_s1 + $0xba0] sm:$0xff]  ;;  %v614_v46 = vmax.f32 %v194_v36, 0.0 }
  0x1f   :  { %1151 = vmatprep.subr.mxu1 %v670_v47  ;;  %991 = vmatpush1.msra.mxu0 %v445_v50  ;;  %v810_v47 = vmax.f32 %v390_v37, 0.0  ;;  %v186_v48 = vld [vmem:[%s5490_s1 + $0x578] sm:$0xff]  ;;  %v613_v50 = vmax.f32 %v193_v40, 0.0  ;;  %v180_v52 = vld [vmem:[%s5490_s1 + $0x548] sm:$0xff]  ;;  %v179_v56 = vld [vmem:[%s5490_s1 + $0x540] sm:$0xff] }
  0x20   :  { %1152 = vmatpush1.msra.mxu1 %v669_v51  ;;  %992 = vmatprep.subr.mxu0 %v439_v54  ;;  %v382_v49 = vld [vmem:[%s5490_s1 + $0xb98] sm:$0xff]  ;;  %v809_v51 = vmax.f32 %v389_v41, 0.0  ;;  %v376_v53 = vld [vmem:[%s5490_s1 + $0xb68] sm:$0xff]  ;;  %v607_v54 = vmax.f32 %v187_v44, 0.0  ;;  %v375_v57 = vld [vmem:[%s5490_s1 + $0xb60] sm:$0xff] }
  0x21   :  { %1153 = vmatprep.subr.mxu1 %v663_v55  ;;  %993 = vmatpush1.msra.mxu0 %v438_v58  ;;  %v803_v55 = vmax.f32 %v383_v45, 0.0  ;;  %v606_v58 = vmax.f32 %v186_v48, 0.0  ;;  %v173_v60 = vld [vmem:[%s5490_s1 + $0x510] sm:$0xff]  ;;  %v172_v0 = vld [vmem:[%s5490_s1 + $0x508] sm:$0xff]  ;;  %v166_v4 = vld [vmem:[%s5490_s1 + $0x4d8] sm:$0xff] }
  0x22   :  { %1154 = vmatpush1.msra.mxu1 %v662_v59  ;;  %994 = vmatprep.subr.mxu0 %v432_v62  ;;  %v802_v59 = vmax.f32 %v382_v49, 0.0  ;;  %v369_v61 = vld [vmem:[%s5490_s1 + $0xb30] sm:$0xff]  ;;  %v600_v62 = vmax.f32 %v180_v52, 0.0  ;;  %v368_v1 = vld [vmem:[%s5490_s1 + $0xb28] sm:$0xff]  ;;  %v362_v5 = vld [vmem:[%s5490_s1 + $0xaf8] sm:$0xff] }
  0x23   :  { %1155 = vmatprep.subr.mxu1 %v656_v63  ;;  %995 = vmatpush1.msra.mxu0 %v431_v2  ;;  %v796_v63 = vmax.f32 %v376_v53, 0.0  ;;  %v599_v2 = vmax.f32 %v179_v56, 0.0  ;;  %v165_v8 = vld [vmem:[%s5490_s1 + $0x4d0] sm:$0xff]  ;;  %v159_v12 = vld [vmem:[%s5490_s1 + $0x4a0] sm:$0xff]  ;;  %v158_v16 = vld [vmem:[%s5490_s1 + $0x498] sm:$0xff] }
  0x24   :  { %1156 = vmatpush1.msra.mxu1 %v655_v3  ;;  %996 = vmatprep.subr.mxu0 %v649_v6  ;;  %v795_v3 = vmax.f32 %v375_v57, 0.0  ;;  %v593_v6 = vmax.f32 %v173_v60, 0.0  ;;  %v361_v9 = vld [vmem:[%s5490_s1 + $0xaf0] sm:$0xff]  ;;  %v355_v13 = vld [vmem:[%s5490_s1 + $0xac0] sm:$0xff]  ;;  %v354_v17 = vld [vmem:[%s5490_s1 + $0xab8] sm:$0xff] }
  0x25   :  { %1165 = vmatprep.subr.mxu1 %v845_v7  ;;  %997 = vmatpush2.msra.mxu0 %v648_v10  ;;  %v789_v7 = vmax.f32 %v369_v61, 0.0  ;;  %v592_v10 = vmax.f32 %v172_v0, 0.0  ;;  %v152_v20 = vld [vmem:[%s5490_s1 + $0x468] sm:$0xff]  ;;  %v151_v24 = vld [vmem:[%s5490_s1 + $0x460] sm:$0xff]  ;;  %v145_v28 = vld [vmem:[%s5490_s1 + $0x430] sm:$0xff] }
  0x26   :  { %1166 = vmatpush2.msra.mxu1 %v844_v11  ;;  %998 = vmatprep.subr.mxu0 %v642_v14  ;;  %v788_v11 = vmax.f32 %v368_v1, 0.0  ;;  %v586_v14 = vmax.f32 %v166_v4, 0.0  ;;  %v348_v21 = vld [vmem:[%s5490_s1 + $0xa88] sm:$0xff]  ;;  %v347_v25 = vld [vmem:[%s5490_s1 + $0xa80] sm:$0xff]  ;;  %v572_v29 = vmax.f32 %v152_v20, 0.0  ;;  %v571_v32 = vmax.f32 %v151_v24, 0.0 }
  0x27   :  { %1167 = vmatprep.subr.mxu1 %v838_v15  ;;  %999 = vmatpush2.msra.mxu0 %v641_v18  ;;  %v782_v15 = vmax.f32 %v362_v5, 0.0  ;;  %v585_v18 = vmax.f32 %v165_v8, 0.0  ;;  %v767_v33 = vmax.f32 %v347_v25, 0.0  ;;  %v565_v36 = vmax.f32 %v145_v28, 0.0  ;;  %v138_v37 = vld [vmem:[%s5490_s1 + $0x3f8] sm:$0xff]  ;;  %v137_v41 = vld [vmem:[%s5490_s1 + $0x3f0] sm:$0xff] }
  0x28   :  { %1168 = vmatpush2.msra.mxu1 %v837_v19  ;;  %1000 = vmatprep.subr.mxu0 %v635_v22  ;;  %v781_v19 = vmax.f32 %v361_v9, 0.0  ;;  %v579_v22 = vmax.f32 %v159_v12, 0.0  ;;  %v111_v45 = vld [vmem:[%s5490_s1 + $0x320] sm:$0xff]  ;;  %v105_v49 = vld [vmem:[%s5490_s1 + $0x2f0] sm:$0xff]  ;;  %v104_v52 = vld [vmem:[%s5490_s1 + $0x2e8] sm:$0xff] }
  0x29   :  { %1169 = vmatprep.subr.mxu1 %v831_v23  ;;  %1001 = vmatpush2.msra.mxu0 %v634_v26  ;;  %v775_v23 = vmax.f32 %v355_v13, 0.0  ;;  %v578_v26 = vmax.f32 %v158_v16, 0.0  ;;  %v858_v53 = vld [vmem:[%s5491_s0 + $0x38] sm:$0xff]  ;;  %v124_v56 = vld [vmem:[%s5490_s1 + $0x388] sm:$0xff]  ;;  %v857_v60 = vld [vmem:[%s5491_s0 + $0x30] sm:$0xff] }
  0x2a   :  { %1170 = vmatpush2.msra.mxu1 %v830_v27  ;;  %1002 = vmatprep.subr.mxu0 %v628_v30  ;;  %v774_v27 = vmax.f32 %v354_v17, 0.0  ;;  %v768_v30 = vmax.f32 %v348_v21, 0.0  ;;  %v98_v57 = vld [vmem:[%s5490_s1 + $0x2b8] sm:$0xff]  ;;  %v544_v0 = vmax.f32 %v124_v56, 0.0  ;;  %v343_v4 = vld [vmem:[%s5490_s1 + $0xa60] sm:$0xff]  ;;  %v3047_v5 = vld [vmem:[%s5491_s0 + $0x8] sm:$0xff] }
  0x2b   :  { %1171 = vmatprep.subr.mxu1 %v824_v31  ;;  %1003 = vmatpush2.msra.mxu0 %v627_v34  ;;  %v119_v31 = vld [vmem:[%s5490_s1 + $0x360] sm:$0xff]  ;;  %v144_v34 = vld [vmem:[%s5490_s1 + $0x428] sm:$0xff]  ;;  %v518_v1 = vmax.f32 %v98_v57, 0.0  ;;  %v342_v8 = vld [vmem:[%s5490_s1 + $0xa58] sm:$0xff] }
  0x2c   :  { %1172 = vmatpush2.msra.mxu1 %v823_v35  ;;  %1004 = vmatprep.subr.mxu0 %v621_v38  ;;  %v118_v35 = vld [vmem:[%s5490_s1 + $0x358] sm:$0xff]  ;;  %v112_v38 = vld [vmem:[%s5490_s1 + $0x328] sm:$0xff]  ;;  %v539_v40 = vmax.f32 %v119_v31, 0.0  ;;  %v861_v12 = vld [vmem:[%s5491_s0 + $0x50] sm:$0xff]  ;;  %v762_v17 = vmax.f32 %v342_v8, 0.0 }
  0x2d   :  { %1173 = vmatprep.subr.mxu1 %v817_v39  ;;  %1005 = vmatpush2.msra.mxu0 %v620_v42  ;;  %v854_v39 = vld [vmem:[%s5491_s0 + $0x18] sm:$0xff]  ;;  %v853_v42 = vld [vmem:[%s5491_s0 + $0x10] sm:$0xff]  ;;  %v538_v44 = vmax.f32 %v118_v35, 0.0  ;;  %v532_v48 = vmax.f32 %v112_v38, 0.0  ;;  %v3084_v21 = vld [vmem:[%s5491_s0 + $0x28] sm:$0xff] }
  0x2e   :  { %1174 = vmatpush2.msra.mxu1 %v816_v43  ;;  %1006 = vmatprep.subr.mxu0 %v614_v46  ;;  %v564_v43 = vmax.f32 %v144_v34, 0.0  ;;  %v131_v46 = vld [vmem:[%s5490_s1 + $0x3c0] sm:$0xff]  ;;  %v862_v9 = vld [vmem:[%s5491_s0 + $0x58] sm:$0xff]  ;;  %v77_v20 = vld [vmem:[%s5490_s1 + $0x210] sm:$0xff] }
  0x2f   :  { %1175 = vmatprep.subr.mxu1 %v810_v47  ;;  %1007 = vmatpush2.msra.mxu0 %v613_v50  ;;  %v558_v47 = vmax.f32 %v138_v37, 0.0  ;;  %v557_v50 = vmax.f32 %v137_v41, 0.0  ;;  %v76_v24 = vld [vmem:[%s5490_s1 + $0x208] sm:$0xff]  ;;  %v866_v25 = vld [vmem:[%s5491_s0 + $0x78] sm:$0xff]  ;;  %v69_v35 = vld [vmem:[%s5490_s1 + $0x1d0] sm:$0xff] }
  0x30   :  { %1176 = vmatpush2.msra.mxu1 %v809_v51  ;;  %1008 = vmatprep.subr.mxu0 %v607_v54  ;;  %v130_v51 = vld [vmem:[%s5490_s1 + $0x3b8] sm:$0xff]  ;;  %v531_v54 = vmax.f32 %v111_v45, 0.0  ;;  %v328_v31 = vld [vmem:[%s5490_s1 + $0x9e8] sm:$0xff]  ;;  %v496_v34 = vmax.f32 %v76_v24, 0.0  ;;  %v293_v24 = vld [vmem:[%s5490_s1 + $0x8d0] sm:$0xff] }
  0x31   :  { %1177 = vmatprep.subr.mxu1 %v803_v55  ;;  %1009 = vmatpush2.msra.mxu0 %v606_v58  ;;  %v551_v55 = vmax.f32 %v131_v46, 0.0  ;;  %v525_v58 = vmax.f32 %v105_v49, 0.0  ;;  %v550_v61 = vmax.f32 %v130_v51, 0.0  ;;  %v70_v28 = vld [vmem:[%s5490_s1 + $0x1d8] sm:$0xff]  ;;  %v3127_v41 = vld [vmem:[%s5491_s0 + $0x48] sm:$0xff]  ;;  %v3147_v49 = vld [vmem:[%s5491_s0 + $0x40] sm:$0xff] }
  0x32   :  { %1178 = vmatpush2.msra.mxu1 %v802_v59  ;;  %1010 = vmatprep.subr.mxu0 %v600_v62  ;;  %v123_v59 = vld [vmem:[%s5490_s1 + $0x380] sm:$0xff]  ;;  %v524_v62 = vmax.f32 %v104_v52, 0.0  ;;  %v490_v37 = vmax.f32 %v70_v28, 0.0  ;;  %v322_v38 = vld [vmem:[%s5490_s1 + $0x9b8] sm:$0xff]  ;;  %v869_v51 = vld [vmem:[%s5491_s0 + $0x90] sm:$0xff] }
  0x33   :  { %1179 = vmatprep.subr.mxu1 %v796_v63  ;;  %1011 = vmatpush2.msra.mxu0 %v599_v2  ;;  %v97_v63 = vld [vmem:[%s5490_s1 + $0x2b0] sm:$0xff]  ;;  %v543_v2 = vmax.f32 %v123_v59, 0.0  ;;  %v870_v45 = vld [vmem:[%s5491_s0 + $0x98] sm:$0xff]  ;;  %v742_v46 = vmax.f32 %v322_v38, 0.0 }
  0x34   :  { %1180 = vmatpush2.msra.mxu1 %v795_v3  ;;  %1012 = vmatprep.subr.mxu0 %v593_v6  ;;  %v91_v3 = vld [vmem:[%s5490_s1 + $0x280] sm:$0xff]  ;;  %v517_v6 = vmax.f32 %v97_v63, 0.0  ;;  %v49_v59 = vld [vmem:[%s5490_s1 + $0x130] sm:$0xff] }
  0x35   :  { %1181 = vmatprep.subr.mxu1 %v789_v7  ;;  %1013 = vmatpush2.msra.mxu0 %v592_v10  ;;  %v90_v7 = vld [vmem:[%s5490_s1 + $0x278] sm:$0xff]  ;;  %v84_v10 = vld [vmem:[%s5490_s1 + $0x248] sm:$0xff]  ;;  %v511_v13 = vmax.f32 %v91_v3, 0.0  ;;  %v301_v3 = vld [vmem:[%s5490_s1 + $0x910] sm:$0xff] }
  0x36   :  { %1182 = vmatpush2.msra.mxu1 %v788_v11  ;;  %1014 = vmatprep.subr.mxu0 %v586_v14  ;;  %v3064_v11 = vld [vmem:[%s5491_s0] sm:$0xff]  ;;  %v763_v14 = vmax.f32 %v343_v4, 0.0  ;;  %v510_v16 = vmax.f32 %v90_v7, 0.0  ;;  %v469_v7 = vmax.f32 %v49_v59, 0.0 }
  0x37   :  { %1183 = vmatprep.subr.mxu1 %v782_v15  ;;  %1015 = vmatpush2.msra.mxu0 %v585_v18  ;;  %v83_v15 = vld [vmem:[%s5490_s1 + $0x240] sm:$0xff]  ;;  %v336_v18 = vld [vmem:[%s5490_s1 + $0xa28] sm:$0xff] }
  0x38   :  { %1184 = vmatpush2.msra.mxu1 %v781_v19  ;;  %1016 = vmatprep.subr.mxu0 %v579_v22  ;;  %v504_v19 = vmax.f32 %v84_v10, 0.0  ;;  %v503_v22 = vmax.f32 %v83_v15, 0.0  ;;  %v3190_v4 = vld [vmem:[%s5491_s0 + $0x60] sm:$0xff]  ;;  %v721_v15 = vmax.f32 %v301_v3, 0.0  ;;  %v266_v3 = vld [vmem:[%s5490_s1 + $0x7f8] sm:$0xff] }
  0x39   :  { %1185 = vmatprep.subr.mxu1 %v775_v23  ;;  %1017 = vmatpush2.msra.mxu0 %v578_v26  ;;  %v335_v23 = vld [vmem:[%s5490_s1 + $0xa20] sm:$0xff]  ;;  %v756_v26 = vmax.f32 %v336_v18, 0.0  ;;  %v294_v18 = vld [vmem:[%s5490_s1 + $0x8d8] sm:$0xff] }
  0x3a   :  { %1186 = vmatpush2.msra.mxu1 %v774_v27  ;;  %1018 = vmatprep.subr.mxu0 %v572_v29  ;;  %v329_v27 = vld [vmem:[%s5490_s1 + $0x9f0] sm:$0xff]  ;;  %v3104_v29 = vld [vmem:[%s5491_s0 + $0x20] sm:$0xff] }
  0x3b   :  { %1187 = vmatprep.subr.mxu1 %v768_v30  ;;  %1019 = vmatpush2.msra.mxu0 %v571_v32  ;;  %v497_v30 = vmax.f32 %v77_v20, 0.0  ;;  %v865_v32 = vld [vmem:[%s5491_s0 + $0x70] sm:$0xff]  ;;  %v231_v59 = vld [vmem:[%s5490_s1 + $0x6e0] sm:$0xff] }
  0x3c   :  { %1188 = vmatpush2.msra.mxu1 %v767_v33  ;;  %2337 = vmatprep.mubr.msk.f32.mxu1 %vm915_vm0, %v854_v39  ;;  %v755_v33 = vmax.f32 %v335_v23, 0.0  ;;  %v748_v39 = vmax.f32 %v328_v31, 0.0  ;;  %v34_v23 = vld [vmem:[%s5490_s1 + $0xb8] sm:$0xff]  ;;  %v27_v31 = vld [vmem:[%s5490_s1 + $0x80] sm:$0xff] }
  0x3d   :  { %1020 = vmatprep.subr.mxu0 %v565_v36  ;;  %1190 = vmatmul.mubr.f32.vlgmr.msra.gmra.mxu1 %v853_v42  ;;  %v749_v36 = vmax.f32 %v329_v27, 0.0  ;;  %v489_v42 = vmax.f32 %v69_v35, 0.0  ;;  %v877_v27 = vld [vmem:[%s5491_s0 + $0xd0] sm:$0xff]  ;;  %v447_v38 = vmax.f32 %v27_v31, 0.0 }
  0x3e   :  { %1286 = vmatprep.subr.mxu1 %v539_v40  ;;  %1021 = vmatpush2.msra.mxu0 %v564_v43  ;;  %v63_v40 = vld [vmem:[%s5490_s1 + $0x1a0] sm:$0xff]  ;;  %v321_v43 = vld [vmem:[%s5490_s1 + $0x9b0] sm:$0xff] }
  0x3f   :  { %1287 = vmatpush1.msra.mxu1 %v538_v44  ;;  %1022 = vmatprep.subr.mxu0 %v558_v47  ;;  %v62_v44 = vld [vmem:[%s5490_s1 + $0x198] sm:$0xff]  ;;  %v56_v47 = vld [vmem:[%s5490_s1 + $0x168] sm:$0xff]  ;;  %v741_v52 = vmax.f32 %v321_v43, 0.0  ;;  %v889_v31 = vld [vmem:[%s5491_s0 + $0x130] sm:$0xff] }
  0x40   :  { %1288 = vmatprep.subr.mxu1 %v532_v48  ;;  %1023 = vmatpush2.msra.mxu0 %v557_v50  ;;  %v315_v48 = vld [vmem:[%s5490_s1 + $0x980] sm:$0xff]  ;;  %v483_v50 = vmax.f32 %v63_v40, 0.0  ;;  %v476_v56 = vmax.f32 %v56_v47, 0.0  ;;  %v20_v40 = vld [vmem:[%s5490_s1 + $0x48] sm:$0xff] }
  0x41   :  { %2338 = vmatprep.mubr.msk.f32.mxu1 %vm915_vm0, %v858_v53  ;;  %1289 = vmatpush1.msra.mxu1 %v531_v54  ;;  %v482_v53 = vmax.f32 %v62_v44, 0.0  ;;  %v55_v54 = vld [vmem:[%s5490_s1 + $0x160] sm:$0xff]  ;;  %v735_v57 = vmax.f32 %v315_v48, 0.0  ;;  %v280_v44 = vld [vmem:[%s5490_s1 + $0x868] sm:$0xff] }
  0x42   :  { %1024 = vmatprep.subr.mxu0 %v551_v55  ;;  %1196 = vmatmul.mubr.f32.gmra.mxu1 %v857_v60  ;;  %v314_v55 = vld [vmem:[%s5490_s1 + $0x978] sm:$0xff]  ;;  %v308_v60 = vld [vmem:[%s5490_s1 + $0x948] sm:$0xff]  ;;  %v279_v48 = vld [vmem:[%s5490_s1 + $0x860] sm:$0xff] }
  0x43   :  { %1290 = vmatprep.subr.mxu1 %v525_v58  ;;  %1025 = vmatpush2.msra.mxu0 %v550_v61  ;;  %v3164_v58 = vld [vmem:[%s5491_s0 + $0x68] sm:$0xff]  ;;  %v874_v61 = vld [vmem:[%s5491_s0 + $0xb8] sm:$0xff]  ;;  %v734_v63 = vmax.f32 %v314_v55, 0.0  ;;  %v728_v8 = vmax.f32 %v308_v60, 0.0 }
  0x44   :  { %1291 = vmatpush1.msra.mxu1 %v524_v62  ;;  %1026 = vmatprep.subr.mxu0 %v544_v0  ;;  %v475_v62 = vmax.f32 %v55_v54, 0.0  ;;  %v48_v0 = vld [vmem:[%s5490_s1 + $0x128] sm:$0xff]  ;;  %v700_v54 = vmax.f32 %v280_v44, 0.0  ;;  %v245_v44 = vld [vmem:[%s5490_s1 + $0x750] sm:$0xff] }
  0x45   :  { %1292 = vmatprep.subr.mxu1 %v518_v1  ;;  %1027 = vmatpush2.msra.mxu0 %v543_v2  ;;  %v307_v1 = vld [vmem:[%s5490_s1 + $0x940] sm:$0xff]  ;;  %v42_v2 = vld [vmem:[%s5490_s1 + $0xf8] sm:$0xff]  ;;  %v3293_v60 = vld [vmem:[%s5491_s0 + $0xc8] sm:$0xff] }
  0x46   :  { %1028 = vmatprep.mubr.f32.mxu0 %v3047_v5  ;;  %2339 = vmatprep.mubr.msk.f32.mxu1 %vm915_vm0, %v862_v9  ;;  %v468_v9 = vmax.f32 %v48_v0, 0.0  ;;  %v727_v10 = vmax.f32 %v307_v1, 0.0  ;;  %v886_v0 = vld [vmem:[%s5491_s0 + $0x118] sm:$0xff] }
  0x47   :  { %1293 = vmatpush1.msra.mxu1 %v517_v6  ;;  %1029 = vmatmul.mubr.f32.vlgmr.msra.gmra.mxu0 %v3064_v11  ;;  %v873_v6 = vld [vmem:[%s5491_s0 + $0xb0] sm:$0xff] }
  0x48   :  { %1202 = vmatmul.mubr.f32.gmra.mxu1 %v861_v12  ;;  %1294 = vmatprep.subr.mxu1 %v511_v13  ;;  %v41_v12 = vld [vmem:[%s5490_s1 + $0xf0] sm:$0xff]  ;;  %v300_v13 = vld [vmem:[%s5490_s1 + $0x908] sm:$0xff] }
  0x49   :  { %1447 = vmatprep.subr.mxu0 %v763_v14  ;;  %1295 = vmatpush1.msra.mxu1 %v510_v16  ;;  %v462_v14 = vmax.f32 %v42_v2, 0.0  ;;  %v3207_v16 = vld [vmem:[%s5491_s0 + $0x88] sm:$0xff]  ;;  %v461_v20 = vmax.f32 %v41_v12, 0.0  ;;  %v223_v12 = vld [vmem:[%s5490_s1 + $0x6a0] sm:$0xff] }
  0x4a   :  { %1448 = vmatpush1.msra.mxu0 %v762_v17  ;;  %1296 = vmatprep.subr.mxu1 %v504_v19  ;;  %v35_v17 = vld [vmem:[%s5490_s1 + $0xc0] sm:$0xff]  ;;  %v878_v19 = vld [vmem:[%s5491_s0 + $0xd8] sm:$0xff]  ;;  %v224_v2 = vld [vmem:[%s5490_s1 + $0x6a8] sm:$0xff] }
  0x4b   :  { %1034 = vmatprep.mubr.f32.mxu0 %v3084_v21  ;;  %2340 = vmatprep.mubr.msk.f32.mxu1 %vm915_vm0, %v866_v25  ;;  %v28_v25 = vld [vmem:[%s5490_s1 + $0x88] sm:$0xff]  ;;  %v455_v28 = vmax.f32 %v35_v17, 0.0 }
  0x4c   :  { %1297 = vmatpush1.msra.mxu1 %v503_v22  ;;  %1449 = vmatprep.subr.mxu0 %v756_v26  ;;  %v720_v22 = vmax.f32 %v300_v13, 0.0  ;;  %v3230_v26 = vld [vmem:[%s5491_s0 + $0x80] sm:$0xff]  ;;  %v448_v35 = vmax.f32 %v28_v25, 0.0  ;;  %v265_v13 = vld [vmem:[%s5490_s1 + $0x7f0] sm:$0xff]  ;;  %v3330_v17 = vld [vmem:[%s5491_s0 + $0xe8] sm:$0xff] }
  0x4d   :  { %1035 = vmatmul.mubr.f32.gmra.mxu0 %v3104_v29  ;;  %1208 = vmatmul.mubr.f32.gmra.mxu1 %v865_v32  ;;  %v454_v32 = vmax.f32 %v34_v23, 0.0  ;;  %v685_v23 = vmax.f32 %v265_v13, 0.0  ;;  %v258_v25 = vld [vmem:[%s5490_s1 + $0x7b8] sm:$0xff]  ;;  %v3438_v13 = vld [vmem:[%s5491_s0 + $0x120] sm:$0xff] }
  0x4e   :  { %1298 = vmatprep.subr.mxu1 %v497_v30  ;;  %1450 = vmatpush1.msra.mxu0 %v755_v33  ;;  %v714_v30 = vmax.f32 %v294_v18, 0.0  ;;  %v713_v33 = vmax.f32 %v293_v24, 0.0  ;;  %v217_v18 = vld [vmem:[%s5490_s1 + $0x670] sm:$0xff]  ;;  %v216_v24 = vld [vmem:[%s5490_s1 + $0x668] sm:$0xff] }
  0x4f   :  { %1299 = vmatpush1.msra.mxu1 %v496_v34  ;;  %1451 = vmatprep.subr.mxu0 %v749_v36  ;;  %v287_v34 = vld [vmem:[%s5490_s1 + $0x8a0] sm:$0xff]  ;;  %v21_v36 = vld [vmem:[%s5490_s1 + $0x50] sm:$0xff] }
  0x50   :  { %1300 = vmatprep.subr.mxu1 %v490_v37  ;;  %1452 = vmatpush1.msra.mxu0 %v748_v39  ;;  %v3250_v37 = vld [vmem:[%s5491_s0 + $0xa8] sm:$0xff]  ;;  %v286_v39 = vld [vmem:[%s5490_s1 + $0x898] sm:$0xff]  ;;  %v707_v43 = vmax.f32 %v287_v34, 0.0  ;;  %v441_v47 = vmax.f32 %v21_v36, 0.0  ;;  %v636_v34 = vmax.f32 %v216_v24, 0.0  ;;  %v209_v36 = vld [vmem:[%s5490_s1 + $0x630] sm:$0xff] }
  0x51   :  { %1040 = vmatprep.mubr.f32.mxu0 %v3127_v41  ;;  %2341 = vmatprep.mubr.msk.f32.mxu1 %vm915_vm0, %v870_v45  ;;  %v14_v45 = vld [vmem:[%s5490_s1 + $0x18] sm:$0xff] }
  0x52   :  { %1301 = vmatpush1.msra.mxu1 %v489_v42  ;;  %1453 = vmatprep.subr.mxu0 %v742_v46  ;;  %v882_v42 = vld [vmem:[%s5491_s0 + $0xf8] sm:$0xff]  ;;  %v3270_v46 = vld [vmem:[%s5491_s0 + $0xa0] sm:$0xff]  ;;  %v434_v55 = vmax.f32 %v14_v45, 0.0 }
  0x53   :  { %1041 = vmatmul.mubr.f32.gmra.mxu0 %v3147_v49  ;;  %1214 = vmatmul.mubr.f32.gmra.mxu1 %v869_v51  ;;  %v706_v51 = vmax.f32 %v286_v39, 0.0  ;;  %v894_v45 = vld [vmem:[%s5491_s0 + $0x158] sm:$0xff] }
  0x54   :  { %1302 = vmatprep.subr.mxu1 %v483_v50  ;;  %1454 = vmatpush1.msra.mxu0 %v741_v52  ;;  %v881_v50 = vld [vmem:[%s5491_s0 + $0xf0] sm:$0xff]  ;;  %v440_v52 = vmax.f32 %v20_v40, 0.0 }
  0x55   :  { %1303 = vmatpush1.msra.mxu1 %v482_v53  ;;  %1455 = vmatprep.subr.mxu0 %v735_v57  ;;  %v13_v53 = vld [vmem:[%s5490_s1 + $0x10] sm:$0xff]  ;;  %v699_v57 = vmax.f32 %v279_v48, 0.0 }
  0x56   :  { %1304 = vmatprep.subr.mxu1 %v476_v56  ;;  %1046 = vmatprep.mubr.f32.mxu0 %v3164_v58  ;;  %v273_v56 = vld [vmem:[%s5490_s1 + $0x830] sm:$0xff] }
  0x57   :  { %2342 = vmatprep.mubr.msk.f32.mxu1 %vm915_vm0, %v874_v61  ;;  %1305 = vmatpush1.msra.mxu1 %v475_v62  ;;  %v433_v61 = vmax.f32 %v13_v53, 0.0  ;;  %v272_v62 = vld [vmem:[%s5490_s1 + $0x828] sm:$0xff]  ;;  %v693_v1 = vmax.f32 %v273_v56, 0.0  ;;  %v3396_v53 = vld [vmem:[%s5491_s0 + $0x100] sm:$0xff]  ;;  %v665_v56 = vmax.f32 %v245_v44, 0.0  ;;  %v3493_v44 = vld [vmem:[%s5491_s0 + $0x190] sm:$0xff] }
  0x58   :  { %1456 = vmatpush1.msra.mxu0 %v734_v63  ;;  %1220 = vmatmul.mubr.f32.gmra.mxu1 %v873_v6  ;;  %v230_v63 = vld [vmem:[%s5490_s1 + $0x6d8] sm:$0xff]  ;;  %v3313_v6 = vld [vmem:[%s5491_s0 + $0xc0] sm:$0xff] }
  0x59   :  { %1047 = vmatmul.mubr.f32.gmra.mxu0 %v3190_v4  ;;  %1306 = vmatprep.subr.mxu1 %v469_v7  ;;  %v651_v7 = vmax.f32 %v231_v59, 0.0 }
  0x5a   :  { %1457 = vmatprep.subr.mxu0 %v728_v8  ;;  %1307 = vmatpush1.msra.mxu1 %v468_v9  ;;  %v885_v8 = vld [vmem:[%s5491_s0 + $0x110] sm:$0xff]  ;;  %v692_v9 = vmax.f32 %v272_v62, 0.0  ;;  %v238_v62 = vld [vmem:[%s5490_s1 + $0x718] sm:$0xff] }
  0x5b   :  { %1458 = vmatpush1.msra.mxu0 %v727_v10  ;;  %1308 = vmatprep.subr.mxu1 %v462_v14  ;;  %v650_v10 = vmax.f32 %v230_v63, 0.0  ;;  %v644_v14 = vmax.f32 %v224_v2, 0.0 }
  0x5c   :  { %1459 = vmatprep.subr.mxu0 %v721_v15  ;;  %1052 = vmatprep.mubr.f32.mxu0 %v3207_v16  ;;  %v686_v15 = vmax.f32 %v266_v3, 0.0  ;;  %v237_v3 = vld [vmem:[%s5490_s1 + $0x710] sm:$0xff] }
  0x5d   :  { %2343 = vmatprep.mubr.msk.f32.mxu1 %vm915_vm0, %v878_v19  ;;  %1309 = vmatpush1.msra.mxu1 %v461_v20  ;;  %v259_v19 = vld [vmem:[%s5490_s1 + $0x7c0] sm:$0xff]  ;;  %v890_v20 = vld [vmem:[%s5491_s0 + $0x138] sm:$0xff] }
  0x5e   :  { %1460 = vmatpush1.msra.mxu0 %v720_v22  ;;  %1226 = vmatmul.mubr.f32.gmra.mxu1 %v877_v27  ;;  %v643_v22 = vmax.f32 %v223_v12, 0.0  ;;  %v210_v27 = vld [vmem:[%s5490_s1 + $0x638] sm:$0xff] }
  0x5f   :  { %1053 = vmatmul.mubr.f32.gmra.mxu0 %v3230_v26  ;;  %1310 = vmatprep.subr.mxu1 %v455_v28  ;;  %v252_v28 = vld [vmem:[%s5490_s1 + $0x788] sm:$0xff]  ;;  %v630_v39 = vmax.f32 %v210_v27, 0.0  ;;  %v182_v12 = vld [vmem:[%s5490_s1 + $0x558] sm:$0xff] }
  0x60   :  { %1461 = vmatprep.subr.mxu0 %v714_v30  ;;  %1311 = vmatpush1.msra.mxu1 %v454_v32  ;;  %v3356_v30 = vld [vmem:[%s5491_s0 + $0xe0] sm:$0xff]  ;;  %v637_v32 = vmax.f32 %v217_v18, 0.0  ;;  %v672_v40 = vmax.f32 %v252_v28, 0.0  ;;  %v3447_v18 = vld [vmem:[%s5491_s0 + $0x170] sm:$0xff]  ;;  %v602_v24 = vmax.f32 %v182_v12, 0.0 }
  0x61   :  { %1462 = vmatpush1.msra.mxu0 %v713_v33  ;;  %1312 = vmatprep.subr.mxu1 %v448_v35  ;;  %v679_v33 = vmax.f32 %v259_v19, 0.0  ;;  %v678_v35 = vmax.f32 %v258_v25, 0.0  ;;  %v657_v19 = vmax.f32 %v237_v3, 0.0  ;;  %v420_v25 = vld [vmem:[%s5490_s1 + $0xcc8] sm:$0xff]  ;;  %v175_v28 = vld [vmem:[%s5490_s1 + $0x520] sm:$0xff] }
  0x62   :  { %1058 = vmatprep.mubr.f32.mxu0 %v3250_v37  ;;  %2344 = vmatprep.mubr.msk.f32.mxu1 %vm915_vm0, %v882_v42  ;;  %v3373_v42 = vld [vmem:[%s5491_s0 + $0x108] sm:$0xff]  ;;  %v3536_v3 = vld [vmem:[%s5491_s0 + $0x160] sm:$0xff] }
  0x63   :  { %1313 = vmatpush1.msra.mxu1 %v447_v38  ;;  %1463 = vmatprep.subr.mxu0 %v707_v43  ;;  %v251_v38 = vld [vmem:[%s5490_s1 + $0x780] sm:$0xff] }
  0x64   :  { %1059 = vmatmul.mubr.f32.gmra.mxu0 %v3270_v46  ;;  %1232 = vmatmul.mubr.f32.gmra.mxu1 %v881_v50  ;;  %v203_v43 = vld [vmem:[%s5490_s1 + $0x600] sm:$0xff]  ;;  %v671_v48 = vmax.f32 %v251_v38, 0.0  ;;  %v202_v50 = vld [vmem:[%s5490_s1 + $0x5f8] sm:$0xff]  ;;  %v168_v38 = vld [vmem:[%s5490_s1 + $0x4e8] sm:$0xff] }
  0x65   :  { %1314 = vmatprep.subr.mxu1 %v441_v47  ;;  %1464 = vmatpush1.msra.mxu0 %v706_v51  ;;  %v629_v47 = vmax.f32 %v209_v36, 0.0  ;;  %v244_v51 = vld [vmem:[%s5490_s1 + $0x748] sm:$0xff]  ;;  %v622_v59 = vmax.f32 %v202_v50, 0.0  ;;  %v840_v36 = vmax.f32 %v420_v25, 0.0 }
  0x66   :  { %1315 = vmatpush1.msra.mxu1 %v440_v52  ;;  %1465 = vmatprep.subr.mxu0 %v700_v54  ;;  %v196_v52 = vld [vmem:[%s5490_s1 + $0x5c8] sm:$0xff]  ;;  %v893_v54 = vld [vmem:[%s5491_s0 + $0x150] sm:$0xff] }
  0x67   :  { %1316 = vmatprep.subr.mxu1 %v434_v55  ;;  %1466 = vmatpush1.msra.mxu0 %v699_v57  ;;  %v623_v55 = vmax.f32 %v203_v43, 0.0  ;;  %v195_v57 = vld [vmem:[%s5490_s1 + $0x5c0] sm:$0xff]  ;;  %v616_v63 = vmax.f32 %v196_v52, 0.0  ;;  %v595_v43 = vmax.f32 %v175_v28, 0.0  ;;  %v412_v50 = vld [vmem:[%s5490_s1 + $0xc88] sm:$0xff] }
  0x68   :  { %1064 = vmatprep.mubr.f32.mxu0 %v3293_v60  ;;  %2345 = vmatprep.mubr.msk.f32.mxu1 %vm915_vm0, %v886_v0  ;;  %v189_v0 = vld [vmem:[%s5490_s1 + $0x590] sm:$0xff]  ;;  %v615_v2 = vmax.f32 %v195_v57, 0.0  ;;  %v3519_v57 = vld [vmem:[%s5491_s0 + $0x1b8] sm:$0xff]  ;;  %v392_v25 = vld [vmem:[%s5490_s1 + $0xbe8] sm:$0xff] }
  0x69   :  { %1317 = vmatpush1.msra.mxu1 %v433_v61  ;;  %1467 = vmatprep.subr.mxu0 %v693_v1  ;;  %v664_v61 = vmax.f32 %v244_v51, 0.0  ;;  %v3416_v1 = vld [vmem:[%s5491_s0 + $0x128] sm:$0xff]  ;;  %v588_v51 = vmax.f32 %v168_v38, 0.0  ;;  %v3582_v38 = vld [vmem:[%s5491_s0 + $0x180] sm:$0xff] }
  0x6a   :  { %1065 = vmatmul.mubr.f32.gmra.mxu0 %v3313_v6  ;;  %1238 = vmatmul.mubr.f32.gmra.mxu1 %v885_v8  ;;  %v3427_v8 = vld [vmem:[%s5491_s0 + $0x178] sm:$0xff] }
  0x6b   :  { %1318 = vmatprep.subr.mxu1 %v651_v7  ;;  %1468 = vmatpush1.msra.mxu0 %v692_v9  ;;  %v188_v7 = vld [vmem:[%s5490_s1 + $0x588] sm:$0xff]  ;;  %v658_v9 = vmax.f32 %v238_v62, 0.0 }
  0x6c   :  { %1319 = vmatpush2.msra.mxu1 %v650_v10  ;;  %1469 = vmatprep.subr.mxu0 %v686_v15  ;;  %v427_v10 = vld [vmem:[%s5490_s1 + $0xd00] sm:$0xff]  ;;  %v426_v15 = vld [vmem:[%s5490_s1 + $0xcf8] sm:$0xff]  ;;  %v160_v62 = vld [vmem:[%s5490_s1 + $0x4a8] sm:$0xff] }
  0x6d   :  { %1320 = vmatprep.subr.mxu1 %v644_v14  ;;  %1070 = vmatprep.mubr.f32.mxu0 %v3330_v17  ;;  %v609_v14 = vmax.f32 %v189_v0, 0.0  ;;  %v846_v27 = vmax.f32 %v426_v15, 0.0  ;;  %v154_v0 = vld [vmem:[%s5490_s1 + $0x478] sm:$0xff]  ;;  %v580_v12 = vmax.f32 %v160_v62, 0.0  ;;  %v153_v15 = vld [vmem:[%s5490_s1 + $0x470] sm:$0xff]  ;;  %v132_v62 = vld [vmem:[%s5490_s1 + $0x3c8] sm:$0xff] }
  0x6e   :  { %2346 = vmatprep.mubr.msk.f32.mxu1 %vm915_vm0, %v890_v20  ;;  %1321 = vmatpush2.msra.mxu1 %v643_v22  ;;  %v608_v20 = vmax.f32 %v188_v7, 0.0  ;;  %v181_v22 = vld [vmem:[%s5490_s1 + $0x550] sm:$0xff]  ;;  %v573_v28 = vmax.f32 %v153_v15, 0.0 }
  0x6f   :  { %1470 = vmatpush1.msra.mxu0 %v685_v23  ;;  %1244 = vmatmul.mubr.f32.gmra.mxu1 %v889_v31  ;;  %v847_v23 = vmax.f32 %v427_v10, 0.0  ;;  %v3465_v31 = vld [vmem:[%s5491_s0 + $0x148] sm:$0xff]  ;;  %v3541_v7 = vld [vmem:[%s5491_s0 + $0x1b0] sm:$0xff] }
  0x70   :  { %1071 = vmatmul.mubr.f32.gmra.mxu0 %v3356_v30  ;;  %1322 = vmatprep.subr.mxu1 %v637_v32  ;;  %v601_v32 = vmax.f32 %v181_v22, 0.0  ;;  %v3637_v15 = vld [vmem:[%s5491_s0 + $0x1f0] sm:$0xff] }
  0x71   :  { %1471 = vmatprep.subr.mxu0 %v679_v33  ;;  %1323 = vmatpush2.msra.mxu1 %v636_v34  ;;  %v419_v33 = vld [vmem:[%s5490_s1 + $0xcc0] sm:$0xff]  ;;  %v174_v34 = vld [vmem:[%s5490_s1 + $0x518] sm:$0xff] }
  0x72   :  { %1472 = vmatpush1.msra.mxu0 %v678_v35  ;;  %1324 = vmatprep.subr.mxu1 %v630_v39  ;;  %v3476_v35 = vld [vmem:[%s5491_s0 + $0x198] sm:$0xff]  ;;  %v413_v39 = vld [vmem:[%s5490_s1 + $0xc90] sm:$0xff] }
  0x73   :  { %1473 = vmatprep.subr.mxu0 %v672_v40  ;;  %1076 = vmatprep.mubr.f32.mxu0 %v3373_v42  ;;  %v3487_v40 = vld [vmem:[%s5491_s0 + $0x140] sm:$0xff]  ;;  %v833_v52 = vmax.f32 %v413_v39, 0.0  ;;  %v3587_v39 = vld [vmem:[%s5491_s0 + $0x1d0] sm:$0xff] }
  0x74   :  { %2347 = vmatprep.mubr.msk.f32.mxu1 %vm915_vm0, %v894_v45  ;;  %1325 = vmatpush2.msra.mxu1 %v629_v47  ;;  %v839_v45 = vmax.f32 %v419_v33, 0.0  ;;  %v594_v47 = vmax.f32 %v174_v34, 0.0  ;;  %v146_v33 = vld [vmem:[%s5490_s1 + $0x438] sm:$0xff]  ;;  %v391_v34 = vld [vmem:[%s5490_s1 + $0xbe0] sm:$0xff] }
  0x75   :  { %1474 = vmatpush1.msra.mxu0 %v671_v48  ;;  %1250 = vmatmul.mubr.f32.gmra.mxu1 %v893_v54  ;;  %v167_v48 = vld [vmem:[%s5490_s1 + $0x4e0] sm:$0xff]  ;;  %v3507_v54 = vld [vmem:[%s5491_s0 + $0x168] sm:$0xff] }
  0x76   :  { %1077 = vmatmul.mubr.f32.gmra.mxu0 %v3396_v53  ;;  %1326 = vmatprep.subr.mxu1 %v623_v55  ;;  %v161_v55 = vld [vmem:[%s5490_s1 + $0x4b0] sm:$0xff] }
  0x77   :  { %1475 = vmatprep.subr.mxu0 %v665_v56  ;;  %1327 = vmatpush2.msra.mxu1 %v622_v59  ;;  %v406_v56 = vld [vmem:[%s5490_s1 + $0xc58] sm:$0xff]  ;;  %v587_v59 = vmax.f32 %v167_v48, 0.0  ;;  %v566_v48 = vmax.f32 %v146_v33, 0.0 }
  0x78   :  { %1476 = vmatpush1.msra.mxu0 %v664_v61  ;;  %1328 = vmatprep.subr.mxu1 %v616_v63  ;;  %v832_v61 = vmax.f32 %v412_v50, 0.0  ;;  %v405_v63 = vld [vmem:[%s5490_s1 + $0xc50] sm:$0xff]  ;;  %v826_v10 = vmax.f32 %v406_v56, 0.0  ;;  %v811_v50 = vmax.f32 %v391_v34, 0.0  ;;  %v3606_v56 = vld [vmem:[%s5491_s0 + $0x1a8] sm:$0xff]  ;;  %v370_v33 = vld [vmem:[%s5490_s1 + $0xb38] sm:$0xff] }
  0x79   :  { %1082 = vmatprep.mubr.f32.mxu0 %v3416_v1  ;;  %2348 = vmatprep.mubr.msk.f32.mxu1 %vm915_vm0, %v3427_v8  ;;  %v3655_v34 = vld [vmem:[%s5491_s0 + $0x1c8] sm:$0xff] }
  0x7a   :  { %1329 = vmatpush2.msra.mxu1 %v615_v2  ;;  %1477 = vmatprep.subr.mxu0 %v658_v9  ;;  %v399_v2 = vld [vmem:[%s5490_s1 + $0xc20] sm:$0xff]  ;;  %v581_v9 = vmax.f32 %v161_v55, 0.0  ;;  %v133_v55 = vld [vmem:[%s5490_s1 + $0x3d0] sm:$0xff] }
  0x7b   :  { %1083 = vmatmul.mubr.f32.gmra.mxu0 %v3438_v13  ;;  %1256 = vmatmul.mubr.f32.gmra.mxu1 %v3447_v18  ;;  %v819_v22 = vmax.f32 %v399_v2, 0.0  ;;  %v378_v2 = vld [vmem:[%s5490_s1 + $0xb78] sm:$0xff] }
  0x7c   :  { %1330 = vmatprep.subr.mxu1 %v609_v14  ;;  %1478 = vmatpush1.msra.mxu0 %v657_v19  ;;  %v825_v14 = vmax.f32 %v405_v63, 0.0  ;;  %v398_v19 = vld [vmem:[%s5490_s1 + $0xc18] sm:$0xff] }
  0x7d   :  { %1331 = vmatpush2.msra.mxu1 %v608_v20  ;;  %1487 = vmatprep.subr.mxu0 %v847_v23  ;;  %v574_v20 = vmax.f32 %v154_v0, 0.0  ;;  %v3557_v23 = vld [vmem:[%s5491_s0 + $0x188] sm:$0xff]  ;;  %v3617_v63 = vld [vmem:[%s5491_s0 + $0x1f8] sm:$0xff] }
  0x7e   :  { %1332 = vmatprep.subr.mxu1 %v602_v24  ;;  %1488 = vmatpush2.msra.mxu0 %v846_v27  ;;  %v147_v24 = vld [vmem:[%s5490_s1 + $0x440] sm:$0xff]  ;;  %v3568_v27 = vld [vmem:[%s5491_s0 + $0x1d8] sm:$0xff] }
  0x7f   :  { %1088 = vmatprep.mubr.f32.mxu0 %v3465_v31  ;;  %2349 = vmatprep.mubr.msk.f32.mxu1 %vm915_vm0, %v3476_v35 }
  0x80   :  { %1333 = vmatpush2.msra.mxu1 %v601_v32  ;;  %1489 = vmatprep.subr.mxu0 %v840_v36  ;;  %v818_v32 = vmax.f32 %v398_v19, 0.0  ;;  %v140_v36 = vld [vmem:[%s5490_s1 + $0x408] sm:$0xff] }
  0x81   :  { %1089 = vmatmul.mubr.f32.gmra.mxu0 %v3487_v40  ;;  %1262 = vmatmul.mubr.f32.gmra.mxu1 %v3493_v44 }
  0x82   :  { %1334 = vmatprep.subr.mxu1 %v595_v43  ;;  %1490 = vmatpush2.msra.mxu0 %v839_v45  ;;  %v567_v43 = vmax.f32 %v147_v24, 0.0  ;;  %v812_v45 = vmax.f32 %v392_v25, 0.0  ;;  %v798_v24 = vmax.f32 %v378_v2, 0.0 }
  0x83   :  { %1335 = vmatpush2.msra.mxu1 %v594_v47  ;;  %1491 = vmatprep.subr.mxu0 %v833_v52  ;;  %v139_v47 = vld [vmem:[%s5490_s1 + $0x400] sm:$0xff]  ;;  %v560_v52 = vmax.f32 %v140_v36, 0.0 }
  0x84   :  { %1336 = vmatprep.subr.mxu1 %v588_v51  ;;  %1094 = vmatprep.mubr.f32.mxu0 %v3507_v54  ;;  %v385_v51 = vld [vmem:[%s5490_s1 + $0xbb0] sm:$0xff] }
  0x85   :  { %2350 = vmatprep.mubr.msk.f32.mxu1 %vm915_vm0, %v3519_v57  ;;  %1337 = vmatpush2.msra.mxu1 %v587_v59  ;;  %v559_v59 = vmax.f32 %v139_v47, 0.0  ;;  %v805_v0 = vmax.f32 %v385_v51, 0.0  ;;  %v790_v51 = vmax.f32 %v370_v33, 0.0  ;;  %v349_v33 = vld [vmem:[%s5490_s1 + $0xa90] sm:$0xff] }
  0x86   :  { %1492 = vmatpush2.msra.mxu0 %v832_v61  ;;  %1268 = vmatmul.mubr.f32.gmra.mxu1 %v3541_v7  ;;  %v384_v61 = vld [vmem:[%s5490_s1 + $0xba8] sm:$0xff] }
  0x87   :  { %1095 = vmatmul.mubr.f32.gmra.mxu0 %v3536_v3  ;;  %1338 = vmatprep.subr.mxu1 %v581_v9  ;;  %v126_v9 = vld [vmem:[%s5490_s1 + $0x398] sm:$0xff]  ;;  %v804_v19 = vmax.f32 %v384_v61, 0.0  ;;  %v363_v61 = vld [vmem:[%s5490_s1 + $0xb00] sm:$0xff] }
  0x88   :  { %1493 = vmatprep.subr.mxu0 %v826_v10  ;;  %1339 = vmatpush2.msra.mxu1 %v580_v12  ;;  %v3628_v10 = vld [vmem:[%s5491_s0 + $0x1a0] sm:$0xff]  ;;  %v553_v12 = vmax.f32 %v133_v55, 0.0  ;;  %v546_v25 = vmax.f32 %v126_v9, 0.0  ;;  %v3686_v9 = vld [vmem:[%s5491_s0 + $0x1e8] sm:$0xff] }
  0x89   :  { %1494 = vmatpush2.msra.mxu0 %v825_v14  ;;  %1340 = vmatprep.subr.mxu1 %v574_v20  ;;  %v377_v14 = vld [vmem:[%s5490_s1 + $0xb70] sm:$0xff]  ;;  %v552_v20 = vmax.f32 %v132_v62, 0.0 }
  0x8a   :  { %1495 = vmatprep.subr.mxu0 %v819_v22  ;;  %1100 = vmatprep.mubr.f32.mxu0 %v3557_v23  ;;  %v125_v22 = vld [vmem:[%s5490_s1 + $0x390] sm:$0xff] }
  0x8b   :  { %2351 = vmatprep.mubr.msk.f32.mxu1 %vm915_vm0, %v3568_v27  ;;  %1341 = vmatpush2.msra.mxu1 %v573_v28  ;;  %v371_v28 = vld [vmem:[%s5490_s1 + $0xb40] sm:$0xff]  ;;  %v545_v36 = vmax.f32 %v125_v22, 0.0  ;;  %v113_v62 = vld [vmem:[%s5490_s1 + $0x330] sm:$0xff]  ;;  %v106_v22 = vld [vmem:[%s5490_s1 + $0x2f8] sm:$0xff] }
  0x8c   :  { %1496 = vmatpush2.msra.mxu0 %v818_v32  ;;  %1274 = vmatmul.mubr.f32.gmra.mxu1 %v3587_v39  ;;  %v797_v32 = vmax.f32 %v377_v14, 0.0  ;;  %v791_v47 = vmax.f32 %v371_v28, 0.0  ;;  %v107_v14 = vld [vmem:[%s5490_s1 + $0x300] sm:$0xff] }
  0x8d   :  { %1101 = vmatmul.mubr.f32.gmra.mxu0 %v3582_v38  ;;  %1342 = vmatprep.subr.mxu1 %v567_v43  ;;  %v121_v43 = vld [vmem:[%s5490_s1 + $0x370] sm:$0xff] }
  0x8e   :  { %1497 = vmatprep.subr.mxu0 %v812_v45  ;;  %1343 = vmatpush2.msra.mxu1 %v566_v48  ;;  %v364_v45 = vld [vmem:[%s5490_s1 + $0xb08] sm:$0xff]  ;;  %v541_v55 = vmax.f32 %v121_v43, 0.0  ;;  %v526_v43 = vmax.f32 %v106_v22, 0.0  ;;  %v3758_v22 = vld [vmem:[%s5491_s0 + $0x10] sm:$0xff] }
  0x8f   :  { %1498 = vmatpush2.msra.mxu0 %v811_v50  ;;  %1344 = vmatprep.subr.mxu1 %v560_v52  ;;  %v120_v48 = vld [vmem:[%s5490_s1 + $0x368] sm:$0xff]  ;;  %v3669_v50 = vld [vmem:[%s5491_s0 + $0x1c0] sm:$0xff]  ;;  %v114_v52 = vld [vmem:[%s5490_s1 + $0x338] sm:$0xff] }
  0x90   :  { %1106 = vmatprep.mubr.f32.mxu0 %v3606_v56  ;;  %2352 = vmatprep.mubr.msk.f32.mxu1 %vm915_vm0, %v3617_v63  ;;  %v534_v2 = vmax.f32 %v114_v52, 0.0  ;;  %v93_v52 = vld [vmem:[%s5490_s1 + $0x290] sm:$0xff] }
  0x91   :  { %1345 = vmatpush2.msra.mxu1 %v559_v59  ;;  %1499 = vmatprep.subr.mxu0 %v805_v0  ;;  %v784_v59 = vmax.f32 %v364_v45, 0.0  ;;  %v540_v0 = vmax.f32 %v120_v48, 0.0  ;;  %v99_v45 = vld [vmem:[%s5490_s1 + $0x2c0] sm:$0xff] }
  0x92   :  { %1107 = vmatmul.mubr.f32.gmra.mxu0 %v3628_v10  ;;  %1280 = vmatmul.mubr.f32.gmra.mxu1 %v3637_v15 }
  0x93   :  { %1346 = vmatprep.subr.mxu1 %v553_v12  ;;  %1500 = vmatpush2.msra.mxu0 %v804_v19  ;;  %v357_v12 = vld [vmem:[%s5490_s1 + $0xad0] sm:$0xff]  ;;  %v533_v19 = vmax.f32 %v113_v62, 0.0  ;;  %v513_v62 = vmax.f32 %v93_v52, 0.0 }
  0x94   :  { %1347 = vmatpush2.msra.mxu1 %v552_v20  ;;  %1501 = vmatprep.subr.mxu0 %v798_v24  ;;  %v356_v20 = vld [vmem:[%s5490_s1 + $0xac8] sm:$0xff]  ;;  %v350_v24 = vld [vmem:[%s5490_s1 + $0xa98] sm:$0xff]  ;;  %v777_v28 = vmax.f32 %v357_v12, 0.0 }
  0x95   :  { %1348 = vmatprep.subr.mxu1 %v546_v25  ;;  %1502 = vmatpush2.msra.mxu0 %v797_v32  ;;  %v3711_v25 = vld [vmem:[%s5491_s0 + $0x1e0] sm:$0xff]  ;;  %v527_v32 = vmax.f32 %v107_v14, 0.0 }
  0x96   :  { %1112 = vmatprep.mubr.f32.mxu0 %v3655_v34  ;;  %1349 = vmatpush2.msra.mxu1 %v545_v36  ;;  %v776_v36 = vmax.f32 %v356_v20, 0.0 }
  0x97   :  { %1350 = vmatprep.mubr.f32.mxu1 %v3047_v5  ;;  %1503 = vmatprep.subr.mxu0 %v791_v47  ;;  %v783_v5 = vmax.f32 %v363_v61, 0.0  ;;  %v770_v47 = vmax.f32 %v350_v24, 0.0  ;;  %v86_v61 = vld [vmem:[%s5490_s1 + $0x258] sm:$0xff] }
  0x98   :  { %1113 = vmatmul.mubr.f32.gmra.mxu0 %v3669_v50  ;;  %1351 = vmatmul.mubr.f32.vlgmr.msra.gmra.mxu1 %v3064_v11  ;;  %v100_v11 = vld [vmem:[%s5490_s1 + $0x2c8] sm:$0xff]  ;;  %v506_v20 = vmax.f32 %v86_v61, 0.0 }
  0x99   :  { %1504 = vmatpush2.msra.mxu0 %v790_v51  ;;  %1608 = vmatprep.subr.mxu1 %v541_v55  ;;  %v520_v48 = vmax.f32 %v100_v11, 0.0  ;;  %v769_v51 = vmax.f32 %v349_v33, 0.0  ;;  %v519_v55 = vmax.f32 %v99_v45, 0.0  ;;  %v337_v11 = vld [vmem:[%s5490_s1 + $0xa30] sm:$0xff]  ;;  %v72_v33 = vld [vmem:[%s5490_s1 + $0x1e8] sm:$0xff] }
  0x9a   :  { %1505 = vmatprep.subr.mxu0 %v784_v59  ;;  %1609 = vmatpush1.msra.mxu1 %v540_v0  ;;  %v92_v59 = vld [vmem:[%s5490_s1 + $0x288] sm:$0xff]  ;;  %v757_v45 = vmax.f32 %v337_v11, 0.0  ;;  %v3822_v11 = vld [vmem:[%s5491_s0 + $0x58] sm:$0xff] }
  0x9b   :  { %1118 = vmatprep.mubr.f32.mxu0 %v3686_v9  ;;  %1610 = vmatprep.subr.mxu1 %v534_v2  ;;  %v85_v2 = vld [vmem:[%s5490_s1 + $0x250] sm:$0xff]  ;;  %v512_v12 = vmax.f32 %v92_v59, 0.0 }
  0x9c   :  { %1356 = vmatprep.mubr.f32.mxu1 %v3084_v21  ;;  %1506 = vmatpush2.msra.mxu0 %v783_v5  ;;  %v345_v21 = vld [vmem:[%s5490_s1 + $0xa70] sm:$0xff]  ;;  %v338_v5 = vld [vmem:[%s5490_s1 + $0xa38] sm:$0xff]  ;;  %v505_v24 = vmax.f32 %v85_v2, 0.0 }
  0x9d   :  { %1611 = vmatpush1.msra.mxu1 %v533_v19  ;;  %1119 = vmatmul.mubr.f32.gmra.mxu0 %v3711_v25  ;;  %v765_v0 = vmax.f32 %v345_v21, 0.0  ;;  %v3747_v19 = vld [vmem:[%s5491_s0 + $0x18] sm:$0xff]  ;;  %v492_v21 = vmax.f32 %v72_v33, 0.0  ;;  %v65_v59 = vld [vmem:[%s5490_s1 + $0x1b0] sm:$0xff] }
  0x9e   :  { %1357 = vmatmul.mubr.f32.gmra.mxu1 %v3104_v29  ;;  %1507 = vmatprep.subr.mxu0 %v777_v28  ;;  %v344_v29 = vld [vmem:[%s5490_s1 + $0xa68] sm:$0xff]  ;;  %v78_v28 = vld [vmem:[%s5490_s1 + $0x218] sm:$0xff]  ;;  %v3836_v33 = vld [vmem:[%s5491_s0 + $0x50] sm:$0xff] }
  0x9f   :  { %1612 = vmatprep.subr.mxu1 %v527_v32  ;;  %1508 = vmatpush2.msra.mxu0 %v776_v36  ;;  %v764_v14 = vmax.f32 %v344_v29, 0.0  ;;  %v758_v32 = vmax.f32 %v338_v5, 0.0  ;;  %v3797_v29 = vld [vmem:[%s5491_s0 + $0x30] sm:$0xff]  ;;  %v58_v2 = vld [vmem:[%s5490_s1 + $0x178] sm:$0xff] }
  0xa0   :  { %1613 = vmatpush1.msra.mxu1 %v526_v43  ;;  %1509 = vmatprep.subr.mxu0 %v770_v47  ;;  %v330_v43 = vld [vmem:[%s5490_s1 + $0x9f8] sm:$0xff]  ;;  %v498_v47 = vmax.f32 %v78_v28, 0.0 }
  0xa1   :  { %1614 = vmatprep.subr.mxu1 %v520_v48  ;;  %1362 = vmatprep.mubr.f32.mxu1 %v3127_v41  ;;  %v79_v41 = vld [vmem:[%s5490_s1 + $0x220] sm:$0xff] }
  0xa2   :  { %1510 = vmatpush2.msra.mxu0 %v769_v51  ;;  %2353 = vmatprep.mubr.msk.f32.mxu0 %vm915_vm0, %v3747_v19  ;;  %v499_v36 = vmax.f32 %v79_v41, 0.0  ;;  %v71_v48 = vld [vmem:[%s5490_s1 + $0x1e0] sm:$0xff]  ;;  %v3783_v51 = vld [vmem:[%s5491_s0 + $0x38] sm:$0xff]  ;;  %v57_v41 = vld [vmem:[%s5490_s1 + $0x170] sm:$0xff] }
  0xa3   :  { %1615 = vmatpush1.msra.mxu1 %v519_v55  ;;  %1512 = vmatmul.mubr.f32.vlgmr.msra.gmra.mxu0 %v3758_v22  ;;  %v750_v55 = vmax.f32 %v330_v43, 0.0  ;;  %v491_v61 = vmax.f32 %v71_v48, 0.0  ;;  %v303_v48 = vld [vmem:[%s5490_s1 + $0x920] sm:$0xff] }
  0xa4   :  { %1363 = vmatmul.mubr.f32.gmra.mxu1 %v3147_v49  ;;  %1616 = vmatprep.subr.mxu1 %v513_v62  ;;  %v331_v49 = vld [vmem:[%s5490_s1 + $0xa00] sm:$0xff] }
  0xa5   :  { %1769 = vmatprep.subr.mxu0 %v765_v0  ;;  %1617 = vmatpush1.msra.mxu1 %v512_v12  ;;  %v751_v52 = vmax.f32 %v331_v49, 0.0  ;;  %v323_v62 = vld [vmem:[%s5490_s1 + $0x9c0] sm:$0xff]  ;;  %v317_v12 = vld [vmem:[%s5490_s1 + $0x990] sm:$0xff]  ;;  %v310_v49 = vld [vmem:[%s5490_s1 + $0x958] sm:$0xff] }
  0xa6   :  { %1770 = vmatpush1.msra.mxu0 %v764_v14  ;;  %1618 = vmatprep.subr.mxu1 %v506_v20  ;;  %v485_v14 = vmax.f32 %v65_v59, 0.0  ;;  %v743_v5 = vmax.f32 %v323_v62, 0.0  ;;  %v737_v28 = vmax.f32 %v317_v12, 0.0  ;;  %v302_v62 = vld [vmem:[%s5490_s1 + $0x918] sm:$0xff]  ;;  %v296_v12 = vld [vmem:[%s5490_s1 + $0x8e8] sm:$0xff] }
  0xa7   :  { %1368 = vmatprep.mubr.f32.mxu1 %v3164_v58  ;;  %2354 = vmatprep.mubr.msk.f32.mxu0 %vm915_vm0, %v3783_v51  ;;  %v324_v58 = vld [vmem:[%s5490_s1 + $0x9c8] sm:$0xff] }
  0xa8   :  { %1619 = vmatpush1.msra.mxu1 %v505_v24  ;;  %1771 = vmatprep.subr.mxu0 %v758_v32  ;;  %v744_v0 = vmax.f32 %v324_v58, 0.0  ;;  %v316_v24 = vld [vmem:[%s5490_s1 + $0x988] sm:$0xff]  ;;  %v51_v32 = vld [vmem:[%s5490_s1 + $0x140] sm:$0xff]  ;;  %v3855_v58 = vld [vmem:[%s5491_s0 + $0x78] sm:$0xff] }
  0xa9   :  { %1369 = vmatmul.mubr.f32.gmra.mxu1 %v3190_v4  ;;  %1518 = vmatmul.mubr.f32.gmra.mxu0 %v3797_v29  ;;  %v64_v4 = vld [vmem:[%s5490_s1 + $0x1a8] sm:$0xff]  ;;  %v736_v43 = vmax.f32 %v316_v24, 0.0 }
  0xaa   :  { %1620 = vmatprep.subr.mxu1 %v499_v36  ;;  %1772 = vmatpush1.msra.mxu0 %v757_v45  ;;  %v484_v20 = vmax.f32 %v64_v4, 0.0  ;;  %v477_v36 = vmax.f32 %v57_v41, 0.0  ;;  %v309_v45 = vld [vmem:[%s5490_s1 + $0x950] sm:$0xff]  ;;  %v723_v4 = vmax.f32 %v303_v48, 0.0  ;;  %v30_v41 = vld [vmem:[%s5490_s1 + $0x98] sm:$0xff]  ;;  %v288_v48 = vld [vmem:[%s5490_s1 + $0x8a8] sm:$0xff] }
  0xab   :  { %1621 = vmatpush1.msra.mxu1 %v498_v47  ;;  %1773 = vmatprep.subr.mxu0 %v751_v52  ;;  %v44_v47 = vld [vmem:[%s5490_s1 + $0x108] sm:$0xff]  ;;  %v471_v52 = vmax.f32 %v51_v32, 0.0  ;;  %v729_v59 = vmax.f32 %v309_v45, 0.0  ;;  %v3894_v32 = vld [vmem:[%s5491_s0 + $0x98] sm:$0xff]  ;;  %v3908_v45 = vld [vmem:[%s5491_s0 + $0x90] sm:$0xff] }
  0xac   :  { %1622 = vmatprep.subr.mxu1 %v492_v21  ;;  %1774 = vmatpush1.msra.mxu0 %v750_v55  ;;  %v730_v21 = vmax.f32 %v310_v49, 0.0 }
  0xad   :  { %1374 = vmatprep.mubr.f32.mxu1 %v3207_v16  ;;  %2355 = vmatprep.mubr.msk.f32.mxu0 %vm915_vm0, %v3822_v11  ;;  %v478_v16 = vmax.f32 %v58_v2, 0.0  ;;  %v37_v2 = vld [vmem:[%s5490_s1 + $0xd0] sm:$0xff] }
  0xae   :  { %1623 = vmatpush1.msra.mxu1 %v491_v61  ;;  %1775 = vmatprep.subr.mxu0 %v744_v0  ;;  %v43_v61 = vld [vmem:[%s5490_s1 + $0x100] sm:$0xff]  ;;  %v3869_v0 = vld [vmem:[%s5491_s0 + $0x70] sm:$0xff]  ;;  %v457_v24 = vmax.f32 %v37_v2, 0.0  ;;  %v3933_v2 = vld [vmem:[%s5491_s0 + $0xb8] sm:$0xff] }
  0xaf   :  { %1375 = vmatmul.mubr.f32.gmra.mxu1 %v3230_v26  ;;  %1524 = vmatmul.mubr.f32.gmra.mxu0 %v3836_v33  ;;  %v50_v26 = vld [vmem:[%s5490_s1 + $0x138] sm:$0xff] }
  0xb0   :  { %1624 = vmatprep.subr.mxu1 %v485_v14  ;;  %1776 = vmatpush1.msra.mxu0 %v743_v5  ;;  %v470_v55 = vmax.f32 %v50_v26, 0.0  ;;  %v463_v14 = vmax.f32 %v43_v61, 0.0  ;;  %v722_v5 = vmax.f32 %v302_v62, 0.0  ;;  %v450_v26 = vmax.f32 %v30_v41, 0.0  ;;  %v281_v61 = vld [vmem:[%s5490_s1 + $0x870] sm:$0xff] }
  0xb1   :  { %1625 = vmatpush1.msra.mxu1 %v484_v20  ;;  %1777 = vmatprep.subr.mxu0 %v737_v28  ;;  %v295_v20 = vld [vmem:[%s5490_s1 + $0x8e0] sm:$0xff]  ;;  %v29_v28 = vld [vmem:[%s5490_s1 + $0x90] sm:$0xff]  ;;  %v708_v62 = vmax.f32 %v288_v48, 0.0  ;;  %v3972_v48 = vld [vmem:[%s5491_s0 + $0xd8] sm:$0xff] }
  0xb2   :  { %1626 = vmatprep.subr.mxu1 %v478_v16  ;;  %1380 = vmatprep.mubr.f32.mxu1 %v3250_v37  ;;  %v464_v37 = vmax.f32 %v44_v47, 0.0  ;;  %v716_v16 = vmax.f32 %v296_v12, 0.0  ;;  %v449_v47 = vmax.f32 %v29_v28, 0.0  ;;  %v226_v28 = vld [vmem:[%s5490_s1 + $0x6b8] sm:$0xff] }
  0xb3   :  { %2356 = vmatprep.mubr.msk.f32.mxu0 %vm915_vm0, %v3855_v58  ;;  %1627 = vmatpush1.msra.mxu1 %v477_v36  ;;  %v715_v36 = vmax.f32 %v295_v20, 0.0  ;;  %v3947_v20 = vld [vmem:[%s5491_s0 + $0xb0] sm:$0xff] }
  0xb4   :  { %1778 = vmatpush1.msra.mxu0 %v736_v43  ;;  %1381 = vmatmul.mubr.f32.gmra.mxu1 %v3270_v46  ;;  %v36_v46 = vld [vmem:[%s5490_s1 + $0xc8] sm:$0xff]  ;;  %v289_v43 = vld [vmem:[%s5490_s1 + $0x8b0] sm:$0xff] }
  0xb5   :  { %1530 = vmatmul.mubr.f32.gmra.mxu0 %v3869_v0  ;;  %1628 = vmatprep.subr.mxu1 %v471_v52  ;;  %v456_v49 = vmax.f32 %v36_v46, 0.0  ;;  %v22_v52 = vld [vmem:[%s5490_s1 + $0x58] sm:$0xff]  ;;  %v233_v46 = vld [vmem:[%s5490_s1 + $0x6f0] sm:$0xff] }
  0xb6   :  { %1779 = vmatprep.subr.mxu0 %v730_v21  ;;  %1629 = vmatpush1.msra.mxu1 %v470_v55  ;;  %v709_v21 = vmax.f32 %v289_v43, 0.0  ;;  %v16_v55 = vld [vmem:[%s5490_s1 + $0x28] sm:$0xff] }
  0xb7   :  { %1780 = vmatpush1.msra.mxu0 %v729_v59  ;;  %1630 = vmatprep.subr.mxu1 %v464_v37  ;;  %v442_v37 = vmax.f32 %v22_v52, 0.0 }
  0xb8   :  { %1781 = vmatprep.subr.mxu0 %v723_v4  ;;  %1386 = vmatprep.mubr.f32.mxu1 %v3293_v60  ;;  %v23_v60 = vld [vmem:[%s5490_s1 + $0x60] sm:$0xff] }
  0xb9   :  { %2357 = vmatprep.mubr.msk.f32.mxu0 %vm915_vm0, %v3894_v32  ;;  %1631 = vmatpush1.msra.mxu1 %v463_v14  ;;  %v443_v59 = vmax.f32 %v23_v60, 0.0  ;;  %v15_v4 = vld [vmem:[%s5490_s1 + $0x20] sm:$0xff]  ;;  %v436_v14 = vmax.f32 %v16_v55, 0.0  ;;  %v225_v60 = vld [vmem:[%s5490_s1 + $0x6b0] sm:$0xff] }
  0xba   :  { %1782 = vmatpush1.msra.mxu0 %v722_v5  ;;  %1387 = vmatmul.mubr.f32.gmra.mxu1 %v3313_v6  ;;  %v282_v6 = vld [vmem:[%s5490_s1 + $0x878] sm:$0xff]  ;;  %v701_v5 = vmax.f32 %v281_v61, 0.0  ;;  %v435_v41 = vmax.f32 %v15_v4, 0.0  ;;  %v3986_v55 = vld [vmem:[%s5491_s0 + $0xd0] sm:$0xff] }
  0xbb   :  { %1536 = vmatmul.mubr.f32.gmra.mxu0 %v3908_v45  ;;  %1632 = vmatprep.subr.mxu1 %v457_v24  ;;  %v702_v12 = vmax.f32 %v282_v6, 0.0  ;;  %v274_v24 = vld [vmem:[%s5490_s1 + $0x838] sm:$0xff]  ;;  %v261_v6 = vld [vmem:[%s5490_s1 + $0x7d0] sm:$0xff] }
  0xbc   :  { %1783 = vmatprep.subr.mxu0 %v716_v16  ;;  %1633 = vmatpush1.msra.mxu1 %v456_v49  ;;  %v268_v49 = vld [vmem:[%s5490_s1 + $0x808] sm:$0xff]  ;;  %v694_v43 = vmax.f32 %v274_v24, 0.0  ;;  %v254_v4 = vld [vmem:[%s5490_s1 + $0x798] sm:$0xff]  ;;  %v253_v24 = vld [vmem:[%s5490_s1 + $0x790] sm:$0xff] }
  0xbd   :  { %1784 = vmatpush1.msra.mxu0 %v715_v36  ;;  %1634 = vmatprep.subr.mxu1 %v450_v26  ;;  %v653_v36 = vmax.f32 %v233_v46, 0.0  ;;  %v688_v52 = vmax.f32 %v268_v49, 0.0  ;;  %v247_v49 = vld [vmem:[%s5490_s1 + $0x760] sm:$0xff] }
  0xbe   :  { %1392 = vmatprep.mubr.f32.mxu1 %v3330_v17  ;;  %2358 = vmatprep.mubr.msk.f32.mxu0 %vm915_vm0, %v3933_v2  ;;  %v275_v17 = vld [vmem:[%s5490_s1 + $0x840] sm:$0xff] }
  0xbf   :  { %1635 = vmatpush1.msra.mxu1 %v449_v47  ;;  %1785 = vmatprep.subr.mxu0 %v709_v21  ;;  %v695_v16 = vmax.f32 %v275_v17, 0.0  ;;  %v267_v47 = vld [vmem:[%s5490_s1 + $0x800] sm:$0xff]  ;;  %v4005_v17 = vld [vmem:[%s5491_s0 + $0xf8] sm:$0xff] }
  0xc0   :  { %1393 = vmatmul.mubr.f32.gmra.mxu1 %v3356_v30  ;;  %1542 = vmatmul.mubr.f32.gmra.mxu0 %v3947_v20  ;;  %v232_v30 = vld [vmem:[%s5490_s1 + $0x6e8] sm:$0xff]  ;;  %v219_v21 = vld [vmem:[%s5490_s1 + $0x680] sm:$0xff]  ;;  %v687_v61 = vmax.f32 %v267_v47, 0.0 }
  0xc1   :  { %1636 = vmatprep.subr.mxu1 %v443_v59  ;;  %1786 = vmatpush1.msra.mxu0 %v708_v62  ;;  %v652_v26 = vmax.f32 %v232_v30, 0.0  ;;  %v645_v59 = vmax.f32 %v225_v60, 0.0  ;;  %v260_v62 = vld [vmem:[%s5490_s1 + $0x7c8] sm:$0xff]  ;;  %v674_v30 = vmax.f32 %v254_v4, 0.0  ;;  %v198_v60 = vld [vmem:[%s5490_s1 + $0x5d8] sm:$0xff]  ;;  %v239_v4 = vld [vmem:[%s5490_s1 + $0x720] sm:$0xff] }
  0xc2   :  { %1637 = vmatpush1.msra.mxu1 %v442_v37  ;;  %1787 = vmatprep.subr.mxu0 %v702_v12  ;;  %v212_v37 = vld [vmem:[%s5490_s1 + $0x648] sm:$0xff]  ;;  %v639_v12 = vmax.f32 %v219_v21, 0.0  ;;  %v680_v46 = vmax.f32 %v260_v62, 0.0  ;;  %v4044_v21 = vld [vmem:[%s5491_s0 + $0x118] sm:$0xff]  ;;  %v4058_v62 = vld [vmem:[%s5491_s0 + $0x110] sm:$0xff] }
  0xc3   :  { %1638 = vmatprep.subr.mxu1 %v436_v14  ;;  %1788 = vmatpush1.msra.mxu0 %v701_v5  ;;  %v681_v14 = vmax.f32 %v261_v6, 0.0 }
  0xc4   :  { %1398 = vmatprep.mubr.f32.mxu1 %v3373_v42  ;;  %2359 = vmatprep.mubr.msk.f32.mxu0 %vm915_vm0, %v3972_v48  ;;  %v646_v42 = vmax.f32 %v226_v28, 0.0  ;;  %v205_v28 = vld [vmem:[%s5490_s1 + $0x610] sm:$0xff] }
  0xc5   :  { %1639 = vmatpush1.msra.mxu1 %v435_v41  ;;  %1789 = vmatprep.subr.mxu0 %v695_v16  ;;  %v211_v41 = vld [vmem:[%s5490_s1 + $0x640] sm:$0xff]  ;;  %v4019_v16 = vld [vmem:[%s5491_s0 + $0xf0] sm:$0xff]  ;;  %v625_v47 = vmax.f32 %v205_v28, 0.0  ;;  %v4083_v28 = vld [vmem:[%s5491_s0 + $0x138] sm:$0xff] }
  0xc6   :  { %1399 = vmatmul.mubr.f32.gmra.mxu1 %v3396_v53  ;;  %1548 = vmatmul.mubr.f32.gmra.mxu0 %v3986_v55  ;;  %v218_v53 = vld [vmem:[%s5490_s1 + $0x678] sm:$0xff] }
  0xc7   :  { %1640 = vmatprep.subr.mxu1 %v653_v36  ;;  %1790 = vmatpush1.msra.mxu0 %v694_v43  ;;  %v638_v5 = vmax.f32 %v218_v53, 0.0  ;;  %v631_v36 = vmax.f32 %v211_v41, 0.0  ;;  %v673_v43 = vmax.f32 %v253_v24, 0.0  ;;  %v618_v53 = vmax.f32 %v198_v60, 0.0  ;;  %v428_v41 = vld [vmem:[%s5490_s1 + $0xd08] sm:$0xff] }
  0xc8   :  { %1641 = vmatpush2.msra.mxu1 %v652_v26  ;;  %1791 = vmatprep.subr.mxu0 %v688_v52  ;;  %v246_v26 = vld [vmem:[%s5490_s1 + $0x758] sm:$0xff]  ;;  %v197_v52 = vld [vmem:[%s5490_s1 + $0x5d0] sm:$0xff]  ;;  %v659_v24 = vmax.f32 %v239_v4, 0.0 }
  0xc9   :  { %1642 = vmatprep.subr.mxu1 %v646_v42  ;;  %1404 = vmatprep.mubr.f32.mxu1 %v3416_v1  ;;  %v632_v1 = vmax.f32 %v212_v37, 0.0  ;;  %v667_v42 = vmax.f32 %v247_v49, 0.0  ;;  %v617_v37 = vmax.f32 %v197_v52, 0.0  ;;  %v170_v52 = vld [vmem:[%s5490_s1 + $0x4f8] sm:$0xff] }
  0xca   :  { %2360 = vmatprep.mubr.msk.f32.mxu0 %vm915_vm0, %v4005_v17  ;;  %1643 = vmatpush2.msra.mxu1 %v645_v59  ;;  %v666_v59 = vmax.f32 %v246_v26, 0.0  ;;  %v4097_v26 = vld [vmem:[%s5491_s0 + $0x130] sm:$0xff]  ;;  %v4122_v4 = vld [vmem:[%s5491_s0 + $0x158] sm:$0xff] }
  0xcb   :  { %1792 = vmatpush1.msra.mxu0 %v687_v61  ;;  %1405 = vmatmul.mubr.f32.gmra.mxu1 %v3438_v13  ;;  %v204_v13 = vld [vmem:[%s5490_s1 + $0x608] sm:$0xff] }
  0xcc   :  { %1554 = vmatmul.mubr.f32.gmra.mxu0 %v4019_v16  ;;  %1644 = vmatprep.subr.mxu1 %v639_v12  ;;  %v624_v6 = vmax.f32 %v204_v13, 0.0  ;;  %v240_v61 = vld [vmem:[%s5490_s1 + $0x728] sm:$0xff]  ;;  %v190_v12 = vld [vmem:[%s5490_s1 + $0x598] sm:$0xff]  ;;  %v177_v13 = vld [vmem:[%s5490_s1 + $0x530] sm:$0xff] }
  0xcd   :  { %1793 = vmatprep.subr.mxu0 %v681_v14  ;;  %1645 = vmatpush2.msra.mxu1 %v638_v5  ;;  %v660_v14 = vmax.f32 %v240_v61, 0.0  ;;  %v184_v5 = vld [vmem:[%s5490_s1 + $0x568] sm:$0xff] }
  0xce   :  { %1794 = vmatpush1.msra.mxu0 %v680_v46  ;;  %1646 = vmatprep.subr.mxu1 %v632_v1  ;;  %v610_v1 = vmax.f32 %v190_v12, 0.0 }
  0xcf   :  { %1795 = vmatprep.subr.mxu0 %v674_v30  ;;  %1410 = vmatprep.mubr.f32.mxu1 %v3465_v31  ;;  %v191_v31 = vld [vmem:[%s5490_s1 + $0x5a0] sm:$0xff] }
  0xd0   :  { %2361 = vmatprep.mubr.msk.f32.mxu0 %vm915_vm0, %v4044_v21  ;;  %1647 = vmatpush2.msra.mxu1 %v631_v36  ;;  %v611_v46 = vmax.f32 %v191_v31, 0.0  ;;  %v183_v30 = vld [vmem:[%s5490_s1 + $0x560] sm:$0xff]  ;;  %v604_v36 = vmax.f32 %v184_v5, 0.0  ;;  %v169_v31 = vld [vmem:[%s5490_s1 + $0x4f0] sm:$0xff] }
  0xd1   :  { %1796 = vmatpush1.msra.mxu0 %v673_v43  ;;  %1411 = vmatmul.mubr.f32.gmra.mxu1 %v3487_v40  ;;  %v429_v40 = vld [vmem:[%s5490_s1 + $0xd10] sm:$0xff]  ;;  %v848_v43 = vmax.f32 %v428_v41, 0.0  ;;  %v603_v60 = vmax.f32 %v183_v30, 0.0 }
  0xd2   :  { %1560 = vmatmul.mubr.f32.gmra.mxu0 %v4058_v62  ;;  %1648 = vmatprep.subr.mxu1 %v625_v47  ;;  %v849_v49 = vmax.f32 %v429_v40, 0.0  ;;  %v421_v47 = vld [vmem:[%s5490_s1 + $0xcd0] sm:$0xff]  ;;  %v408_v40 = vld [vmem:[%s5490_s1 + $0xc68] sm:$0xff] }
  0xd3   :  { %1797 = vmatprep.subr.mxu0 %v667_v42  ;;  %1649 = vmatpush2.msra.mxu1 %v624_v6  ;;  %v415_v6 = vld [vmem:[%s5490_s1 + $0xca0] sm:$0xff]  ;;  %v841_v61 = vmax.f32 %v421_v47, 0.0  ;;  %v4136_v5 = vld [vmem:[%s5491_s0 + $0x150] sm:$0xff] }
  0xd4   :  { %1798 = vmatpush1.msra.mxu0 %v666_v59  ;;  %1650 = vmatprep.subr.mxu1 %v618_v53  ;;  %v597_v59 = vmax.f32 %v177_v13, 0.0  ;;  %v835_v12 = vmax.f32 %v415_v6, 0.0  ;;  %v401_v30 = vld [vmem:[%s5490_s1 + $0xc30] sm:$0xff]  ;;  %v155_v13 = vld [vmem:[%s5490_s1 + $0x480] sm:$0xff]  ;;  %v148_v6 = vld [vmem:[%s5490_s1 + $0x448] sm:$0xff] }
  0xd5   :  { %1416 = vmatprep.mubr.f32.mxu1 %v3507_v54  ;;  %2362 = vmatprep.mubr.msk.f32.mxu0 %vm915_vm0, %v4083_v28  ;;  %v422_v54 = vld [vmem:[%s5490_s1 + $0xcd8] sm:$0xff] }
  0xd6   :  { %1651 = vmatpush2.msra.mxu1 %v617_v37  ;;  %1799 = vmatprep.subr.mxu0 %v660_v14  ;;  %v842_v42 = vmax.f32 %v422_v54, 0.0  ;;  %v414_v37 = vld [vmem:[%s5490_s1 + $0xc98] sm:$0xff]  ;;  %v163_v14 = vld [vmem:[%s5490_s1 + $0x4c0] sm:$0xff] }
  0xd7   :  { %1417 = vmatmul.mubr.f32.gmra.mxu1 %v3536_v3  ;;  %1566 = vmatmul.mubr.f32.gmra.mxu0 %v4097_v26  ;;  %v176_v3 = vld [vmem:[%s5490_s1 + $0x528] sm:$0xff]  ;;  %v834_v41 = vmax.f32 %v414_v37, 0.0 }
  0xd8   :  { %1652 = vmatprep.subr.mxu1 %v611_v46  ;;  %1800 = vmatpush1.msra.mxu0 %v659_v24  ;;  %v596_v53 = vmax.f32 %v176_v3, 0.0  ;;  %v589_v46 = vmax.f32 %v169_v31, 0.0  ;;  %v407_v24 = vld [vmem:[%s5490_s1 + $0xc60] sm:$0xff]  ;;  %v821_v3 = vmax.f32 %v401_v30, 0.0  ;;  %v568_v31 = vmax.f32 %v148_v6, 0.0 }
  0xd9   :  { %1653 = vmatpush2.msra.mxu1 %v610_v1  ;;  %1809 = vmatprep.subr.mxu0 %v849_v49  ;;  %v156_v1 = vld [vmem:[%s5490_s1 + $0x488] sm:$0xff]  ;;  %v583_v49 = vmax.f32 %v163_v14, 0.0  ;;  %v135_v14 = vld [vmem:[%s5490_s1 + $0x3e0] sm:$0xff] }
  0xda   :  { %1654 = vmatprep.subr.mxu1 %v604_v36  ;;  %1810 = vmatpush2.msra.mxu0 %v848_v43  ;;  %v828_v36 = vmax.f32 %v408_v40, 0.0  ;;  %v827_v43 = vmax.f32 %v407_v24, 0.0  ;;  %v576_v47 = vmax.f32 %v156_v1, 0.0  ;;  %v134_v40 = vld [vmem:[%s5490_s1 + $0x3d8] sm:$0xff]  ;;  %v127_v30 = vld [vmem:[%s5490_s1 + $0x3a0] sm:$0xff] }
  0xdb   :  { %1422 = vmatprep.mubr.f32.mxu1 %v3557_v23  ;;  %2363 = vmatprep.mubr.msk.f32.mxu0 %vm915_vm0, %v4122_v4  ;;  %v590_v23 = vmax.f32 %v170_v52, 0.0  ;;  %v554_v1 = vmax.f32 %v134_v40, 0.0  ;;  %v359_v6 = vld [vmem:[%s5490_s1 + $0xae0] sm:$0xff] }
  0xdc   :  { %1655 = vmatpush2.msra.mxu1 %v603_v60  ;;  %1811 = vmatprep.subr.mxu0 %v842_v42  ;;  %v400_v60 = vld [vmem:[%s5490_s1 + $0xc28] sm:$0xff]  ;;  %v575_v42 = vmax.f32 %v155_v13, 0.0  ;;  %v547_v13 = vmax.f32 %v127_v30, 0.0  ;;  %v101_v30 = vld [vmem:[%s5490_s1 + $0x2d0] sm:$0xff] }
  0xdd   :  { %1423 = vmatmul.mubr.f32.gmra.mxu1 %v3582_v38  ;;  %1572 = vmatmul.mubr.f32.gmra.mxu0 %v4136_v5  ;;  %v162_v38 = vld [vmem:[%s5490_s1 + $0x4b8] sm:$0xff]  ;;  %v820_v52 = vmax.f32 %v400_v60, 0.0 }
  0xde   :  { %1656 = vmatprep.subr.mxu1 %v597_v59  ;;  %1812 = vmatpush2.msra.mxu0 %v841_v61  ;;  %v582_v54 = vmax.f32 %v162_v38, 0.0  ;;  %v379_v38 = vld [vmem:[%s5490_s1 + $0xb80] sm:$0xff]  ;;  %v366_v60 = vld [vmem:[%s5490_s1 + $0xb18] sm:$0xff] }
  0xdf   :  { %1657 = vmatpush2.msra.mxu1 %v596_v53  ;;  %1813 = vmatprep.subr.mxu0 %v835_v12  ;;  %v141_v53 = vld [vmem:[%s5490_s1 + $0x410] sm:$0xff] }
  0xe0   :  { %1658 = vmatprep.subr.mxu1 %v590_v23  ;;  %1428 = vmatprep.mubr.f32.mxu1 %v3606_v56  ;;  %v394_v56 = vld [vmem:[%s5490_s1 + $0xbf8] sm:$0xff]  ;;  %v387_v23 = vld [vmem:[%s5490_s1 + $0xbc0] sm:$0xff] }
  0xe1   :  { %2364 = vmatprep.mubr.msk.f32.mxu0 %vm915_vm0, %v3427_v8  ;;  %1659 = vmatpush2.msra.mxu1 %v589_v46  ;;  %v149_v8 = vld [vmem:[%s5490_s1 + $0x450] sm:$0xff]  ;;  %v814_v61 = vmax.f32 %v394_v56, 0.0  ;;  %v807_v46 = vmax.f32 %v387_v23, 0.0  ;;  %v786_v56 = vmax.f32 %v366_v60, 0.0  ;;  %v206_v60 = vld [vmem:[%s5490_s1 + $0x618] sm:$0xff] }
  0xe2   :  { %1814 = vmatpush2.msra.mxu0 %v834_v41  ;;  %1429 = vmatmul.mubr.f32.gmra.mxu1 %v3628_v10  ;;  %v142_v10 = vld [vmem:[%s5490_s1 + $0x418] sm:$0xff]  ;;  %v569_v59 = vmax.f32 %v149_v8, 0.0  ;;  %v380_v41 = vld [vmem:[%s5490_s1 + $0xb88] sm:$0xff] }
  0xe3   :  { %1578 = vmatmul.mubr.f32.gmra.mxu0 %v3447_v18  ;;  %1660 = vmatprep.subr.mxu1 %v583_v49  ;;  %v393_v18 = vld [vmem:[%s5490_s1 + $0xbf0] sm:$0xff]  ;;  %v562_v12 = vmax.f32 %v142_v10, 0.0  ;;  %v800_v49 = vmax.f32 %v380_v41, 0.0  ;;  %v358_v10 = vld [vmem:[%s5490_s1 + $0xad8] sm:$0xff] }
  0xe4   :  { %1815 = vmatprep.subr.mxu0 %v828_v36  ;;  %1661 = vmatpush2.msra.mxu1 %v582_v54  ;;  %v813_v37 = vmax.f32 %v393_v18, 0.0  ;;  %v373_v54 = vld [vmem:[%s5490_s1 + $0xb50] sm:$0xff]  ;;  %v227_v18 = vld [vmem:[%s5490_s1 + $0x6c0] sm:$0xff]  ;;  %v778_v23 = vmax.f32 %v358_v10, 0.0  ;;  %v4289_v41 = vld [vmem:[%s5490_s1 + $0xa78] sm:$0xff] }
  0xe5   :  { %1816 = vmatpush2.msra.mxu0 %v827_v43  ;;  %1662 = vmatprep.subr.mxu1 %v576_v47  ;;  %v372_v43 = vld [vmem:[%s5490_s1 + $0xb48] sm:$0xff]  ;;  %v122_v47 = vld [vmem:[%s5490_s1 + $0x378] sm:$0xff]  ;;  %v4381_v10 = vld [vmem:[%s5491_s0 + $0x80] sm:$0xff] }
  0xe6   :  { %1817 = vmatprep.subr.mxu0 %v821_v3  ;;  %1434 = vmatprep.mubr.f32.mxu1 %v3655_v34  ;;  %v561_v34 = vmax.f32 %v141_v53, 0.0  ;;  %v365_v3 = vld [vmem:[%s5490_s1 + $0xb10] sm:$0xff]  ;;  %v779_v53 = vmax.f32 %v359_v6, 0.0 }
  0xe7   :  { %2365 = vmatprep.mubr.msk.f32.mxu0 %vm915_vm0, %v3476_v35  ;;  %1663 = vmatpush2.msra.mxu1 %v575_v42  ;;  %v386_v35 = vld [vmem:[%s5490_s1 + $0xbb8] sm:$0xff]  ;;  %v4237_v42 = vld [vmem:[%s5491_s0 + $0x8] sm:$0xff] }
  0xe8   :  { %1818 = vmatpush2.msra.mxu0 %v820_v52  ;;  %1435 = vmatmul.mubr.f32.gmra.mxu1 %v3669_v50  ;;  %v555_v50 = vmax.f32 %v135_v14, 0.0  ;;  %v806_v24 = vmax.f32 %v386_v35, 0.0  ;;  %v542_v52 = vmax.f32 %v122_v47, 0.0  ;;  %v4270_v14 = vld [vmem:[%s5491_s0 + $0x28] sm:$0xff] }
  0xe9   :  { %1584 = vmatmul.mubr.f32.gmra.mxu0 %v3493_v44  ;;  %1664 = vmatprep.subr.mxu1 %v569_v59  ;;  %v128_v44 = vld [vmem:[%s5490_s1 + $0x3a8] sm:$0xff]  ;;  %v115_v59 = vld [vmem:[%s5490_s1 + $0x340] sm:$0xff] }
  0xea   :  { %1819 = vmatprep.subr.mxu0 %v814_v61  ;;  %1665 = vmatpush2.msra.mxu1 %v568_v31  ;;  %v548_v36 = vmax.f32 %v128_v44, 0.0  ;;  %v4256_v61 = vld [vmem:[%s5491_s0] sm:$0xff]  ;;  %v647_v31 = vmax.f32 %v227_v18, 0.0  ;;  %v220_v35 = vld [vmem:[%s5490_s1 + $0x688] sm:$0xff] }
  0xeb   :  { %1820 = vmatpush2.msra.mxu0 %v813_v37  ;;  %1666 = vmatprep.subr.mxu1 %v562_v12  ;;  %v351_v37 = vld [vmem:[%s5490_s1 + $0xaa0] sm:$0xff]  ;;  %v535_v12 = vmax.f32 %v115_v59, 0.0  ;;  %v4294_v44 = vld [vmem:[%s5491_s0 + $0x48] sm:$0xff] }
  0xec   :  { %1440 = vmatprep.mubr.f32.mxu1 %v3686_v9  ;;  %2366 = vmatprep.mubr.msk.f32.mxu0 %vm915_vm0, %v3519_v57  ;;  %v799_v9 = vmax.f32 %v379_v38, 0.0  ;;  %v234_v57 = vld [vmem:[%s5490_s1 + $0x6f8] sm:$0xff]  ;;  %v771_v40 = vmax.f32 %v351_v37, 0.0  ;;  %v5509_v38 = vmax.f32 %v4289_v41, 0.0 }
  0xed   :  { %1667 = vmatpush2.msra.mxu1 %v561_v34  ;;  %1821 = vmatprep.subr.mxu0 %v807_v46  ;;  %v654_v8 = vmax.f32 %v234_v57, 0.0  ;;  %v108_v46 = vld [vmem:[%s5490_s1 + $0x308] sm:$0xff] }
  0xee   :  { %1441 = vmatmul.mubr.f32.gmra.mxu1 %v3711_v25  ;;  %1590 = vmatmul.mubr.f32.gmra.mxu0 %v3541_v7  ;;  %v793_v25 = vmax.f32 %v373_v54, 0.0  ;;  %v792_v7 = vmax.f32 %v372_v43, 0.0 }
  0xef   :  { %1668 = vmatprep.subr.mxu1 %v555_v50  ;;  %1822 = vmatpush2.msra.mxu0 %v806_v24  ;;  %v528_v50 = vmax.f32 %v108_v46, 0.0  ;;  %v213_v24 = vld [vmem:[%s5490_s1 + $0x650] sm:$0xff] }
  0xf0   :  { %1669 = vmatpush2.msra.mxu1 %v554_v1  ;;  %1823 = vmatprep.subr.mxu0 %v800_v49  ;;  %v4306_v1 = vld [vmem:[%s5490_s1 + $0xa40] sm:$0xff]  ;;  %v633_v54 = vmax.f32 %v213_v24, 0.0 }
  0xf1   :  { %1670 = vmatprep.subr.mxu1 %v548_v36  ;;  %1824 = vmatpush2.msra.mxu0 %v799_v9  ;;  %v4314_v49 = vld [vmem:[%s5491_s0 + $0x40] sm:$0xff]  ;;  %v4322_v9 = vld [vmem:[%s5490_s1 + $0xa08] sm:$0xff]  ;;  %v5508_v43 = vmax.f32 %v4306_v1, 0.0 }
  0xf2   :  { %2367 = vmatprep.mubr.msk.f32.mxu0 %vm915_vm0, %v3568_v27  ;;  %1671 = vmatpush2.msra.mxu1 %v547_v13  ;;  %v785_v27 = vmax.f32 %v365_v3, 0.0  ;;  %v521_v13 = vmax.f32 %v101_v30, 0.0  ;;  %v5507_v47 = vmax.f32 %v4322_v9, 0.0  ;;  %v4426_v24 = vld [vmem:[%s5491_s0 + $0xa0] sm:$0xff]  ;;  %v80_v30 = vld [vmem:[%s5490_s1 + $0x228] sm:$0xff] }
  0xf3   :  { %1672 = vmatprep.mubr.f32.mxu1 %v4237_v42  ;;  %1825 = vmatprep.subr.mxu0 %v793_v25  ;;  %v4342_v25 = vld [vmem:[%s5491_s0 + $0x60] sm:$0xff] }
  0xf4   :  { %1596 = vmatmul.mubr.f32.gmra.mxu0 %v3587_v39  ;;  %1673 = vmatmul.mubr.f32.vlgmr.msra.gmra.mxu1 %v4256_v61  ;;  %v352_v39 = vld [vmem:[%s5490_s1 + $0xaa8] sm:$0xff] }
  0xf5   :  { %1826 = vmatpush2.msra.mxu0 %v792_v7  ;;  %2401 = vmatprep.subr.mxu1 %v654_v8  ;;  %v772_v34 = vmax.f32 %v352_v39, 0.0  ;;  %v4349_v7 = vld [vmem:[%s5490_s1 + $0x9d0] sm:$0xff]  ;;  %v626_v8 = vmax.f32 %v206_v60, 0.0  ;;  %v87_v39 = vld [vmem:[%s5490_s1 + $0x260] sm:$0xff]  ;;  %v4451_v60 = vld [vmem:[%s5491_s0 + $0xc8] sm:$0xff] }
  0xf6   :  { %1827 = vmatprep.subr.mxu0 %v786_v56  ;;  %2402 = vmatpush3.msra.mxu1 %v542_v52  ;;  %v4360_v56 = vld [vmem:[%s5490_s1 + $0x998] sm:$0xff]  ;;  %v4366_v52 = vld [vmem:[%s5491_s0 + $0x88] sm:$0xff] }
  0xf7   :  { %2368 = vmatprep.mubr.msk.f32.mxu0 %vm915_vm0, %v3617_v63  ;;  %1678 = vmatprep.mubr.f32.mxu1 %v4270_v14  ;;  %v4280_v63 = vld [vmem:[%s5491_s0 + $0x20] sm:$0xff]  ;;  %v5503_v59 = vmax.f32 %v4360_v56, 0.0 }
  0xf8   :  { %1828 = vmatpush2.msra.mxu0 %v785_v27  ;;  %1679 = vmatmul.mubr.f32.gmra.mxu1 %v4280_v63  ;;  %v199_v27 = vld [vmem:[%s5490_s1 + $0x5e0] sm:$0xff] }
  0xf9   :  { %1602 = vmatmul.mubr.f32.gmra.mxu0 %v3637_v15  ;;  %1829 = vmatprep.subr.mxu0 %v779_v53  ;;  %v640_v15 = vmax.f32 %v220_v35, 0.0  ;;  %v619_v37 = vmax.f32 %v199_v27, 0.0 }
  0xfa   :  { %2403 = vmatprep.subr.mxu1 %v647_v31  ;;  %1830 = vmatpush2.msra.mxu0 %v778_v23  ;;  %v4401_v23 = vld [vmem:[%s5490_s1 + $0x928] sm:$0xff] }
  0xfb   :  { %2404 = vmatpush3.msra.mxu1 %v535_v12  ;;  %1831 = vmatprep.subr.mxu0 %v772_v34  ;;  %v507_v34 = vmax.f32 %v87_v39, 0.0  ;;  %v73_v39 = vld [vmem:[%s5490_s1 + $0x1f0] sm:$0xff] }
  0xfc   :  { %1684 = vmatprep.mubr.f32.mxu1 %v4294_v44  ;;  %1832 = vmatpush2.msra.mxu0 %v771_v40 }
  0xfd   :  { %2369 = vmatprep.mubr.msk.f32.mxu0 %vm915_vm0, %v3747_v19  ;;  %1685 = vmatmul.mubr.f32.gmra.mxu1 %v4314_v49  ;;  %v1191_v36 = vpop.f32.mrf.mxu1  ;;  %v5512_v19 = vmov 0.0  }
  0xfe   :  { %1834 = vmatmul.mubr.f32.vlgmr.msra.gmra.mxu0 %v3758_v22  ;;  %2405 = vmatprep.subr.mxu1 %v640_v15  ;;  %v4330_v22 = vld [vmem:[%s5491_s0 + $0x68] sm:$0xff] }
  0xff   :  { %2075 = vmatprep.subr.mxu0 %v5512_v19  ;;  %2406 = vmatpush3.msra.mxu1 %v528_v50  ;;  %v1193_v57 = vpop.f32.mrf.mxu1  ;;  %v192_v15 = vld [vmem:[%s5490_s1 + $0x5a8] sm:$0xff] }
 0x100   :  { %2076 = vmatpush1.msra.mxu0 %v5509_v38  ;;  %1690 = vmatprep.mubr.f32.mxu1 %v4330_v22  ;;  %v4770_v38 = vld [vmem:[%s5490_s1 + $0xc38] sm:$0xff] }
 0x101   :  { %2370 = vmatprep.mubr.msk.f32.mxu0 %vm915_vm0, %v3783_v51  ;;  %2077 = vmatprep.subr.mxu0 %v5512_v19  ;;  %v94_v51 = vld [vmem:[%s5490_s1 + $0x298] sm:$0xff]  ;;  %5532 = vst [vmem:[#allocation5_spill] sm:$0xff] %v4770_v38 }
 0x102   :  { %1691 = vmatmul.mubr.f32.gmra.mxu1 %v4342_v25  ;;  %1840 = vmatmul.mubr.f32.gmra.mxu0 %v3797_v29  ;;  %v1197_v3 = vpop.f32.mrf.mxu1  ;;  %v5505_v29 = vmax.f32 %v4349_v7, 0.0  ;;  %v514_v6 = vmax.f32 %v94_v51, 0.0  ;;  %v500_v51 = vmax.f32 %v80_v30, 0.0 }
 0x103   :  { %2407 = vmatprep.subr.mxu1 %v633_v54  ;;  %2078 = vmatpush1.msra.mxu0 %v5508_v43 }
 0x104   :  { %2408 = vmatpush3.msra.mxu1 %v521_v13  ;;  %2079 = vmatprep.subr.mxu0 %v5512_v19  ;;  %v1199_v18 = vpop.f32.mrf.mxu1 }
 0x105   :  { %1696 = vmatprep.mubr.f32.mxu1 %v4366_v52  ;;  %2080 = vmatpush1.msra.mxu0 %v5507_v47 }
 0x106   :  { %2371 = vmatprep.mubr.msk.f32.mxu0 %vm915_vm0, %v3822_v11  ;;  %2081 = vmatprep.subr.mxu0 %v5512_v19  ;;  %v4391_v11 = vld [vmem:[%s5490_s1 + $0x960] sm:$0xff] }
 0x107   :  { %1697 = vmatmul.mubr.f32.gmra.mxu1 %v4381_v10  ;;  %1846 = vmatmul.mubr.f32.gmra.mxu0 %v3836_v33  ;;  %v1030_v53 = vpop.f32.mrf.mxu0  ;;  %v4407_v33 = vld [vmem:[%s5491_s0 + $0xa8] sm:$0xff]  ;;  %v5499_v35 = vmax.f32 %v4391_v11, 0.0 }
 0x108   :  { %2409 = vmatprep.subr.mxu1 %v626_v8  ;;  %v4394_v31 = vpop.f32.mrf.mxu1  ;;  %2082 = vmatpush1.msra.mxu0 %v5505_v29  ;;  %v1192_v12 = vadd.f32 %v1191_v36, %v1030_v53  ;;  %v4437_v36 = vld [vmem:[%s5490_s1 + $0x8f0] sm:$0xff] }
 0x109   :  { %2410 = vmatpush3.msra.mxu1 %v514_v6  ;;  %2083 = vmatprep.subr.mxu0 %v5512_v19  ;;  %v1032_v40 = vpop.f32.mrf.mxu0  ;;  %v5495_v8 = vmax.f32 %v4437_v36, 0.0  ;;  %v185_v6 = vld [vmem:[%s5490_s1 + $0x570] sm:$0xff] }
 0x10a   :  { %1702 = vmatprep.mubr.f32.mxu1 %v4407_v33  ;;  %v4411_v46 = vpop.f32.mrf.mxu1  ;;  %2372 = vmatprep.mubr.msk.f32.mxu0 %vm915_vm0, %v3855_v58  ;;  %2220 = vst [vmem:[%s5492_s2] sm:$0xff] %v1192_v12  ;;  %v1194_v50 = vadd.f32 %v1193_v57, %v1032_v40  ;;  %v5496_v58 = vmax.f32 %v4401_v23, 0.0  ;;  %v605_v12 = vmax.f32 %v185_v6, 0.0 }
 0x10b   :  { %2084 = vmatpush1.msra.mxu0 %v5503_v59  ;;  %1703 = vmatmul.mubr.f32.gmra.mxu1 %v4426_v24 }
 0x10c   :  { %1852 = vmatmul.mubr.f32.gmra.mxu0 %v3869_v0  ;;  %2411 = vmatprep.subr.mxu1 %v619_v37  ;;  %2221 = vst [vmem:[%s5492_s2 + $0x8] sm:$0xff] %v1194_v50  ;;  %v612_v0 = vmax.f32 %v192_v15, 0.0  ;;  %v4497_v15 = vld [vmem:[%s5491_s0 + $0xe8] sm:$0xff]  ;;  %v178_v50 = vld [vmem:[%s5490_s1 + $0x538] sm:$0xff] }
 0x10d   :  { %2085 = vmatprep.subr.mxu0 %v5512_v19  ;;  %v1036_v54 = vpop.f32.mrf.mxu0  ;;  %2412 = vmatpush3.msra.mxu1 %v507_v34  ;;  %v4445_v57 = vpop.f32.mrf.mxu1  ;;  %v4486_v34 = vld [vmem:[%s5490_s1 + $0x880] sm:$0xff] }
 0x10e   :  { %2086 = vmatpush1.msra.mxu0 %v5499_v35  ;;  %v1198_v13 = vadd.f32 %v1197_v3, %v1036_v54  ;;  %1708 = vmatprep.mubr.f32.mxu1 %v4451_v60  ;;  %v4465_v3 = vld [vmem:[%s5490_s1 + $0x8b8] sm:$0xff]  ;;  %v4635_v35 = vld [vmem:[%s5491_s0 + $0x148] sm:$0xff] }
 0x10f   :  { %2087 = vmatprep.subr.mxu0 %v5512_v19  ;;  %v1038_v27 = vpop.f32.mrf.mxu0  ;;  %2373 = vmatprep.mubr.msk.f32.mxu0 %vm915_vm0, %v3894_v32  ;;  %v4473_v37 = vpop.f32.mrf.mxu1  ;;  %v4478_v32 = vld [vmem:[%s5491_s0 + $0xc0] sm:$0xff] }
 0x110   :  { %2088 = vmatpush1.msra.mxu0 %v5496_v58  ;;  %2228 = vst [vmem:[%s5492_s2 + $0x38] sm:$0xff] %v1198_v13  ;;  %v1200_v53 = vadd.f32 %v1199_v18, %v1038_v27  ;;  %1709 = vmatmul.mubr.f32.gmra.mxu1 %v4478_v32  ;;  %v5494_v18 = vmax.f32 %v4465_v3, 0.0  ;;  %v5493_v13 = vmax.f32 %v4486_v34, 0.0  ;;  %v4583_v58 = vld [vmem:[%s5490_s1 + $0x7a0] sm:$0xff] }
 0x111   :  { %1858 = vmatmul.mubr.f32.gmra.mxu0 %v3908_v45  ;;  %2413 = vmatprep.subr.mxu1 %v612_v0  ;;  %v493_v45 = vmax.f32 %v73_v39, 0.0  ;;  %v4512_v0 = vld [vmem:[%s5491_s0 + $0xe0] sm:$0xff]  ;;  %v598_v39 = vmax.f32 %v178_v50, 0.0 }
 0x112   :  { %2089 = vmatprep.subr.mxu0 %v5512_v19  ;;  %2229 = vst [vmem:[%s5492_s2 + $0x40] sm:$0xff] %v1200_v53  ;;  %2414 = vmatpush3.msra.mxu1 %v500_v51  ;;  %v4536_v53 = vld [vmem:[%s5490_s1 + $0x810] sm:$0xff] }
 0x113   :  { %2090 = vmatpush1.msra.mxu0 %v5495_v8  ;;  %v1042_v40 = vpop.f32.mrf.mxu0  ;;  %1714 = vmatprep.mubr.f32.mxu1 %v4497_v15  ;;  %v4506_v54 = vpop.f32.mrf.mxu1 }
 0x114   :  { %2374 = vmatprep.mubr.msk.f32.mxu0 %vm915_vm0, %v3933_v2  ;;  %v1204_v30 = vadd.f32 %v4394_v31, %v1042_v40  ;;  %2091 = vmatprep.subr.mxu0 %v5512_v19  ;;  %v4519_v2 = vld [vmem:[%s5490_s1 + $0x848] sm:$0xff]  ;;  %v66_v31 = vld [vmem:[%s5490_s1 + $0x1b8] sm:$0xff] }
 0x115   :  { %1715 = vmatmul.mubr.f32.gmra.mxu1 %v4512_v0  ;;  %v1044_v51 = vpop.f32.mrf.mxu0  ;;  %1864 = vmatmul.mubr.f32.gmra.mxu0 %v3947_v20  ;;  %v4529_v27 = vpop.f32.mrf.mxu1  ;;  %v4542_v20 = vld [vmem:[%s5491_s0 + $0x108] sm:$0xff] }
 0x116   :  { %2415 = vmatprep.subr.mxu1 %v605_v12  ;;  %2235 = vst [vmem:[%s5492_s2 + $0x70] sm:$0xff] %v1204_v30  ;;  %v1206_v6 = vadd.f32 %v4411_v46, %v1044_v51  ;;  %2092 = vmatpush1.msra.mxu0 %v5494_v18  ;;  %v5498_v46 = vmax.f32 %v4519_v2, 0.0  ;;  %v486_v12 = vmax.f32 %v66_v31, 0.0  ;;  %v4562_v30 = vld [vmem:[%s5491_s0 + $0x100] sm:$0xff]  ;;  %v5497_v31 = vmax.f32 %v4536_v53, 0.0  ;;  %v4572_v51 = vld [vmem:[%s5490_s1 + $0x7d8] sm:$0xff] }
 0x117   :  { %2416 = vmatpush3.msra.mxu1 %v493_v45  ;;  %2093 = vmatprep.subr.mxu0 %v5512_v19  ;;  %v171_v45 = vld [vmem:[%s5490_s1 + $0x500] sm:$0xff] }
 0x118   :  { %1720 = vmatprep.mubr.f32.mxu1 %v4542_v20  ;;  %2236 = vst [vmem:[%s5492_s2 + $0x78] sm:$0xff] %v1206_v6  ;;  %2094 = vmatpush1.msra.mxu0 %v5493_v13  ;;  %v4556_v50 = vpop.f32.mrf.mxu1  ;;  %v591_v8 = vmax.f32 %v171_v45, 0.0  ;;  %v52_v45 = vld [vmem:[%s5490_s1 + $0x148] sm:$0xff] }
 0x119   :  { %2375 = vmatprep.mubr.msk.f32.mxu0 %vm915_vm0, %v3972_v48  ;;  %v1048_v40 = vpop.f32.mrf.mxu0  ;;  %2095 = vmatprep.subr.mxu0 %v5512_v19  ;;  %v59_v48 = vld [vmem:[%s5490_s1 + $0x180] sm:$0xff] }
 0x11a   :  { %1721 = vmatmul.mubr.f32.gmra.mxu1 %v4562_v30  ;;  %v1210_v6 = vadd.f32 %v4445_v57, %v1048_v40  ;;  %1870 = vmatmul.mubr.f32.gmra.mxu0 %v3986_v55  ;;  %v4576_v18 = vpop.f32.mrf.mxu1  ;;  %v4593_v57 = vld [vmem:[%s5491_s0 + $0x128] sm:$0xff] }
 0x11b   :  { %2417 = vmatprep.subr.mxu1 %v598_v39  ;;  %v1050_v13 = vpop.f32.mrf.mxu0  ;;  %2096 = vmatpush1.msra.mxu0 %v5498_v46  ;;  %v479_v39 = vmax.f32 %v59_v48, 0.0  ;;  %v4621_v40 = vld [vmem:[%s5490_s1 + $0x768] sm:$0xff] }
 0x11c   :  { %2418 = vmatpush3.msra.mxu1 %v486_v12  ;;  %2242 = vst [vmem:[%s5492_s2 + $0xa8] sm:$0xff] %v1210_v6  ;;  %v1212_v55 = vadd.f32 %v4473_v37, %v1050_v13  ;;  %2097 = vmatprep.subr.mxu0 %v5512_v19  ;;  %v5501_v12 = vmax.f32 %v4572_v51, 0.0  ;;  %v164_v37 = vld [vmem:[%s5490_s1 + $0x4c8] sm:$0xff]  ;;  %v4610_v13 = vld [vmem:[%s5491_s0 + $0x120] sm:$0xff] }
 0x11d   :  { %1726 = vmatprep.mubr.f32.mxu1 %v4593_v57  ;;  %2376 = vmatprep.mubr.msk.f32.mxu0 %vm915_vm0, %v4005_v17  ;;  %v5500_v17 = vmax.f32 %v4583_v58, 0.0 }
 0x11e   :  { %2098 = vmatpush1.msra.mxu0 %v5497_v31  ;;  %2243 = vst [vmem:[%s5492_s2 + $0xb0] sm:$0xff] %v1212_v55  ;;  %1727 = vmatmul.mubr.f32.gmra.mxu1 %v4610_v13  ;;  %v4623_v6 = vpop.f32.mrf.mxu1 }
 0x11f   :  { %1876 = vmatmul.mubr.f32.gmra.mxu0 %v4019_v16  ;;  %v1054_v48 = vpop.f32.mrf.mxu0  ;;  %2419 = vmatprep.subr.mxu1 %v591_v8  ;;  %v584_v16 = vmax.f32 %v164_v37, 0.0  ;;  %v472_v8 = vmax.f32 %v52_v45, 0.0  ;;  %v4653_v45 = vld [vmem:[%s5490_s1 + $0x730] sm:$0xff] }
 0x120   :  { %2099 = vmatprep.subr.mxu0 %v5512_v19  ;;  %v1216_v55 = vadd.f32 %v4506_v54, %v1054_v48  ;;  %2420 = vmatpush3.msra.mxu1 %v479_v39  ;;  %v4629_v46 = vpop.f32.mrf.mxu1  ;;  %v5502_v54 = vmax.f32 %v4621_v40, 0.0  ;;  %v157_v39 = vld [vmem:[%s5490_s1 + $0x490] sm:$0xff] }
 0x121   :  { %2100 = vmatpush1.msra.mxu0 %v5501_v12  ;;  %v1056_v31 = vpop.f32.mrf.mxu0  ;;  %1732 = vmatprep.mubr.f32.mxu1 %v4635_v35  ;;  %v45_v48 = vld [vmem:[%s5490_s1 + $0x110] sm:$0xff] }
 0x122   :  { %2101 = vmatprep.subr.mxu0 %v5512_v19  ;;  %2249 = vst [vmem:[%s5492_s2 + $0xe0] sm:$0xff] %v1216_v55  ;;  %v1218_v37 = vadd.f32 %v4529_v27, %v1056_v31  ;;  %2377 = vmatprep.mubr.msk.f32.mxu0 %vm915_vm0, %v4044_v21  ;;  %v4661_v55 = vld [vmem:[%s5491_s0 + $0x140] sm:$0xff]  ;;  %v577_v27 = vmax.f32 %v157_v39, 0.0  ;;  %v4672_v31 = vld [vmem:[%s5490_s1 + $0xd18] sm:$0xff]  ;;  %v4683_v39 = vld [vmem:[%s5491_s0 + $0x168] sm:$0xff] }
 0x123   :  { %2102 = vmatpush1.msra.mxu0 %v5500_v17  ;;  %1733 = vmatmul.mubr.f32.gmra.mxu1 %v4661_v55 }
 0x124   :  { %1882 = vmatmul.mubr.f32.gmra.mxu0 %v4058_v62  ;;  %2250 = vst [vmem:[%s5492_s2 + $0xe8] sm:$0xff] %v1218_v37  ;;  %v1060_v21 = vpop.f32.mrf.mxu0  ;;  %2421 = vmatprep.subr.mxu1 %v584_v16  ;;  %v4675_v12 = vpop.f32.mrf.mxu1  ;;  %v5504_v62 = vmax.f32 %v4653_v45, 0.0  ;;  %v465_v37 = vmax.f32 %v45_v48, 0.0 }
 0x125   :  { %2103 = vmatprep.subr.mxu0 %v5512_v19  ;;  %v1222_v17 = vadd.f32 %v4556_v50, %v1060_v21  ;;  %2422 = vmatpush3.msra.mxu1 %v472_v8  ;;  %v150_v50 = vld [vmem:[%s5490_s1 + $0x458] sm:$0xff]  ;;  %v4701_v21 = vld [vmem:[%s5491_s0 + $0x160] sm:$0xff] }
 0x126   :  { %2104 = vmatpush1.msra.mxu0 %v5502_v54  ;;  %v1062_v16 = vpop.f32.mrf.mxu0  ;;  %1738 = vmatprep.mubr.f32.mxu1 %v4683_v39  ;;  %v4695_v48 = vpop.f32.mrf.mxu1  ;;  %v4708_v54 = vld [vmem:[%s5490_s1 + $0xce0] sm:$0xff] }
 0x127   :  { %2378 = vmatprep.mubr.msk.f32.mxu0 %vm915_vm0, %v4083_v28  ;;  %2256 = vst [vmem:[%s5492_s2 + $0x118] sm:$0xff] %v1222_v17  ;;  %v1224_v8 = vadd.f32 %v4576_v18, %v1062_v16  ;;  %2105 = vmatprep.subr.mxu0 %v5512_v19  ;;  %v5506_v28 = vmax.f32 %v4672_v31, 0.0  ;;  %v38_v18 = vld [vmem:[%s5490_s1 + $0xd8] sm:$0xff]  ;;  %v570_v17 = vmax.f32 %v150_v50, 0.0  ;;  %v4722_v16 = vld [vmem:[%s5490_s1 + $0xca8] sm:$0xff] }
 0x128   :  { %1739 = vmatmul.mubr.f32.gmra.mxu1 %v4701_v21  ;;  %1888 = vmatmul.mubr.f32.gmra.mxu0 %v4097_v26  ;;  %v4728_v26 = vld [vmem:[%s5491_s0 + $0x188] sm:$0xff] }
 0x129   :  { %2423 = vmatprep.subr.mxu1 %v577_v27  ;;  %2257 = vst [vmem:[%s5492_s2 + $0x120] sm:$0xff] %v1224_v8  ;;  %2106 = vmatpush1.msra.mxu0 %v5504_v62  ;;  %5529 = vst [vmem:[#allocation2_spill] sm:$0xff] %v4728_v26  ;;  %v5510_v27 = vmax.f32 %v4708_v54, 0.0  ;;  %v458_v8 = vmax.f32 %v38_v18, 0.0  ;;  %v143_v62 = vld [vmem:[%s5490_s1 + $0x420] sm:$0xff] }
 0x12a   :  { %2424 = vmatpush3.msra.mxu1 %v465_v37  ;;  %v1066_v59 = vpop.f32.mrf.mxu0  ;;  %2115 = vmatprep.subr.mxu0 %v5512_v19  ;;  %v4733_v50 = vpop.f32.mrf.mxu1  ;;  %v4746_v18 = vld [vmem:[%s5491_s0 + $0x180] sm:$0xff]  ;;  %v563_v43 = vmax.f32 %v143_v62, 0.0 }
 0x12b   :  { %1744 = vmatprep.mubr.f32.mxu1 %v4728_v26  ;;  %v1228_v37 = vadd.f32 %v4623_v6, %v1066_v59  ;;  %2116 = vmatpush2.msra.mxu0 %v5506_v28  ;;  %5530 = vst [vmem:[#allocation3_spill] sm:$0xff] %v4746_v18  ;;  %v5511_v59 = vmax.f32 %v4722_v16, 0.0  ;;  %v4756_v6 = vld [vmem:[%s5490_s1 + $0xc70] sm:$0xff] }
 0x12c   :  { %2379 = vmatprep.mubr.msk.f32.mxu0 %vm915_vm0, %v4122_v4  ;;  %v1068_v29 = vpop.f32.mrf.mxu0  ;;  %2117 = vmatprep.subr.mxu0 %v5512_v19  ;;  %v31_v4 = vld [vmem:[%s5490_s1 + $0xa0] sm:$0xff]  ;;  %5531 = vst [vmem:[#allocation4_spill] sm:$0xff] %v4756_v6  ;;  %v4762_v47 = vpop.f32.mrf.mxu1 }
 0x12d   :  { %1745 = vmatmul.mubr.f32.gmra.mxu1 %v4746_v18  ;;  %2263 = vst [vmem:[%s5492_s2 + $0x150] sm:$0xff] %v1228_v37  ;;  %v1230_v28 = vadd.f32 %v4629_v46, %v1068_v29  ;;  %1894 = vmatmul.mubr.f32.gmra.mxu0 %v4136_v5  ;;  %v4779_v5 = vld [vmem:[%s5491_s0 + $0x1a8] sm:$0xff]  ;;  %v451_v29 = vmax.f32 %v31_v4, 0.0  ;;  %v4801_v4 = vld [vmem:[%s5491_s0 + $0x1a0] sm:$0xff] }
 0x12e   :  { %2425 = vmatprep.subr.mxu1 %v570_v17  ;;  %2118 = vmatpush2.msra.mxu0 %v5510_v27  ;;  %5533 = vst [vmem:[#allocation6_spill] sm:$0xff] %v4779_v5  ;;  %5535 = vst [vmem:[#allocation8_spill] sm:$0xff] %v4801_v4  ;;  %v4807_v27 = vld [vmem:[%s5491_s0 + $0x170] sm:$0xff] }
 0x12f   :  { %2426 = vmatpush3.msra.mxu1 %v458_v8  ;;  %2264 = vst [vmem:[%s5492_s2 + $0x158] sm:$0xff] %v1230_v28  ;;  %2119 = vmatprep.subr.mxu0 %v5512_v19  ;;  %v4783_v17 = vpop.f32.mrf.mxu1  ;;  %v4788_v8 = vld [vmem:[%s5491_s0 + $0x178] sm:$0xff]  ;;  %v136_v28 = vld [vmem:[%s5490_s1 + $0x3e8] sm:$0xff]  ;;  %5536 = vst [vmem:[#allocation9_spill] sm:$0xff] %v4807_v27 }
 0x130   :  { %1750 = vmatprep.mubr.f32.mxu1 %v4779_v5  ;;  %v1072_v62 = vpop.f32.mrf.mxu0  ;;  %5534 = vst [vmem:[#allocation7_spill] sm:$0xff] %v4788_v8  ;;  %2380 = vmatprep.mubr.msk.f32.mxu0 %vm915_vm0, %v4788_v8  ;;  %v556_v8 = vmax.f32 %v136_v28, 0.0  ;;  %v4832_v5 = vld [vmem:[%s5491_s0 + $0x1c8] sm:$0xff] }
 0x131   :  { %2120 = vmatpush2.msra.mxu0 %v5511_v59  ;;  %v1234_v37 = vadd.f32 %v4675_v12, %v1072_v62  ;;  %1751 = vmatmul.mubr.f32.gmra.mxu1 %v4801_v4  ;;  %v24_v12 = vld [vmem:[%s5490_s1 + $0x68] sm:$0xff]  ;;  %v4817_v62 = vld [vmem:[%s5490_s1 + $0xc00] sm:$0xff]  ;;  %v4819_v19 = vpop.f32.mrf.mxu1  ;;  %v5537_v4 = vmov 0.0   ;;  %5539 = vst [vmem:[#allocation10_spill] sm:$0xff] %v4832_v5 }
 0x132   :  { %1900 = vmatmul.mubr.f32.gmra.mxu0 %v4807_v27  ;;  %v1074_v46 = vpop.f32.mrf.mxu0  ;;  %2427 = vmatprep.subr.mxu1 %v563_v43  ;;  %v5538_v27 = vmax.f32 %v4756_v6, 0.0  ;;  %v444_v43 = vmax.f32 %v24_v12, 0.0  ;;  %v4862_v12 = vld [vmem:[%s5491_s0 + $0x1c0] sm:$0xff]  ;;  %v5544_v26 = vmax.f32 %v4817_v62, 0.0 }
 0x133   :  { %2121 = vmatprep.subr.mxu0 %v5537_v4  ;;  %2270 = vst [vmem:[%s5492_s2 + $0x188] sm:$0xff] %v1234_v37  ;;  %v1236_v59 = vadd.f32 %v4695_v48, %v1074_v46  ;;  %2428 = vmatpush3.msra.mxu1 %v451_v29  ;;  %v129_v48 = vld [vmem:[%s5490_s1 + $0x3b0] sm:$0xff]  ;;  %v5541_v29 = vmax.f32 %v4770_v38, 0.0  ;;  %v4854_v46 = vld [vmem:[%s5490_s1 + $0xbc8] sm:$0xff]  ;;  %5542 = vst [vmem:[#allocation12_spill] sm:$0xff] %v4862_v12 }
 0x134   :  { %2122 = vmatpush2.msra.mxu0 %v5538_v27  ;;  %1756 = vmatprep.mubr.f32.mxu1 %v4832_v5  ;;  %v4845_v27 = vld [vmem:[%s5491_s0 + $0x198] sm:$0xff]  ;;  %v4876_v5 = vld [vmem:[%s5490_s1 + $0xb90] sm:$0xff]  ;;  %v5526_v6 = vmax.f32 %v4854_v46, 0.0 }
 0x135   :  { %2123 = vmatprep.subr.mxu0 %v5537_v4  ;;  %2271 = vst [vmem:[%s5492_s2 + $0x190] sm:$0xff] %v1236_v59  ;;  %5540 = vst [vmem:[#allocation11_spill] sm:$0xff] %v4845_v27  ;;  %2381 = vmatprep.mubr.msk.f32.mxu0 %vm915_vm0, %v4845_v27  ;;  %v17_v59 = vld [vmem:[%s5490_s1 + $0x30] sm:$0xff]  ;;  %v1251_v37 = vpop.f32.mrf.mxu1  ;;  %v549_v27 = vmax.f32 %v129_v48, 0.0 }
 0x136   :  { %2124 = vmatpush2.msra.mxu0 %v5541_v29  ;;  %v1078_v28 = vpop.f32.mrf.mxu0  ;;  %1757 = vmatmul.mubr.f32.gmra.mxu1 %v4862_v12  ;;  %v4868_v29 = vld [vmem:[%s5491_s0 + $0x190] sm:$0xff] }
 0x137   :  { %5543 = vst [vmem:[#allocation13_spill] sm:$0xff] %v4868_v29  ;;  %1906 = vmatmul.mubr.f32.gmra.mxu0 %v4868_v29  ;;  %v1240_v18 = vadd.f32 %v4733_v50, %v1078_v28  ;;  %2429 = vmatprep.subr.mxu1 %v556_v8  ;;  %v1253_v12 = vpop.f32.mrf.mxu1  ;;  %v437_v29 = vmax.f32 %v17_v59, 0.0  ;;  %v4888_v8 = vld [vmem:[%s5491_s0 + $0x1e8] sm:$0xff]  ;;  %v4917_v48 = vld [vmem:[%s5491_s0 + $0x1b0] sm:$0xff] }
 0x138   :  { %2125 = vmatprep.subr.mxu0 %v5537_v4  ;;  %v1080_v38 = vpop.f32.mrf.mxu0  ;;  %2430 = vmatpush3.msra.mxu1 %v444_v43 }
 0x139   :  { %2126 = vmatpush2.msra.mxu0 %v5544_v26  ;;  %2277 = vst [vmem:[%s5492_s2 + $0x1c0] sm:$0xff] %v1240_v18  ;;  %v1242_v50 = vadd.f32 %v4762_v47, %v1080_v38  ;;  %1762 = vmatprep.mubr.f32.mxu1 %v4888_v8  ;;  %v4894_v26 = vld [vmem:[%s5491_s0 + $0x1b8] sm:$0xff]  ;;  %v4902_v38 = vld [vmem:[%s5491_s0 + $0x1e0] sm:$0xff] }
 0x13a   :  { %2382 = vmatprep.mubr.msk.f32.mxu0 %vm915_vm0, %v4894_v26  ;;  %2127 = vmatprep.subr.mxu0 %v5537_v4  ;;  %v4909_v18 = vld [vmem:[%s5490_s1 + $0xb58] sm:$0xff] }
 0x13b   :  { %1763 = vmatmul.mubr.f32.gmra.mxu1 %v4902_v38  ;;  %2278 = vst [vmem:[%s5492_s2 + $0x1c8] sm:$0xff] %v1242_v50  ;;  %v1084_v43 = vpop.f32.mrf.mxu0  ;;  %1912 = vmatmul.mubr.f32.gmra.mxu0 %v4917_v48  ;;  %v1257_v28 = vpop.f32.mrf.mxu1  ;;  %v4927_v50 = vld [vmem:[%s5491_s0 + $0x1d8] sm:$0xff] }
 0x13c   :  { %2431 = vmatprep.subr.mxu1 %v549_v27  ;;  %v1246_v59 = vadd.f32 %v4783_v17, %v1084_v43  ;;  %2128 = vmatpush2.msra.mxu0 %v5526_v6  ;;  %v4935_v17 = vld [vmem:[%s5490_s1 + $0xb20] sm:$0xff]  ;;  %v5545_v6 = vmax.f32 %v4876_v5, 0.0  ;;  %v4948_v27 = vld [vmem:[%s5491_s0 + $0x1d0] sm:$0xff] }
 0x13d   :  { %2432 = vmatpush3.msra.mxu1 %v437_v29  ;;  %v1086_v47 = vpop.f32.mrf.mxu0  ;;  %2129 = vmatprep.subr.mxu0 %v5537_v4  ;;  %v1259_v43 = vpop.f32.mrf.mxu1  ;;  %5546 = vst [vmem:[#allocation14_spill] sm:$0xff] %v4948_v27 }
 0x13e   :  { %2383 = vmatprep.mubr.msk.f32.mxu0 %vm915_vm0, %v4927_v50  ;;  %2284 = vst [vmem:[%s5492_s2 + $0x1f8] sm:$0xff] %v1246_v59  ;;  %v1248_v29 = vadd.f32 %v4819_v19, %v1086_v47  ;;  %2130 = vmatpush2.msra.mxu0 %v5545_v6  ;;  %v5547_v47 = vmax.f32 %v4909_v18, 0.0  ;;  %v5548_v59 = vmax.f32 %v4289_v41, 0.0  ;;  %v4977_v19 = vld [vmem:[%s5490_s1 + $0xab0] sm:$0xff] }
 0x13f   :  { %1994 = vmatprep.mubr.f32.mxu1 %v4237_v42  ;;  %2131 = vmatprep.subr.mxu0 %v5537_v4  ;;  %v4960_v42 = vld [vmem:[%s5490_s1 + $0xae8] sm:$0xff]  ;;  %v773_v41 = vmax.f32 %v4977_v19, 0.0 }
 0x140   :  { %1918 = vmatmul.mubr.f32.gmra.mxu0 %v4948_v27  ;;  %2285 = vst [vmem:[%s5492_s2 + $0x200] sm:$0xff] %v1248_v29  ;;  %1995 = vmatmul.mubr.f32.vlgmr.msra.gmra.mxu1 %v4256_v61  ;;  %v4970_v61 = vld [vmem:[%s5491_s0 + $0x1f8] sm:$0xff] }
 0x141   :  { %2481 = vmatprep.subr.mxu1 %v5537_v4  ;;  %v1090_v6 = vpop.f32.mrf.mxu0  ;;  %2132 = vmatpush2.msra.mxu0 %v5547_v47  ;;  %v1263_v29 = vpop.f32.mrf.mxu1  ;;  %5549 = vst [vmem:[#allocation15_spill] sm:$0xff] %v4970_v61 }
 0x142   :  { %2509 = vmatpush1.msra.mxu1 %v5548_v59  ;;  %v1252_v27 = vadd.f32 %v1251_v37, %v1090_v6  ;;  %2133 = vmatprep.subr.mxu0 %v5537_v4  ;;  %v5550_v59 = vmax.f32 %v4935_v17, 0.0 }
 0x143   :  { %2384 = vmatprep.mubr.msk.f32.mxu0 %vm915_vm0, %v4970_v61  ;;  %v1092_v47 = vpop.f32.mrf.mxu0  ;;  %1999 = vmatprep.mubr.f32.mxu1 %v4270_v14  ;;  %v1265_v6 = vpop.f32.mrf.mxu1  ;;  %v4991_v61 = vld [vmem:[%s5491_s0 + $0x1f0] sm:$0xff]  ;;  %v5551_v14 = vmax.f32 %v4306_v1, 0.0 }
 0x144   :  { %2482 = vmatprep.subr.mxu1 %v5537_v4  ;;  %2291 = vst [vmem:[%s5492_s2 + $0x230] sm:$0xff] %v1252_v27  ;;  %v1254_v37 = vadd.f32 %v1253_v12, %v1092_v47  ;;  %2134 = vmatpush2.msra.mxu0 %v5550_v59  ;;  %v5552_v27 = vmax.f32 %v4960_v42, 0.0  ;;  %v5553_v47 = vmax.f32 %v4322_v9, 0.0  ;;  %v2602_v9 = vld [vmem:[%s5491_s0 + $0x18] sm:$0xff] }
 0x145   :  { %2000 = vmatmul.mubr.f32.gmra.mxu1 %v4280_v63  ;;  %1924 = vmatmul.mubr.f32.gmra.mxu0 %v4991_v61 }
 0x146   :  { %2510 = vmatpush1.msra.mxu1 %v5551_v14  ;;  %2292 = vst [vmem:[%s5492_s2 + $0x238] sm:$0xff] %v1254_v37  ;;  %2135 = vmatprep.subr.mxu0 %v5537_v4  ;;  %v1269_v12 = vpop.f32.mrf.mxu1 }
 0x147   :  { %2483 = vmatprep.subr.mxu1 %v5537_v4  ;;  %v1096_v63 = vpop.f32.mrf.mxu0  ;;  %2136 = vmatpush2.msra.mxu0 %v5552_v27 }
 0x148   :  { %2511 = vmatpush1.msra.mxu1 %v5553_v47  ;;  %v1258_v1 = vadd.f32 %v1257_v28, %v1096_v63  ;;  %2137 = vmatprep.subr.mxu0 %v5537_v4  ;;  %v1271_v14 = vpop.f32.mrf.mxu1  ;;  %v2603_v28 = vld [vmem:[%s5491_s0 + $0x10] sm:$0xff] }
 0x149   :  { %2004 = vmatprep.mubr.f32.mxu1 %v4294_v44  ;;  %v1098_v59 = vpop.f32.mrf.mxu0  ;;  %2484 = vmatprep.subr.mxu1 %v5537_v4  ;;  %v5554_v44 = vmax.f32 %v4349_v7, 0.0  ;;  %v2604_v7 = vld [vmem:[%s5491_s0 + $0x38] sm:$0xff] }
 0x14a   :  { %2138 = vmatpush2.msra.mxu0 %v773_v41  ;;  %2298 = vst [vmem:[%s5492_s2 + $0x268] sm:$0xff] %v1258_v1  ;;  %v1260_v37 = vadd.f32 %v1259_v43, %v1098_v59  ;;  %2385 = vmatprep.mubr.msk.f32.mxu0 %vm915_vm0, %v2602_v9 }
 0x14b   :  { %2005 = vmatmul.mubr.f32.gmra.mxu1 %v4314_v49  ;;  %2140 = vmatmul.mubr.f32.vlgmr.msra.gmra.mxu0 %v2603_v28  ;;  %v5555_v49 = vmax.f32 %v4360_v56, 0.0  ;;  %v5556_v56 = vmax.f32 %v4391_v11, 0.0 }
 0x14c   :  { %2512 = vmatpush1.msra.mxu1 %v5554_v44  ;;  %2299 = vst [vmem:[%s5492_s2 + $0x270] sm:$0xff] %v1260_v37  ;;  %2009 = vmatprep.mubr.f32.mxu1 %v4330_v22  ;;  %v1275_v63 = vpop.f32.mrf.mxu1  ;;  %v2605_v22 = vld [vmem:[%s5491_s0 + $0x30] sm:$0xff]  ;;  %v5558_v37 = vmax.f32 %v4437_v36, 0.0  ;;  %v2608_v44 = vld [vmem:[%s5491_s0 + $0x78] sm:$0xff]  ;;  %v5559_v36 = vmax.f32 %v4465_v3, 0.0 }
 0x14d   :  { %2485 = vmatprep.subr.mxu1 %v5537_v4  ;;  %v1102_v43 = vpop.f32.mrf.mxu0  ;;  %2386 = vmatprep.mubr.msk.f32.mxu0 %vm915_vm0, %v2604_v7 }
 0x14e   :  { %2513 = vmatpush1.msra.mxu1 %v5555_v49  ;;  %v1264_v27 = vadd.f32 %v1263_v29, %v1102_v43  ;;  %v1277_v1 = vpop.f32.mrf.mxu1  ;;  %v2606_v29 = vld [vmem:[%s5491_s0 + $0x58] sm:$0xff]  ;;  %v5561_v49 = vmax.f32 %v4519_v2, 0.0  ;;  %v5562_v2 = vmax.f32 %v4536_v53, 0.0  ;;  %v2613_v53 = vld [vmem:[%s5491_s0 + $0xb0] sm:$0xff] }
 0x14f   :  { %2010 = vmatmul.mubr.f32.gmra.mxu1 %v4342_v25  ;;  %2486 = vmatprep.subr.mxu1 %v5537_v4  ;;  %v1104_v47 = vpop.f32.mrf.mxu0  ;;  %v5557_v25 = vmax.f32 %v4401_v23, 0.0  ;;  %v2607_v23 = vld [vmem:[%s5491_s0 + $0x50] sm:$0xff]  ;;  %v2610_v43 = vld [vmem:[%s5491_s0 + $0x98] sm:$0xff] }
 0x150   :  { %2145 = vmatmul.mubr.f32.gmra.mxu0 %v2605_v22  ;;  %2514 = vmatpush1.msra.mxu1 %v5556_v56  ;;  %2305 = vst [vmem:[%s5492_s2 + $0x2a0] sm:$0xff] %v1264_v27  ;;  %v1266_v59 = vadd.f32 %v1265_v6, %v1104_v47 }
 0x151   :  { %2487 = vmatprep.subr.mxu1 %v5537_v4  ;;  %2014 = vmatprep.mubr.f32.mxu1 %v4366_v52 }
 0x152   :  { %2515 = vmatpush1.msra.mxu1 %v5557_v25  ;;  %2387 = vmatprep.mubr.msk.f32.mxu0 %vm915_vm0, %v2606_v29  ;;  %2306 = vst [vmem:[%s5492_s2 + $0x2a8] sm:$0xff] %v1266_v59  ;;  %v1108_v11 = vpop.f32.mrf.mxu0  ;;  %v1281_v52 = vpop.f32.mrf.mxu1  ;;  %v5564_v59 = vmax.f32 %v4583_v58, 0.0  ;;  %v2614_v25 = vld [vmem:[%s5491_s0 + $0xd8] sm:$0xff]  ;;  %v5565_v58 = vmax.f32 %v4621_v40, 0.0  ;;  %v2617_v40 = vld [vmem:[%s5491_s0 + $0xf0] sm:$0xff] }
 0x153   :  { %2015 = vmatmul.mubr.f32.gmra.mxu1 %v4381_v10  ;;  %2488 = vmatprep.subr.mxu1 %v5537_v4  ;;  %v1270_v6 = vadd.f32 %v1269_v12, %v1108_v11  ;;  %v2616_v11 = vld [vmem:[%s5491_s0 + $0xf8] sm:$0xff] }
 0x154   :  { %2150 = vmatmul.mubr.f32.gmra.mxu0 %v2607_v23  ;;  %2516 = vmatpush1.msra.mxu1 %v5558_v37  ;;  %v1110_v9 = vpop.f32.mrf.mxu0  ;;  %v1283_v12 = vpop.f32.mrf.mxu1  ;;  %v5567_v37 = vmax.f32 %v4672_v31, 0.0 }
 0x155   :  { %2019 = vmatprep.mubr.f32.mxu1 %v4407_v33  ;;  %2489 = vmatprep.subr.mxu1 %v5537_v4  ;;  %2312 = vst [vmem:[%s5492_s2 + $0x2d8] sm:$0xff] %v1270_v6  ;;  %v1272_v10 = vadd.f32 %v1271_v14, %v1110_v9  ;;  %v2609_v33 = vld [vmem:[%s5491_s0 + $0x70] sm:$0xff]  ;;  %v5560_v14 = vmax.f32 %v4486_v34, 0.0  ;;  %v5566_v6 = vmax.f32 %v4653_v45, 0.0  ;;  %v2618_v45 = vld [vmem:[%s5491_s0 + $0x118] sm:$0xff]  ;;  %v5568_v9 = vmax.f32 %v4708_v54, 0.0 }
 0x156   :  { %2388 = vmatprep.mubr.msk.f32.mxu0 %vm915_vm0, %v2608_v44  ;;  %2517 = vmatpush1.msra.mxu1 %v5559_v36  ;;  %v5569_v36 = vmax.f32 %v4722_v16, 0.0  ;;  %v2620_v54 = vld [vmem:[%s5491_s0 + $0x138] sm:$0xff]  ;;  %v2621_v16 = vld [vmem:[%s5491_s0 + $0x130] sm:$0xff] }
 0x157   :  { %2020 = vmatmul.mubr.f32.gmra.mxu1 %v4426_v24  ;;  %2490 = vmatprep.subr.mxu1 %v5537_v4  ;;  %2313 = vst [vmem:[%s5492_s2 + $0x2e0] sm:$0xff] %v1272_v10 }
 0x158   :  { %2155 = vmatmul.mubr.f32.gmra.mxu0 %v2609_v33  ;;  %2518 = vmatpush1.msra.mxu1 %v5560_v14  ;;  %v1114_v28 = vpop.f32.mrf.mxu0  ;;  %v1352_v3 = vpop.f32.mrf.mxu1  ;;  %v5570_v33 = vld [vmem:[#allocation4_spill] sm:$0xff] }
 0x159   :  { %2024 = vmatprep.mubr.f32.mxu1 %v4451_v60  ;;  %2491 = vmatprep.subr.mxu1 %v5537_v4  ;;  %v1276_v24 = vadd.f32 %v1275_v63, %v1114_v28  ;;  %v2611_v63 = vld [vmem:[%s5491_s0 + $0x90] sm:$0xff]  ;;  %v5571_v14 = vmax.f32 %v5570_v33, 0.0 }
 0x15a   :  { %2389 = vmatprep.mubr.msk.f32.mxu0 %vm915_vm0, %v2610_v43  ;;  %2519 = vmatpush1.msra.mxu1 %v5561_v49  ;;  %v1116_v7 = vpop.f32.mrf.mxu0  ;;  %v1354_v34 = vpop.f32.mrf.mxu1  ;;  %v5573_v43 = vld [vmem:[#allocation5_spill] sm:$0xff] }
 0x15b   :  { %2025 = vmatmul.mubr.f32.gmra.mxu1 %v4478_v32  ;;  %2492 = vmatprep.subr.mxu1 %v5537_v4  ;;  %2319 = vst [vmem:[%s5492_s2 + $0x310] sm:$0xff] %v1276_v24  ;;  %v1278_v60 = vadd.f32 %v1277_v1, %v1116_v7  ;;  %v2612_v32 = vld [vmem:[%s5491_s0 + $0xb8] sm:$0xff]  ;;  %v5563_v1 = vmax.f32 %v4572_v51, 0.0  ;;  %v5572_v24 = vld [vmem:[#allocation2_spill] sm:$0xff]  ;;  %v5574_v49 = vmax.f32 %v5573_v43, 0.0 }
 0x15c   :  { %2160 = vmatmul.mubr.f32.gmra.mxu0 %v2611_v63  ;;  %2029 = vmatprep.mubr.f32.mxu1 %v4497_v15  ;;  %v2622_v7 = vld [vmem:[%s5491_s0 + $0x158] sm:$0xff] }
 0x15d   :  { %2520 = vmatpush1.msra.mxu1 %v5562_v2  ;;  %2390 = vmatprep.mubr.msk.f32.mxu0 %vm915_vm0, %v2612_v32  ;;  %2320 = vst [vmem:[%s5492_s2 + $0x318] sm:$0xff] %v1278_v60  ;;  %v1120_v27 = vpop.f32.mrf.mxu0  ;;  %v2623_v2 = vld [vmem:[%s5491_s0 + $0x150] sm:$0xff]  ;;  %v5576_v32 = vmax.f32 %v4817_v62, 0.0 }
 0x15e   :  { %2493 = vmatprep.subr.mxu1 %v5537_v4  ;;  %v1358_v47 = vpop.f32.mrf.mxu1  ;;  %v1282_v15 = vadd.f32 %v1281_v52, %v1120_v27  ;;  %v5577_v27 = vld [vmem:[#allocation6_spill] sm:$0xff] }
 0x15f   :  { %2030 = vmatmul.mubr.f32.gmra.mxu1 %v4512_v0  ;;  %v1122_v22 = vpop.f32.mrf.mxu0 }
 0x160   :  { %2165 = vmatmul.mubr.f32.gmra.mxu0 %v2613_v53  ;;  %2521 = vmatpush1.msra.mxu1 %v5563_v1  ;;  %v1360_v56 = vpop.f32.mrf.mxu1  ;;  %2326 = vst [vmem:[%s5492_s2 + $0x348] sm:$0xff] %v1282_v15  ;;  %v1284_v0 = vadd.f32 %v1283_v12, %v1122_v22  ;;  %v2619_v12 = vld [vmem:[%s5491_s0 + $0x110] sm:$0xff]  ;;  %v5578_v53 = vld [vmem:[#allocation7_spill] sm:$0xff]  ;;  %v5579_v1 = vmax.f32 %v4854_v46, 0.0 }
 0x161   :  { %2494 = vmatprep.subr.mxu1 %v5537_v4  ;;  %2034 = vmatprep.mubr.f32.mxu1 %v4542_v20  ;;  %v2615_v20 = vld [vmem:[%s5491_s0 + $0xd0] sm:$0xff]  ;;  %v5584_v46 = vld [vmem:[#allocation11_spill] sm:$0xff] }
 0x162   :  { %2522 = vmatpush1.msra.mxu1 %v5564_v59  ;;  %2391 = vmatprep.mubr.msk.f32.mxu0 %vm915_vm0, %v2614_v25  ;;  %2327 = vst [vmem:[%s5492_s2 + $0x350] sm:$0xff] %v1284_v0  ;;  %v5581_v59 = vld [vmem:[#allocation9_spill] sm:$0xff]  ;;  %v5582_v25 = vmax.f32 %v4876_v5, 0.0  ;;  %v5586_v5 = vld [vmem:[#allocation12_spill] sm:$0xff] }
 0x163   :  { %2035 = vmatmul.mubr.f32.gmra.mxu1 %v4562_v30  ;;  %2495 = vmatprep.subr.mxu1 %v5537_v4  ;;  %v1513_v29 = vpop.f32.mrf.mxu0 }
 0x164   :  { %2170 = vmatmul.mubr.f32.gmra.mxu0 %v2615_v20  ;;  %2523 = vmatpush1.msra.mxu1 %v5565_v58  ;;  %v1364_v51 = vpop.f32.mrf.mxu1  ;;  %v1514_v30 = vadd.f32 %v1513_v29, %v1352_v3  ;;  %v5583_v58 = vld [vmem:[#allocation10_spill] sm:$0xff] }
 0x165   :  { %2039 = vmatprep.mubr.f32.mxu1 %v4593_v57  ;;  %2496 = vmatprep.subr.mxu1 %v5537_v4  ;;  %v1515_v23 = vpop.f32.mrf.mxu0 }
 0x166   :  { %2392 = vmatprep.mubr.msk.f32.mxu0 %vm915_vm0, %v2616_v11  ;;  %2524 = vmatpush1.msra.mxu1 %v5566_v6  ;;  %v1366_v52 = vpop.f32.mrf.mxu1  ;;  %2222 = vst [vmem:[%s5492_s2 + $0x10] sm:$0xff] %v1514_v30  ;;  %v1516_v57 = vadd.f32 %v1515_v23, %v1354_v34  ;;  %v5575_v34 = vld [vmem:[#allocation3_spill] sm:$0xff]  ;;  %v5587_v11 = vld [vmem:[#allocation13_spill] sm:$0xff] }
 0x167   :  { %2040 = vmatmul.mubr.f32.gmra.mxu1 %v4610_v13  ;;  %2497 = vmatprep.subr.mxu1 %v5537_v4 }
 0x168   :  { %2175 = vmatmul.mubr.f32.gmra.mxu0 %v2617_v40  ;;  %2525 = vmatpush2.msra.mxu1 %v5567_v37  ;;  %2223 = vst [vmem:[%s5492_s2 + $0x18] sm:$0xff] %v1516_v57  ;;  %v5591_v37 = vld [vmem:[#allocation14_spill] sm:$0xff] }
 0x169   :  { %2044 = vmatprep.mubr.f32.mxu1 %v4635_v35  ;;  %2498 = vmatprep.subr.mxu1 %v5537_v4  ;;  %v1370_v13 = vpop.f32.mrf.mxu1  ;;  %v1519_v31 = vpop.f32.mrf.mxu0 }
 0x16a   :  { %2393 = vmatprep.mubr.msk.f32.mxu0 %vm915_vm0, %v2618_v45  ;;  %2526 = vmatpush2.msra.mxu1 %v5568_v9  ;;  %v1520_v35 = vadd.f32 %v1519_v31, %v1358_v47 }
 0x16b   :  { %2045 = vmatmul.mubr.f32.gmra.mxu1 %v4661_v55  ;;  %2499 = vmatprep.subr.mxu1 %v5537_v4  ;;  %v1372_v10 = vpop.f32.mrf.mxu1  ;;  %v1521_v44 = vpop.f32.mrf.mxu0 }
 0x16c   :  { %2180 = vmatmul.mubr.f32.gmra.mxu0 %v2619_v12  ;;  %2049 = vmatprep.mubr.f32.mxu1 %v4683_v39  ;;  %2230 = vst [vmem:[%s5492_s2 + $0x48] sm:$0xff] %v1520_v35  ;;  %v1522_v55 = vadd.f32 %v1521_v44, %v1360_v56  ;;  %v5580_v56 = vld [vmem:[#allocation8_spill] sm:$0xff] }
 0x16d   :  { %2527 = vmatpush2.msra.mxu1 %v5569_v36  ;;  %2394 = vmatprep.mubr.msk.f32.mxu0 %vm915_vm0, %v2620_v54 }
 0x16e   :  { %2500 = vmatprep.subr.mxu1 %v5537_v4  ;;  %2231 = vst [vmem:[%s5492_s2 + $0x50] sm:$0xff] %v1522_v55 }
 0x16f   :  { %2050 = vmatmul.mubr.f32.gmra.mxu1 %v4701_v21  ;;  %v1376_v39 = vpop.f32.mrf.mxu1  ;;  %v1525_v28 = vpop.f32.mrf.mxu0 }
 0x170   :  { %2185 = vmatmul.mubr.f32.gmra.mxu0 %v2621_v16  ;;  %2528 = vmatpush2.msra.mxu1 %v5571_v14  ;;  %v1526_v3 = vadd.f32 %v1525_v28, %v1364_v51  ;;  %v5585_v51 = vmax.f32 %v4909_v18, 0.0 }
 0x171   :  { %2501 = vmatprep.subr.mxu1 %v5537_v4  ;;  %2054 = vmatprep.mubr.f32.mxu1 %v5572_v24  ;;  %v1378_v21 = vpop.f32.mrf.mxu1  ;;  %v1527_v60 = vpop.f32.mrf.mxu0 }
 0x172   :  { %2529 = vmatpush2.msra.mxu1 %v5574_v49  ;;  %2395 = vmatprep.mubr.msk.f32.mxu0 %vm915_vm0, %v2622_v7  ;;  %2237 = vst [vmem:[%s5492_s2 + $0x80] sm:$0xff] %v1526_v3  ;;  %v1528_v63 = vadd.f32 %v1527_v60, %v1366_v52  ;;  %v5588_v52 = vmax.f32 %v4935_v17, 0.0 }
 0x173   :  { %2055 = vmatmul.mubr.f32.gmra.mxu1 %v5575_v34  ;;  %2502 = vmatprep.subr.mxu1 %v5537_v4 }
 0x174   :  { %2190 = vmatmul.mubr.f32.gmra.mxu0 %v2623_v2  ;;  %2530 = vmatpush2.msra.mxu1 %v5576_v32  ;;  %2238 = vst [vmem:[%s5492_s2 + $0x88] sm:$0xff] %v1528_v63  ;;  %v1382_v47 = vpop.f32.mrf.mxu1 }
 0x175   :  { %2059 = vmatprep.mubr.f32.mxu1 %v5577_v27  ;;  %2503 = vmatprep.subr.mxu1 %v5537_v4  ;;  %v1531_v15 = vpop.f32.mrf.mxu0 }
 0x176   :  { %2396 = vmatprep.mubr.msk.f32.mxu0 %vm915_vm0, %v5578_v53  ;;  %2531 = vmatpush2.msra.mxu1 %v5579_v1  ;;  %v1532_v22 = vadd.f32 %v1531_v15, %v1370_v13  ;;  %v1384_v62 = vpop.f32.mrf.mxu1 }
 0x177   :  { %2060 = vmatmul.mubr.f32.gmra.mxu1 %v5580_v56  ;;  %2504 = vmatprep.subr.mxu1 %v5537_v4  ;;  %v1533_v0 = vpop.f32.mrf.mxu0 }
 0x178   :  { %2195 = vmatmul.mubr.f32.gmra.mxu0 %v5581_v59  ;;  %2532 = vmatpush2.msra.mxu1 %v5582_v25  ;;  %2244 = vst [vmem:[%s5492_s2 + $0xb8] sm:$0xff] %v1532_v22  ;;  %v1534_v20 = vadd.f32 %v1533_v0, %v1372_v10 }
 0x179   :  { %2064 = vmatprep.mubr.f32.mxu1 %v5583_v58  ;;  %2505 = vmatprep.subr.mxu1 %v5537_v4 }
 0x17a   :  { %2397 = vmatprep.mubr.msk.f32.mxu0 %vm915_vm0, %v5584_v46  ;;  %2533 = vmatpush2.msra.mxu1 %v5585_v51  ;;  %2245 = vst [vmem:[%s5492_s2 + $0xc0] sm:$0xff] %v1534_v20  ;;  %v1388_v29 = vpop.f32.mrf.mxu1 }
 0x17b   :  { %2065 = vmatmul.mubr.f32.gmra.mxu1 %v5586_v5  ;;  %2506 = vmatprep.subr.mxu1 %v5537_v4  ;;  %v1537_v30 = vpop.f32.mrf.mxu0 }
 0x17c   :  { %2200 = vmatmul.mubr.f32.gmra.mxu0 %v5587_v11  ;;  %2069 = vmatprep.mubr.f32.mxu1 %v4888_v8  ;;  %v1538_v6 = vadd.f32 %v1537_v30, %v1376_v39  ;;  %v1390_v18 = vpop.f32.mrf.mxu1  ;;  %v5589_v8 = vmax.f32 %v4960_v42, 0.0 }
 0x17d   :  { %2534 = vmatpush2.msra.mxu1 %v5588_v52  ;;  %2398 = vmatprep.mubr.msk.f32.mxu0 %vm915_vm0, %v4894_v26  ;;  %v1539_v23 = vpop.f32.mrf.mxu0 }
 0x17e   :  { %2507 = vmatprep.subr.mxu1 %v5537_v4  ;;  %2251 = vst [vmem:[%s5492_s2 + $0xf0] sm:$0xff] %v1538_v6  ;;  %v1540_v57 = vadd.f32 %v1539_v23, %v1378_v21 }
 0x17f   :  { %2070 = vmatmul.mubr.f32.gmra.mxu1 %v4902_v38  ;;  %v5590_v38 = vld [vmem:[#allocation15_spill] sm:$0xff] }
 0x180   :  { %2205 = vmatmul.mubr.f32.gmra.mxu0 %v4917_v48  ;;  %2535 = vmatpush2.msra.mxu1 %v5589_v8  ;;  %2252 = vst [vmem:[%s5492_s2 + $0xf8] sm:$0xff] %v1540_v57  ;;  %v1394_v26 = vpop.f32.mrf.mxu1  ;;  %v1543_v17 = vpop.f32.mrf.mxu0 }
 0x181   :  { %2508 = vmatprep.subr.mxu1 %v5537_v4  ;;  %2399 = vmatprep.mubr.msk.f32.mxu0 %vm915_vm0, %v4927_v50  ;;  %v1544_v48 = vadd.f32 %v1543_v17, %v1382_v47 }
 0x182   :  { %2536 = vmatpush2.msra.mxu1 %v773_v41  ;;  %2400 = vmatprep.mubr.msk.f32.mxu1 %vm915_vm0, %v5590_v38  ;;  %v1396_v42 = vpop.f32.mrf.mxu1  ;;  %v1545_v40 = vpop.f32.mrf.mxu0 }
 0x183   :  { %2215 = vmatmul.mubr.f32.vlgmr.msra.gmra.mxu1 %v4991_v61  ;;  %2258 = vst [vmem:[%s5492_s2 + $0x128] sm:$0xff] %v1544_v48  ;;  %v1546_v4 = vadd.f32 %v1545_v40, %v1384_v62 }
 0x184   :  { %2210 = vmatmul.mubr.f32.gmra.mxu0 %v5591_v37 }
 0x185   :  { %2259 = vst [vmem:[%s5492_s2 + $0x130] sm:$0xff] %v1546_v4 }
 0x186   :  { %v1400_v50 = vpop.f32.mrf.mxu1  ;;  %v1549_v19 = vpop.f32.mrf.mxu0 }
 0x187   :  { %v1550_v41 = vadd.f32 %v1549_v19, %v1388_v29 }
 0x188   :  { %v1402_v13 = vpop.f32.mrf.mxu1  ;;  %v1551_v45 = vpop.f32.mrf.mxu0 }
 0x189   :  { %2265 = vst [vmem:[%s5492_s2 + $0x160] sm:$0xff] %v1550_v41  ;;  %v1552_v61 = vadd.f32 %v1551_v45, %v1390_v18 }
 0x18b   :  { %2266 = vst [vmem:[%s5492_s2 + $0x168] sm:$0xff] %v1552_v61  ;;  %v1406_v9 = vpop.f32.mrf.mxu1 }
 0x18c   :  { %v1555_v31 = vpop.f32.mrf.mxu0 }
 0x18d   :  { %v1556_v35 = vadd.f32 %v1555_v31, %v1394_v26  ;;  %v1408_v10 = vpop.f32.mrf.mxu1 }
 0x18e   :  { %v1557_v12 = vpop.f32.mrf.mxu0 }
 0x18f   :  { %2272 = vst [vmem:[%s5492_s2 + $0x198] sm:$0xff] %v1556_v35  ;;  %v1558_v44 = vadd.f32 %v1557_v12, %v1396_v42 }
 0x191   :  { %2273 = vst [vmem:[%s5492_s2 + $0x1a0] sm:$0xff] %v1558_v44  ;;  %v1412_v36 = vpop.f32.mrf.mxu1 }
 0x192   :  { %v1561_v54 = vpop.f32.mrf.mxu0 }
 0x193   :  { %v1562_v55 = vadd.f32 %v1561_v54, %v1400_v50  ;;  %v1414_v39 = vpop.f32.mrf.mxu1 }
 0x194   :  { %v1563_v16 = vpop.f32.mrf.mxu0 }
 0x195   :  { %2279 = vst [vmem:[%s5492_s2 + $0x1d0] sm:$0xff] %v1562_v55  ;;  %v1564_v33 = vadd.f32 %v1563_v16, %v1402_v13 }
 0x197   :  { %2280 = vst [vmem:[%s5492_s2 + $0x1d8] sm:$0xff] %v1564_v33  ;;  %v1418_v14 = vpop.f32.mrf.mxu1  ;;  %v1567_v28 = vpop.f32.mrf.mxu0 }
 0x198   :  { %v1568_v24 = vadd.f32 %v1567_v28, %v1406_v9 }
 0x199   :  { %v1420_v3 = vpop.f32.mrf.mxu1  ;;  %v1569_v21 = vpop.f32.mrf.mxu0 }
 0x19a   :  { %2286 = vst [vmem:[%s5492_s2 + $0x208] sm:$0xff] %v1568_v24  ;;  %v1570_v43 = vadd.f32 %v1569_v21, %v1408_v10 }
 0x19c   :  { %2287 = vst [vmem:[%s5492_s2 + $0x210] sm:$0xff] %v1570_v43 }
 0x19d   :  { %v1424_v49 = vpop.f32.mrf.mxu1  ;;  %v1573_v7 = vpop.f32.mrf.mxu0 }
 0x19e   :  { %v1574_v60 = vadd.f32 %v1573_v7, %v1412_v36 }
 0x19f   :  { %v1426_v34 = vpop.f32.mrf.mxu1  ;;  %v1575_v63 = vpop.f32.mrf.mxu0 }
 0x1a0   :  { %2293 = vst [vmem:[%s5492_s2 + $0x240] sm:$0xff] %v1574_v60  ;;  %v1576_v2 = vadd.f32 %v1575_v63, %v1414_v39 }
 0x1a2   :  { %2294 = vst [vmem:[%s5492_s2 + $0x248] sm:$0xff] %v1576_v2  ;;  %v1430_v32 = vpop.f32.mrf.mxu1 }
 0x1a3   :  { %v1579_v27 = vpop.f32.mrf.mxu0 }
 0x1a4   :  { %v1580_v47 = vadd.f32 %v1579_v27, %v1418_v14  ;;  %v1432_v15 = vpop.f32.mrf.mxu1 }
 0x1a5   :  { %v1581_v53 = vpop.f32.mrf.mxu0 }
 0x1a6   :  { %2300 = vst [vmem:[%s5492_s2 + $0x278] sm:$0xff] %v1580_v47  ;;  %v1582_v1 = vadd.f32 %v1581_v53, %v1420_v3 }
 0x1a8   :  { %2301 = vst [vmem:[%s5492_s2 + $0x280] sm:$0xff] %v1582_v1  ;;  %v1436_v22 = vpop.f32.mrf.mxu1 }
 0x1a9   :  { %v1585_v56 = vpop.f32.mrf.mxu0 }
 0x1aa   :  { %v1586_v62 = vadd.f32 %v1585_v56, %v1424_v49  ;;  %v1438_v0 = vpop.f32.mrf.mxu1 }
 0x1ab   :  { %v1587_v59 = vpop.f32.mrf.mxu0 }
 0x1ac   :  { %2307 = vst [vmem:[%s5492_s2 + $0x2b0] sm:$0xff] %v1586_v62  ;;  %v1588_v25 = vadd.f32 %v1587_v59, %v1426_v34 }
 0x1ae   :  { %2308 = vst [vmem:[%s5492_s2 + $0x2b8] sm:$0xff] %v1588_v25  ;;  %v1442_v20 = vpop.f32.mrf.mxu1  ;;  %v1591_v58 = vpop.f32.mrf.mxu0 }
 0x1af   :  { %v1592_v46 = vadd.f32 %v1591_v58, %v1430_v32 }
 0x1b0   :  { %v1444_v51 = vpop.f32.mrf.mxu1  ;;  %v1593_v5 = vpop.f32.mrf.mxu0 }
 0x1b1   :  { %2314 = vst [vmem:[%s5492_s2 + $0x2e8] sm:$0xff] %v1592_v46  ;;  %v1594_v29 = vadd.f32 %v1593_v5, %v1432_v15 }
 0x1b3   :  { %2315 = vst [vmem:[%s5492_s2 + $0x2f0] sm:$0xff] %v1594_v29 }
 0x1b4   :  { %v1597_v30 = vpop.f32.mrf.mxu0  ;;  %v1674_v6 = vpop.f32.mrf.mxu1 }
 0x1b5   :  { %v1598_v11 = vadd.f32 %v1597_v30, %v1436_v22 }
 0x1b6   :  { %v1599_v52 = vpop.f32.mrf.mxu0  ;;  %v1676_v23 = vpop.f32.mrf.mxu1 }
 0x1b7   :  { %2321 = vst [vmem:[%s5492_s2 + $0x320] sm:$0xff] %v1598_v11  ;;  %v1600_v18 = vadd.f32 %v1599_v52, %v1438_v0 }
 0x1b8   :  { %v1680_v8 = vpop.f32.mrf.mxu1 }
 0x1b9   :  { %2322 = vst [vmem:[%s5492_s2 + $0x328] sm:$0xff] %v1600_v18  ;;  %v1603_v57 = vpop.f32.mrf.mxu0 }
 0x1ba   :  { %v1604_v26 = vadd.f32 %v1603_v57, %v1442_v20  ;;  %v1682_v38 = vpop.f32.mrf.mxu1 }
 0x1bb   :  { %v1605_v17 = vpop.f32.mrf.mxu0 }
 0x1bc   :  { %2328 = vst [vmem:[%s5492_s2 + $0x358] sm:$0xff] %v1604_v26  ;;  %v1606_v48 = vadd.f32 %v1605_v17, %v1444_v51 }
 0x1bd   :  { %v1686_v42 = vpop.f32.mrf.mxu1 }
 0x1be   :  { %2329 = vst [vmem:[%s5492_s2 + $0x360] sm:$0xff] %v1606_v48  ;;  %v1835_v40 = vpop.f32.mrf.mxu0 }
 0x1bf   :  { %v1836_v37 = vadd.f32 %v1835_v40, %v1674_v6  ;;  %v1688_v4 = vpop.f32.mrf.mxu1 }
 0x1c0   :  { %v1837_v50 = vpop.f32.mrf.mxu0 }
 0x1c1   :  { %2224 = vst [vmem:[%s5492_s2 + $0x20] sm:$0xff] %v1836_v37  ;;  %v1838_v19 = vadd.f32 %v1837_v50, %v1676_v23 }
 0x1c2   :  { %v1692_v41 = vpop.f32.mrf.mxu1  ;;  %v1841_v13 = vpop.f32.mrf.mxu0 }
 0x1c3   :  { %2225 = vst [vmem:[%s5492_s2 + $0x28] sm:$0xff] %v1838_v19  ;;  %v1842_v45 = vadd.f32 %v1841_v13, %v1680_v8 }
 0x1c4   :  { %v1694_v61 = vpop.f32.mrf.mxu1  ;;  %v1843_v9 = vpop.f32.mrf.mxu0 }
 0x1c5   :  { %2232 = vst [vmem:[%s5492_s2 + $0x58] sm:$0xff] %v1842_v45  ;;  %v1844_v31 = vadd.f32 %v1843_v9, %v1682_v38 }
 0x1c7   :  { %v1698_v35 = vpop.f32.mrf.mxu1  ;;  %2233 = vst [vmem:[%s5492_s2 + $0x60] sm:$0xff] %v1844_v31  ;;  %v1847_v10 = vpop.f32.mrf.mxu0 }
 0x1c8   :  { %v1848_v12 = vadd.f32 %v1847_v10, %v1686_v42 }
 0x1c9   :  { %v1700_v44 = vpop.f32.mrf.mxu1  ;;  %v1849_v36 = vpop.f32.mrf.mxu0 }
 0x1ca   :  { %2239 = vst [vmem:[%s5492_s2 + $0x90] sm:$0xff] %v1848_v12  ;;  %v1850_v54 = vadd.f32 %v1849_v36, %v1688_v4 }
 0x1cb   :  { %v1704_v55 = vpop.f32.mrf.mxu1 }
 0x1cc   :  { %v1853_v39 = vpop.f32.mrf.mxu0  ;;  %2240 = vst [vmem:[%s5492_s2 + $0x98] sm:$0xff] %v1850_v54 }
 0x1cd   :  { %v1854_v16 = vadd.f32 %v1853_v39, %v1692_v41  ;;  %v1706_v33 = vpop.f32.mrf.mxu1 }
 0x1ce   :  { %v1855_v14 = vpop.f32.mrf.mxu0 }
 0x1cf   :  { %2246 = vst [vmem:[%s5492_s2 + $0xc8] sm:$0xff] %v1854_v16  ;;  %v1856_v28 = vadd.f32 %v1855_v14, %v1694_v61 }
 0x1d0   :  { %v1710_v24 = vpop.f32.mrf.mxu1 }
 0x1d1   :  { %2247 = vst [vmem:[%s5492_s2 + $0xd0] sm:$0xff] %v1856_v28  ;;  %v1859_v3 = vpop.f32.mrf.mxu0 }
 0x1d2   :  { %v1860_v21 = vadd.f32 %v1859_v3, %v1698_v35  ;;  %v1712_v43 = vpop.f32.mrf.mxu1 }
 0x1d3   :  { %v1861_v49 = vpop.f32.mrf.mxu0 }
 0x1d4   :  { %2253 = vst [vmem:[%s5492_s2 + $0x100] sm:$0xff] %v1860_v21  ;;  %v1862_v7 = vadd.f32 %v1861_v49, %v1700_v44 }
 0x1d5   :  { %v1716_v60 = vpop.f32.mrf.mxu1  ;;  %v1865_v34 = vpop.f32.mrf.mxu0 }
 0x1d6   :  { %2254 = vst [vmem:[%s5492_s2 + $0x108] sm:$0xff] %v1862_v7  ;;  %v1866_v63 = vadd.f32 %v1865_v34, %v1704_v55 }
 0x1d7   :  { %v1718_v2 = vpop.f32.mrf.mxu1  ;;  %v1867_v32 = vpop.f32.mrf.mxu0 }
 0x1d8   :  { %2260 = vst [vmem:[%s5492_s2 + $0x138] sm:$0xff] %v1866_v63  ;;  %v1868_v27 = vadd.f32 %v1867_v32, %v1706_v33 }
 0x1da   :  { %v1722_v47 = vpop.f32.mrf.mxu1  ;;  %2261 = vst [vmem:[%s5492_s2 + $0x140] sm:$0xff] %v1868_v27  ;;  %v1871_v15 = vpop.f32.mrf.mxu0 }
 0x1db   :  { %v1872_v53 = vadd.f32 %v1871_v15, %v1710_v24 }
 0x1dc   :  { %v1724_v1 = vpop.f32.mrf.mxu1  ;;  %v1873_v22 = vpop.f32.mrf.mxu0 }
 0x1dd   :  { %2267 = vst [vmem:[%s5492_s2 + $0x170] sm:$0xff] %v1872_v53  ;;  %v1874_v56 = vadd.f32 %v1873_v22, %v1712_v43 }
 0x1de   :  { %v1728_v62 = vpop.f32.mrf.mxu1 }
 0x1df   :  { %v1877_v0 = vpop.f32.mrf.mxu0  ;;  %2268 = vst [vmem:[%s5492_s2 + $0x178] sm:$0xff] %v1874_v56 }
 0x1e0   :  { %v1878_v59 = vadd.f32 %v1877_v0, %v1716_v60  ;;  %v1730_v25 = vpop.f32.mrf.mxu1 }
 0x1e1   :  { %v1879_v20 = vpop.f32.mrf.mxu0 }
 0x1e2   :  { %2274 = vst [vmem:[%s5492_s2 + $0x1a8] sm:$0xff] %v1878_v59  ;;  %v1880_v58 = vadd.f32 %v1879_v20, %v1718_v2 }
 0x1e3   :  { %v1734_v46 = vpop.f32.mrf.mxu1 }
 0x1e4   :  { %2275 = vst [vmem:[%s5492_s2 + $0x1b0] sm:$0xff] %v1880_v58  ;;  %v1883_v51 = vpop.f32.mrf.mxu0 }
 0x1e5   :  { %v1884_v5 = vadd.f32 %v1883_v51, %v1722_v47  ;;  %v1736_v29 = vpop.f32.mrf.mxu1 }
 0x1e6   :  { %v1885_v30 = vpop.f32.mrf.mxu0 }
 0x1e7   :  { %2281 = vst [vmem:[%s5492_s2 + $0x1e0] sm:$0xff] %v1884_v5  ;;  %v1886_v11 = vadd.f32 %v1885_v30, %v1724_v1 }
 0x1e8   :  { %v1740_v6 = vpop.f32.mrf.mxu1  ;;  %v1889_v52 = vpop.f32.mrf.mxu0 }
 0x1e9   :  { %2282 = vst [vmem:[%s5492_s2 + $0x1e8] sm:$0xff] %v1886_v11  ;;  %v1890_v18 = vadd.f32 %v1889_v52, %v1728_v62 }
 0x1ea   :  { %v1742_v23 = vpop.f32.mrf.mxu1  ;;  %v1891_v57 = vpop.f32.mrf.mxu0 }
 0x1eb   :  { %2288 = vst [vmem:[%s5492_s2 + $0x218] sm:$0xff] %v1890_v18  ;;  %v1892_v8 = vadd.f32 %v1891_v57, %v1730_v25 }
 0x1ed   :  { %v1746_v26 = vpop.f32.mrf.mxu1  ;;  %2289 = vst [vmem:[%s5492_s2 + $0x220] sm:$0xff] %v1892_v8  ;;  %v1895_v17 = vpop.f32.mrf.mxu0 }
 0x1ee   :  { %v1896_v38 = vadd.f32 %v1895_v17, %v1734_v46 }
 0x1ef   :  { %v1748_v48 = vpop.f32.mrf.mxu1  ;;  %v1897_v42 = vpop.f32.mrf.mxu0 }
 0x1f0   :  { %2295 = vst [vmem:[%s5492_s2 + $0x250] sm:$0xff] %v1896_v38  ;;  %v1898_v40 = vadd.f32 %v1897_v42, %v1736_v29 }
 0x1f1   :  { %v1752_v37 = vpop.f32.mrf.mxu1 }
 0x1f2   :  { %v1901_v4 = vpop.f32.mrf.mxu0  ;;  %2296 = vst [vmem:[%s5492_s2 + $0x258] sm:$0xff] %v1898_v40 }
 0x1f3   :  { %v1902_v50 = vadd.f32 %v1901_v4, %v1740_v6  ;;  %v1754_v19 = vpop.f32.mrf.mxu1 }
 0x1f4   :  { %v1903_v41 = vpop.f32.mrf.mxu0 }
 0x1f5   :  { %2302 = vst [vmem:[%s5492_s2 + $0x288] sm:$0xff] %v1902_v50  ;;  %v1904_v13 = vadd.f32 %v1903_v41, %v1742_v23 }
 0x1f6   :  { %v1758_v45 = vpop.f32.mrf.mxu1 }
 0x1f7   :  { %2303 = vst [vmem:[%s5492_s2 + $0x290] sm:$0xff] %v1904_v13  ;;  %v1907_v61 = vpop.f32.mrf.mxu0 }
 0x1f8   :  { %v1908_v9 = vadd.f32 %v1907_v61, %v1746_v26  ;;  %v1760_v31 = vpop.f32.mrf.mxu1 }
 0x1f9   :  { %v1909_v35 = vpop.f32.mrf.mxu0 }
 0x1fa   :  { %2309 = vst [vmem:[%s5492_s2 + $0x2c0] sm:$0xff] %v1908_v9  ;;  %v1910_v10 = vadd.f32 %v1909_v35, %v1748_v48 }
 0x1fb   :  { %v1764_v12 = vpop.f32.mrf.mxu1  ;;  %v1913_v44 = vpop.f32.mrf.mxu0 }
 0x1fc   :  { %2310 = vst [vmem:[%s5492_s2 + $0x2c8] sm:$0xff] %v1910_v10  ;;  %v1914_v36 = vadd.f32 %v1913_v44, %v1752_v37 }
 0x1fd   :  { %v1766_v54 = vpop.f32.mrf.mxu1  ;;  %v1915_v55 = vpop.f32.mrf.mxu0 }
 0x1fe   :  { %2316 = vst [vmem:[%s5492_s2 + $0x2f8] sm:$0xff] %v1914_v36  ;;  %v1916_v39 = vadd.f32 %v1915_v55, %v1754_v19 }
 0x200   :  { %v1919_v16 = vpop.f32.mrf.mxu0  ;;  %2317 = vst [vmem:[%s5492_s2 + $0x300] sm:$0xff] %v1916_v39  ;;  %v2433_v14 = vpop.f32.mrf.mxu1 }
 0x201   :  { %v1920_v33 = vadd.f32 %v1919_v16, %v1758_v45 }
 0x202   :  { %v1921_v28 = vpop.f32.mrf.mxu0  ;;  %v2434_v3 = vpop.f32.mrf.mxu1 }
 0x203   :  { %2323 = vst [vmem:[%s5492_s2 + $0x330] sm:$0xff] %v1920_v33  ;;  %v1922_v24 = vadd.f32 %v1921_v28, %v1760_v31  ;;  %v2435_v63 = vadd.f32 %v2434_v3, %v2433_v14 }
 0x205   :  { %2324 = vst [vmem:[%s5492_s2 + $0x338] sm:$0xff] %v1922_v24  ;;  %v2436_v21 = vpop.f32.mrf.mxu1  ;;  %v1925_v43 = vpop.f32.mrf.mxu0 }
 0x206   :  { %v1926_v49 = vadd.f32 %v1925_v43, %v1764_v12 }
 0x207   :  { %v2437_v7 = vpop.f32.mrf.mxu1  ;;  %v1927_v60 = vpop.f32.mrf.mxu0 }
 0x208   :  { %2330 = vst [vmem:[%s5492_s2 + $0x368] sm:$0xff] %v1926_v49  ;;  %v1928_v34 = vadd.f32 %v1927_v60, %v1766_v54  ;;  %v2438_v53 = vadd.f32 %v2437_v7, %v2436_v21 }
 0x20a   :  { %2331 = vst [vmem:[%s5492_s2 + $0x370] sm:$0xff] %v1928_v34 }
 0x20b   :  { %v2439_v2 = vpop.f32.mrf.mxu1  ;;  %v2141_v32 = vpop.f32.mrf.mxu0 }
 0x20c   :  { %v2142_v27 = vadd.f32 %v2435_v63, %v2141_v32 }
 0x20d   :  { %v2440_v47 = vpop.f32.mrf.mxu1  ;;  %v2143_v15 = vpop.f32.mrf.mxu0 }
 0x20e   :  { %2227 = vst.msk [vmem:[%s5492_s2 + $0x30] sm:$0xff] %vm2226_vm1, %v2142_v27  ;;  %v2441_v59 = vadd.f32 %v2440_v47, %v2439_v2 }
 0x20f   :  { %v2442_v1 = vpop.f32.mrf.mxu1 }
 0x210   :  { %v2146_v22 = vpop.f32.mrf.mxu0 }
 0x211   :  { %v2147_v56 = vadd.f32 %v2438_v53, %v2146_v22  ;;  %v2443_v62 = vpop.f32.mrf.mxu1 }
 0x212   :  { %v2148_v0 = vpop.f32.mrf.mxu0  ;;  %v2444_v5 = vadd.f32 %v2443_v62, %v2442_v1 }
 0x213   :  { %2234 = vst.msk [vmem:[%s5492_s2 + $0x68] sm:$0xff] %vm2226_vm1, %v2147_v56  ;;  %v2445_v25 = vpop.f32.mrf.mxu1 }
 0x214   :  { %v2151_v20 = vpop.f32.mrf.mxu0 }
 0x215   :  { %v2152_v58 = vadd.f32 %v2441_v59, %v2151_v20  ;;  %v2446_v46 = vpop.f32.mrf.mxu1 }
 0x216   :  { %v2153_v51 = vpop.f32.mrf.mxu0  ;;  %v2447_v18 = vadd.f32 %v2446_v46, %v2445_v25 }
 0x217   :  { %2241 = vst.msk [vmem:[%s5492_s2 + $0xa0] sm:$0xff] %vm2226_vm1, %v2152_v58  ;;  %v2448_v29 = vpop.f32.mrf.mxu1 }
 0x218   :  { %v2156_v30 = vpop.f32.mrf.mxu0 }
 0x219   :  { %v2157_v11 = vadd.f32 %v2444_v5, %v2156_v30  ;;  %v2449_v6 = vpop.f32.mrf.mxu1 }
 0x21a   :  { %v2158_v52 = vpop.f32.mrf.mxu0  ;;  %v2450_v38 = vadd.f32 %v2449_v6, %v2448_v29 }
 0x21b   :  { %2248 = vst.msk [vmem:[%s5492_s2 + $0xd8] sm:$0xff] %vm2226_vm1, %v2157_v11  ;;  %v2451_v23 = vpop.f32.mrf.mxu1 }
 0x21c   :  { %v2161_v57 = vpop.f32.mrf.mxu0 }
 0x21d   :  { %v2162_v8 = vadd.f32 %v2447_v18, %v2161_v57  ;;  %v2452_v26 = vpop.f32.mrf.mxu1 }
 0x21e   :  { %v2163_v17 = vpop.f32.mrf.mxu0  ;;  %v2453_v50 = vadd.f32 %v2452_v26, %v2451_v23 }
 0x21f   :  { %2255 = vst.msk [vmem:[%s5492_s2 + $0x110] sm:$0xff] %vm2226_vm1, %v2162_v8  ;;  %v2454_v48 = vpop.f32.mrf.mxu1 }
 0x220   :  { %v2166_v42 = vpop.f32.mrf.mxu0 }
 0x221   :  { %v2167_v40 = vadd.f32 %v2450_v38, %v2166_v42  ;;  %v2455_v37 = vpop.f32.mrf.mxu1 }
 0x222   :  { %v2168_v4 = vpop.f32.mrf.mxu0  ;;  %v2456_v9 = vadd.f32 %v2455_v37, %v2454_v48 }
 0x223   :  { %2262 = vst.msk [vmem:[%s5492_s2 + $0x148] sm:$0xff] %vm2226_vm1, %v2167_v40  ;;  %v2457_v19 = vpop.f32.mrf.mxu1 }
 0x224   :  { %v2171_v41 = vpop.f32.mrf.mxu0 }
 0x225   :  { %v2172_v13 = vadd.f32 %v2453_v50, %v2171_v41  ;;  %v2458_v45 = vpop.f32.mrf.mxu1 }
 0x226   :  { %v2173_v61 = vpop.f32.mrf.mxu0  ;;  %v2459_v36 = vadd.f32 %v2458_v45, %v2457_v19 }
 0x227   :  { %2269 = vst.msk [vmem:[%s5492_s2 + $0x180] sm:$0xff] %vm2226_vm1, %v2172_v13  ;;  %v2460_v31 = vpop.f32.mrf.mxu1 }
 0x228   :  { %v2176_v35 = vpop.f32.mrf.mxu0 }
 0x229   :  { %v2177_v10 = vadd.f32 %v2456_v9, %v2176_v35  ;;  %v2461_v12 = vpop.f32.mrf.mxu1 }
 0x22a   :  { %v2178_v44 = vpop.f32.mrf.mxu0  ;;  %v2462_v14 = vadd.f32 %v2461_v12, %v2460_v31 }
 0x22b   :  { %2276 = vst.msk [vmem:[%s5492_s2 + $0x1b8] sm:$0xff] %vm2226_vm1, %v2177_v10  ;;  %v2463_v54 = vpop.f32.mrf.mxu1 }
 0x22c   :  { %v2181_v55 = vpop.f32.mrf.mxu0 }
 0x22d   :  { %v2182_v39 = vadd.f32 %v2459_v36, %v2181_v55  ;;  %v2464_v16 = vpop.f32.mrf.mxu1 }
 0x22e   :  { %v2183_v33 = vpop.f32.mrf.mxu0  ;;  %v2465_v49 = vadd.f32 %v2464_v16, %v2463_v54 }
 0x22f   :  { %2283 = vst.msk [vmem:[%s5492_s2 + $0x1f0] sm:$0xff] %vm2226_vm1, %v2182_v39  ;;  %v2466_v28 = vpop.f32.mrf.mxu1 }
 0x230   :  { %v2186_v24 = vpop.f32.mrf.mxu0 }
 0x231   :  { %v2187_v3 = vadd.f32 %v2462_v14, %v2186_v24  ;;  %v2467_v21 = vpop.f32.mrf.mxu1 }
 0x232   :  { %v2188_v43 = vpop.f32.mrf.mxu0  ;;  %v2468_v32 = vadd.f32 %v2467_v21, %v2466_v28 }
 0x233   :  { %2290 = vst.msk [vmem:[%s5492_s2 + $0x228] sm:$0xff] %vm2226_vm1, %v2187_v3  ;;  %v2469_v7 = vpop.f32.mrf.mxu1 }
 0x234   :  { %v2191_v60 = vpop.f32.mrf.mxu0 }
 0x235   :  { %v2192_v34 = vadd.f32 %v2465_v49, %v2191_v60  ;;  %v2470_v63 = vpop.f32.mrf.mxu1 }
 0x236   :  { %v2193_v2 = vpop.f32.mrf.mxu0  ;;  %v2471_v22 = vadd.f32 %v2470_v63, %v2469_v7 }
 0x237   :  { %2297 = vst.msk [vmem:[%s5492_s2 + $0x260] sm:$0xff] %vm2226_vm1, %v2192_v34  ;;  %v2472_v27 = vpop.f32.mrf.mxu1 }
 0x238   :  { %v2196_v47 = vpop.f32.mrf.mxu0 }
 0x239   :  { %v2197_v15 = vadd.f32 %v2468_v32, %v2196_v47  ;;  %v2473_v53 = vpop.f32.mrf.mxu1 }
 0x23a   :  { %v2198_v1 = vpop.f32.mrf.mxu0  ;;  %v2474_v20 = vadd.f32 %v2473_v53, %v2472_v27 }
 0x23b   :  { %2304 = vst.msk [vmem:[%s5492_s2 + $0x298] sm:$0xff] %vm2226_vm1, %v2197_v15  ;;  %v2475_v56 = vpop.f32.mrf.mxu1 }
 0x23c   :  { %v2201_v62 = vpop.f32.mrf.mxu0 }
 0x23d   :  { %v2202_v0 = vadd.f32 %v2471_v22, %v2201_v62  ;;  %v2476_v59 = vpop.f32.mrf.mxu1 }
 0x23e   :  { %v2203_v25 = vpop.f32.mrf.mxu0  ;;  %v2477_v11 = vadd.f32 %v2476_v59, %v2475_v56 }
 0x23f   :  { %2311 = vst.msk [vmem:[%s5492_s2 + $0x2d0] sm:$0xff] %vm2226_vm1, %v2202_v0  ;;  %v2478_v58 = vpop.f32.mrf.mxu1 }
 0x240   :  { %v2206_v46 = vpop.f32.mrf.mxu0 }
 0x241   :  { %v2207_v51 = vadd.f32 %v2474_v20, %v2206_v46  ;;  %v2479_v5 = vpop.f32.mrf.mxu1 }
 0x242   :  { %v2480_v29 = vadd.f32 %v2479_v5, %v2478_v58  ;;  %v2208_v30 = vpop.f32.mrf.mxu0 }
 0x243   :  { %2318 = vst.msk [vmem:[%s5492_s2 + $0x308] sm:$0xff] %vm2226_vm1, %v2207_v51  ;;  %v2216_v6 = vpop.f32.mrf.mxu1 }
 0x244   :  { %v2211_v52 = vpop.f32.mrf.mxu0  ;;  %v2217_v18 = vadd.f32 %v2480_v29, %v2216_v6 }
 0x245   :  { %v2212_v23 = vadd.f32 %v2477_v11, %v2211_v52  ;;  %v2218_v57 = vpop.f32.mrf.mxu1 }
 0x246   :  { %2332 = vst.msk [vmem:[%s5492_s2 + $0x378] sm:$0xff] %vm2226_vm1, %v2217_v18  ;;  %v2213_v8 = vpop.f32.mrf.mxu0 }
 0x247   :  { %2325 = vst.msk [vmem:[%s5492_s2 + $0x340] sm:$0xff] %vm2226_vm1, %v2212_v23 }

</bundles_post_ra>
